<compile_context>
chip_gen: v6e
topology: v6e:2x2x1
jax: 0.10.0
libtpu: 0.0.40
codegen_flags: <defaults>
</compile_context>

<pallas_src>
import functools

import jax
import jax.numpy as jnp
from jax.experimental import pallas as pl
from jax.experimental.pallas import tpu as pltpu


def _round_up(x, m):
    return (x + m - 1) // m * m


# ----------------------------------------------------------------------------
# Pallas kernel: per-tile KPConv ops
# ----------------------------------------------------------------------------
def _kpconv_kernel(xyz_ref, feat_ref, g_ref, kpsq_ref, w_ref, out_ref,
                   winf_ref, wfeat_ref, *, inv_sigma, n_kernel_points, m_chunk):
    # xyz_ref  : [tn, 2*M*3]      neighbor offsets ++ squared offsets (f32)
    # feat_ref : [M, tn, Cin]     gathered neighbor features (bf16 or f32, shadow rows = 0)
    # g_ref    : [2*M*3, M*K]     block-diag [[-2*kp^T],[ones]] (f32)
    # kpsq_ref : [1, M*K]         ||kp_k||^2 tiled over m (f32)
    # w_ref    : [K*Cin, Cout_p]  weights, (k, c)-flattened, Cout padded lane-dense
    # out_ref  : [tn, Cout_p]     f32
    # winf_ref : [tn, M*K]        VMEM scratch, dense influence weights (f32)
    # wfeat_ref: [tn, K*Cin]      VMEM scratch, first-contraction accumulator (f32)
    M = feat_ref.shape[0]
    Cin = feat_ref.shape[2]
    K = n_kernel_points

    # --- KP influence (linear): one lane-dense MXU matmul over all (m, k) pairs ---
    # xyz @ G = ||p_m||^2 - 2 p_m . kp_k   laid out m-major over the lanes.
    sq = jnp.dot(xyz_ref[...], g_ref[...], preferred_element_type=jnp.float32)
    sq = jnp.maximum(sq + kpsq_ref[...], 0.0)            # clamp fp cancellation
    winf_ref[...] = jnp.maximum(1.0 - jnp.sqrt(sq) * inv_sigma, 0.0)  # [tn, M*K]

    # --- first contraction (sum over neighbors) on the VPU, chunked over m ------
    # wfeat[:, k*Cin:(k+1)*Cin] = sum_m winf[:, m*K+k] * feat[m]
    n_chunks = M // m_chunk
    for c in range(n_chunks):
        base = c * m_chunk
        wch = winf_ref[:, base * K:(base + m_chunk) * K]        # [tn, m_chunk*K] f32
        feats = [feat_ref[base + j] for j in range(m_chunk)]    # m_chunk x [tn, Cin]
        for k in range(K):
            acc = wch[:, k:k + 1] * feats[0]                    # promotes to f32
            for j in range(1, m_chunk):
                col = j * K + k
                acc = acc + wch[:, col:col + 1] * feats[j]
            sl = slice(k * Cin, (k + 1) * Cin)
            if c == 0:
                wfeat_ref[:, sl] = acc
            else:
                wfeat_ref[:, sl] = wfeat_ref[:, sl] + acc

    # --- second contraction: single flattened lane-dense MXU matmul -------------
    wf = wfeat_ref[...]
    if wf.dtype != w_ref.dtype:
        wf = wf.astype(w_ref.dtype)                             # bf16 operands on fast path
    out_ref[...] = jnp.dot(wf, w_ref[...],
                           preferred_element_type=jnp.float32).astype(out_ref.dtype)


# ----------------------------------------------------------------------------
# Module-equivalent wrapper
# ----------------------------------------------------------------------------
class KPConvLayerPallas:
    _INFLUENCE_TO_RADIUS = 1.5

    def __init__(self, num_inputs, num_outputs, point_influence,
                 n_kernel_points=15, dimension=3, add_one=False,
                 tile_n=256, m_chunk=4, feat_dtype=jnp.bfloat16, *, key):
        self.kernel_radius = self._INFLUENCE_TO_RADIUS * point_influence
        self.point_influence = float(point_influence)
        self.add_one = add_one
        self.num_inputs = num_inputs + int(add_one)
        self.num_outputs = num_outputs
        self.n_kernel_points = n_kernel_points
        self.dimension = dimension
        self.tile_n = tile_n
        self.m_chunk = m_chunk
        self.feat_dtype = feat_dtype

        k_kp, k_w = jax.random.split(key)
        # Synthetic stand-in for load_kernels() (see TODO at top of file).
        kp = jax.random.uniform(k_kp, (n_kernel_points, dimension),
                                minval=-1.0, maxval=1.0) * self.kernel_radius
        kp = kp.at[0].set(0.0)
        self.K_points = kp.astype(jnp.float32)

        # xavier_normal_ on [K, Cin, Cout]: fan_in = Cin*Cout, fan_out = K*Cout
        fan_in = self.num_inputs * num_outputs
        fan_out = n_kernel_points * num_outputs
        std = (2.0 / (fan_in + fan_out)) ** 0.5
        self.weight = (std * jax.random.normal(
            k_w, (n_kernel_points, self.num_inputs, num_outputs))
        ).astype(jnp.float32)

    def __call__(self, query_points, support_points, neighbors, x, *, feat_dtype=None):
        feat_dtype = self.feat_dtype if feat_dtype is None else feat_dtype

        # add_ones
        if self.add_one:
            ones = jnp.ones((support_points.shape[0], 1), dtype=jnp.float32)
            x = ones if x is None else jnp.concatenate(
                [ones.astype(x.dtype), x], axis=-1)

        N, M = neighbors.shape
        D = self.dimension
        Cin, Cout, K = self.num_inputs, self.num_outputs, self.n_kernel_points

        # neighbor-chunk size for the in-kernel first contraction; pad M to divide
        mc = max(1, min(self.m_chunk, M))
        m_pad = _round_up(M, mc)

        # shadow support point (far away -> zero influence) + shadow zero feature row
        shadow_idx = support_points.shape[0]
        shadow_pt = jnp.full((1, D), 1e6, dtype=support_points.dtype)
        support_ext = jnp.concatenate([support_points, shadow_pt], axis=0)
        # Cast features BEFORE the gather so the M-inflated stream is already narrow.
        # The xyz / distance path stays f32 (shadow-point trick relies on it).
        feat_ext = jnp.concatenate(
            [x, jnp.zeros((1, Cin), dtype=x.dtype)], axis=0).astype(feat_dtype)

        idx = neighbors.astype(jnp.int32)
        if m_pad != M:
            idx = jnp.concatenate(
                [idx, jnp.full((N, m_pad - M), shadow_idx, jnp.int32)], axis=1)

        # data-dependent gathers stay in XLA glue for small Cin (see TODO at top)
        neigh_xyz = support_ext[idx] - query_points[:, None, :]      # [N, m_pad, 3] f32
        neigh_feat = feat_ext[idx.T]                                  # [m_pad, N, Cin]

        xyz_flat = neigh_xyz.reshape(N, m_pad * D).astype(jnp.float32)
        xyz_aug = jnp.concatenate([xyz_flat, xyz_flat * xyz_flat], axis=-1)  # [N, 2*m_pad*3]

        # query-point tiling (pad N). Padded rows have zero features, so their
        # (possibly nonzero) influence weights contribute nothing; rows are sliced
        # off below (wasted compute only on the last tile).
        tn = min(self.tile_n, _round_up(N, 8))
        n_pad = _round_up(N, tn)
        if n_pad != N:
            xyz_aug = jnp.pad(xyz_aug, ((0, n_pad - N), (0, 0)))
            neigh_feat = jnp.pad(neigh_feat, ((0, 0), (0, n_pad - N), (0, 0)))

        # block-diagonal influence matrix: xyz_aug @ G = ||p_m||^2 - 2 p_m.kp_k
        kp = self.K_points                                            # [K, 3]
        eye_m = jnp.eye(m_pad, dtype=jnp.float32)
        bd_kp = jnp.kron(eye_m, kp.T)                                 # [m_pad*3, m_pad*K]
        bd_one = jnp.kron(eye_m, jnp.ones((D, K), jnp.float32))       # [m_pad*3, m_pad*K]
        g_mat = jnp.concatenate([-2.0 * bd_kp, bd_one], axis=0)       # [2*m_pad*3, m_pad*K]
        kp_sq = jnp.sum(kp * kp, axis=-1)                             # [K]
        kpsq_tiled = jnp.tile(kp_sq, (m_pad,))[None, :]               # [1, m_pad*K]

        # lane-dense output: pad Cout to MXU width (256 on v6e/v7x once Cout > 128)
        cout_mult = 256 if Cout > 128 else 128
        cout_p = _round_up(Cout, cout_mult)
        w_flat = self.weight.reshape(K * Cin, Cout).astype(feat_dtype)
        if cout_p != Cout:
            w_flat = jnp.pad(w_flat, ((0, 0), (0, cout_p - Cout)))

        kernel = functools.partial(
            _kpconv_kernel,
            inv_sigma=1.0 / self.point_influence,
            n_kernel_points=K,
            m_chunk=mc,
        )

        # rough double-buffered VMEM budget; only set an explicit limit when large
        fb = jnp.dtype(feat_dtype).itemsize
        est = (2 * (tn * 2 * m_pad * D * 4
                    + m_pad * tn * Cin * fb
                    + tn * cout_p * 4)
               + 2 * (2 * m_pad * D * m_pad * K * 4
                      + m_pad * K * 4
                      + K * Cin * cout_p * fb)
               + tn * m_pad * K * 4
               + tn * K * Cin * 4)
        vmem_limit = None
        if est > (12 << 20):
            vmem_limit = int(min(est * 3 // 2 + (2 << 20), 100 << 20))

        out = pl.pallas_call(
            kernel,
            out_shape=jax.ShapeDtypeStruct((n_pad, cout_p), jnp.float32),
            grid=(n_pad // tn,),
            in_specs=[
                pl.BlockSpec((tn, 2 * m_pad * D), lambda i: (i, 0)),
                pl.BlockSpec((m_pad, tn, Cin), lambda i: (0, i, 0)),
                pl.BlockSpec((2 * m_pad * D, m_pad * K), lambda i: (0, 0)),
                pl.BlockSpec((1, m_pad * K), lambda i: (0, 0)),
                pl.BlockSpec((K * Cin, cout_p), lambda i: (0, 0)),
            ],
            out_specs=pl.BlockSpec((tn, cout_p), lambda i: (i, 0)),
            scratch_shapes=[
                pltpu.VMEM((tn, m_pad * K), jnp.float32),
                pltpu.VMEM((tn, K * Cin), jnp.float32),
            ],
            compiler_params=pltpu.CompilerParams(
                dimension_semantics=("parallel",),
                vmem_limit_bytes=vmem_limit,
            ),
        )(xyz_aug, neigh_feat, g_mat, kpsq_tiled, w_flat)

        return out[:N, :Cout]


# ----------------------------------------------------------------------------
# Pure-JAX reference (mirrors KPConv_ops) for a correctness check
# ----------------------------------------------------------------------------
def _kpconv_ref(layer, query_points, support_points, neighbors, x):
    shadow_pt = jnp.full((1, support_points.shape[1]), 1e6, jnp.float32)
    support_ext = jnp.concatenate([support_points, shadow_pt], axis=0)
    feat_ext = jnp.concatenate([x, jnp.zeros((1, x.shape[1]), x.dtype)], axis=0)
    neigh = support_ext[neighbors] - query_points[:, None, :]
    diff = neigh[:, :, None, :] - layer.K_points[None, None, :, :]
    sq = jnp.sum(diff ** 2, axis=-1)
    w = jnp.maximum(1.0 - jnp.sqrt(sq) / layer.point_influence, 0.0)
    w = jnp.transpose(w, (0, 2, 1))
    nf = feat_ext[neighbors]
    wf = jnp.einsum("nkm,nmc->nkc", w, nf)
    return jnp.einsum("nkc,kco->no", wf, layer.weight)


if __name__ == "__main__":
    key = jax.random.PRNGKey(0)
    k_q, k_s, k_n, k_x, k_p = jax.random.split(key, 5)

    N, N0, M = 16, 24, 8          # query pts, support pts, neighbors per point
    Cin, Cout = 4, 8
    point_influence = 0.2

    query_points = jax.random.uniform(k_q, (N, 3), dtype=jnp.float32)
    support_points = jax.random.uniform(k_s, (N0, 3), dtype=jnp.float32)
    # some neighbor slots point at the shadow index N0 (masked out by influence)
    neighbors = jax.random.randint(k_n, (N, M), 0, N0 + 1, dtype=jnp.int32)
    x = jax.random.normal(k_x, (N0, Cin), dtype=jnp.float32)

    layer = KPConvLayerPallas(Cin, Cout, point_influence, key=k_p)
    ref = _kpconv_ref(layer, query_points, support_points, neighbors, x)

    # f32 feature path: tight check against the pure-JAX reference
    out_f32 = layer(query_points, support_points, neighbors, x,
                    feat_dtype=jnp.float32)
    out_f32 = jax.block_until_ready(out_f32)
    assert out_f32.shape == (N, Cout)
    assert jnp.allclose(out_f32, ref, atol=2e-3, rtol=2e-3), "f32 mismatch vs reference"

    # bf16 feature / bf16-matmul fast path (default): looser tolerance
    out_bf16 = jax.block_until_ready(
        layer(query_points, support_points, neighbors, x))
    assert out_bf16.shape == (N, Cout)
    assert jnp.allclose(out_bf16, ref, atol=6e-2, rtol=6e-2), "bf16 mismatch vs reference"

    print("KERNEL_OK")
</pallas_src>

<mosaic_0001>
module attributes {stable_mosaic.version = 11 : i64} {
  func.func @_kpconv_kernel(%arg0: i32, %arg1: memref<16x48xf32, #tpu.memory_space<vmem>>, %arg2: memref<8x16x4xf32, #tpu.memory_space<vmem>>, %arg3: memref<48x120xf32, #tpu.memory_space<vmem>>, %arg4: memref<1x120xf32, #tpu.memory_space<vmem>>, %arg5: memref<60x128xf32, #tpu.memory_space<vmem>>, %arg6: memref<16x128xf32, #tpu.memory_space<vmem>>, %arg7: memref<16x120xf32, #tpu.memory_space<vmem>>, %arg8: memref<16x60xf32, #tpu.memory_space<vmem>>) attributes {dimension_semantics = [#tpu.dimension_semantics<parallel>], iteration_bounds = array<i64: 1>, scalar_prefetch = 0 : i64, scratch_operands = 2 : i64, tpu.core_type = #tpu.core_type<tc>, window_params = [{transform_indices = @transform_0, window_bounds = array<i64: 16, 48>}, {transform_indices = @transform_1, window_bounds = array<i64: 8, 16, 4>}, {pipeline_mode = #tpu.pipeline_mode<synchronous>, transform_indices = @transform_2, window_bounds = array<i64: 48, 120>}, {pipeline_mode = #tpu.pipeline_mode<synchronous>, transform_indices = @transform_3, window_bounds = array<i64: 1, 120>}, {pipeline_mode = #tpu.pipeline_mode<synchronous>, transform_indices = @transform_4, window_bounds = array<i64: 60, 128>}, {transform_indices = @transform_5, window_bounds = array<i64: 16, 128>}]} {
    %c0 = arith.constant 0 : index
    %c0_0 = arith.constant 0 : index
    %0 = vector.load %arg1[%c0, %c0_0] : memref<16x48xf32, #tpu.memory_space<vmem>>, vector<16x48xf32>
    %c0_1 = arith.constant 0 : index
    %c0_2 = arith.constant 0 : index
    %1 = vector.load %arg3[%c0_1, %c0_2] : memref<48x120xf32, #tpu.memory_space<vmem>>, vector<48x120xf32>
    %cst = arith.constant dense<0.000000e+00> : vector<16x120xf32>
    %2 = tpu.matmul %0, %1, %cst {dimension_numbers = #tpu.dot_dimension_numbers<[1], [0], [0], [1], [0, 0, 1, 1], [], []>} : vector<16x48xf32>, vector<48x120xf32>, vector<16x120xf32> -> vector<16x120xf32>
    %c0_3 = arith.constant 0 : index
    %c0_4 = arith.constant 0 : index
    %3 = vector.load %arg4[%c0_3, %c0_4] : memref<1x120xf32, #tpu.memory_space<vmem>>, vector<1x120xf32>
    %4 = vector.broadcast %3 : vector<1x120xf32> to vector<16x120xf32>
    %5 = arith.addf %2, %4 : vector<16x120xf32>
    %cst_5 = arith.constant 0.000000e+00 : f32
    %6 = vector.broadcast %cst_5 : f32 to vector<16x120xf32>
    %7 = arith.maximumf %5, %6 : vector<16x120xf32>
    %8 = math.sqrt %7 : vector<16x120xf32>
    %cst_6 = arith.constant 5.000000e+00 : f32
    %9 = vector.broadcast %cst_6 : f32 to vector<16x120xf32>
    %10 = arith.mulf %8, %9 : vector<16x120xf32>
    %cst_7 = arith.constant 1.000000e+00 : f32
    %11 = vector.broadcast %cst_7 : f32 to vector<16x120xf32>
    %12 = arith.subf %11, %10 : vector<16x120xf32>
    %cst_8 = arith.constant 0.000000e+00 : f32
    %13 = vector.broadcast %cst_8 : f32 to vector<16x120xf32>
    %14 = arith.maximumf %12, %13 : vector<16x120xf32>
    %c0_9 = arith.constant 0 : index
    %c0_10 = arith.constant 0 : index
    %15 = vector.load %arg7[%c0_9, %c0_10] : memref<16x120xf32, #tpu.memory_space<vmem>>, vector<16x120xf32>
    tpu.vector_store %arg7[%c0_9, %c0_10], %14 {strides = array<i32>} : memref<16x120xf32, #tpu.memory_space<vmem>>, vector<16x120xf32>,
    %c0_11 = arith.constant 0 : index
    %c0_12 = arith.constant 0 : index
    %16 = vector.load %arg7[%c0_11, %c0_12] : memref<16x120xf32, #tpu.memory_space<vmem>>, vector<16x60xf32>
    %c0_13 = arith.constant 0 : index
    %c0_14 = arith.constant 0 : index
    %c0_15 = arith.constant 0 : index
    %17 = vector.load %arg2[%c0_13, %c0_14, %c0_15] : memref<8x16x4xf32, #tpu.memory_space<vmem>>, vector<1x16x4xf32>
    %18 = vector.shape_cast %17 : vector<1x16x4xf32> to vector<16x4xf32>
    %c1 = arith.constant 1 : index
    %c0_16 = arith.constant 0 : index
    %c0_17 = arith.constant 0 : index
    %19 = vector.load %arg2[%c1, %c0_16, %c0_17] : memref<8x16x4xf32, #tpu.memory_space<vmem>>, vector<1x16x4xf32>
    %20 = vector.shape_cast %19 : vector<1x16x4xf32> to vector<16x4xf32>
    %c2 = arith.constant 2 : index
    %c0_18 = arith.constant 0 : index
    %c0_19 = arith.constant 0 : index
    %21 = vector.load %arg2[%c2, %c0_18, %c0_19] : memref<8x16x4xf32, #tpu.memory_space<vmem>>, vector<1x16x4xf32>
    %22 = vector.shape_cast %21 : vector<1x16x4xf32> to vector<16x4xf32>
    %c3 = arith.constant 3 : index
    %c0_20 = arith.constant 0 : index
    %c0_21 = arith.constant 0 : index
    %23 = vector.load %arg2[%c3, %c0_20, %c0_21] : memref<8x16x4xf32, #tpu.memory_space<vmem>>, vector<1x16x4xf32>
    %24 = vector.shape_cast %23 : vector<1x16x4xf32> to vector<16x4xf32>
    %25 = vector.extract_strided_slice %16 {offsets = [0, 0], sizes = [16, 1], strides = [1, 1]} : vector<16x60xf32> to vector<16x1xf32>
    %26 = vector.broadcast %25 : vector<16x1xf32> to vector<16x4xf32>
    %27 = arith.mulf %26, %18 : vector<16x4xf32>
    %28 = vector.extract_strided_slice %16 {offsets = [0, 15], sizes = [16, 1], strides = [1, 1]} : vector<16x60xf32> to vector<16x1xf32>
    %29 = vector.broadcast %28 : vector<16x1xf32> to vector<16x4xf32>
    %30 = arith.mulf %29, %20 : vector<16x4xf32>
    %31 = arith.addf %27, %30 : vector<16x4xf32>
    %32 = vector.extract_strided_slice %16 {offsets = [0, 30], sizes = [16, 1], strides = [1, 1]} : vector<16x60xf32> to vector<16x1xf32>
    %33 = vector.broadcast %32 : vector<16x1xf32> to vector<16x4xf32>
    %34 = arith.mulf %33, %22 : vector<16x4xf32>
    %35 = arith.addf %31, %34 : vector<16x4xf32>
    %36 = vector.extract_strided_slice %16 {offsets = [0, 45], sizes = [16, 1], strides = [1, 1]} : vector<16x60xf32> to vector<16x1xf32>
    %37 = vector.broadcast %36 : vector<16x1xf32> to vector<16x4xf32>
    %38 = arith.mulf %37, %24 : vector<16x4xf32>
    %39 = arith.addf %35, %38 : vector<16x4xf32>
    %c0_22 = arith.constant 0 : index
    %c0_23 = arith.constant 0 : index
    %40 = vector.load %arg8[%c0_22, %c0_23] : memref<16x60xf32, #tpu.memory_space<vmem>>, vector<16x4xf32>
    tpu.vector_store %arg8[%c0_22, %c0_23], %39 {strides = array<i32>} : memref<16x60xf32, #tpu.memory_space<vmem>>, vector<16x4xf32>,
    %41 = vector.extract_strided_slice %16 {offsets = [0, 1], sizes = [16, 1], strides = [1, 1]} : vector<16x60xf32> to vector<16x1xf32>
    %42 = vector.broadcast %41 : vector<16x1xf32> to vector<16x4xf32>
    %43 = arith.mulf %42, %18 : vector<16x4xf32>
    %44 = vector.extract_strided_slice %16 {offsets = [0, 16], sizes = [16, 1], strides = [1, 1]} : vector<16x60xf32> to vector<16x1xf32>
    %45 = vector.broadcast %44 : vector<16x1xf32> to vector<16x4xf32>
    %46 = arith.mulf %45, %20 : vector<16x4xf32>
    %47 = arith.addf %43, %46 : vector<16x4xf32>
    %48 = vector.extract_strided_slice %16 {offsets = [0, 31], sizes = [16, 1], strides = [1, 1]} : vector<16x60xf32> to vector<16x1xf32>
    %49 = vector.broadcast %48 : vector<16x1xf32> to vector<16x4xf32>
    %50 = arith.mulf %49, %22 : vector<16x4xf32>
    %51 = arith.addf %47, %50 : vector<16x4xf32>
    %52 = vector.extract_strided_slice %16 {offsets = [0, 46], sizes = [16, 1], strides = [1, 1]} : vector<16x60xf32> to vector<16x1xf32>
    %53 = vector.broadcast %52 : vector<16x1xf32> to vector<16x4xf32>
    %54 = arith.mulf %53, %24 : vector<16x4xf32>
    %55 = arith.addf %51, %54 : vector<16x4xf32>
    %c0_24 = arith.constant 0 : index
    %c4 = arith.constant 4 : index
    %56 = vector.load %arg8[%c0_24, %c4] : memref<16x60xf32, #tpu.memory_space<vmem>>, vector<16x4xf32>
    tpu.vector_store %arg8[%c0_24, %c4], %55 {strides = array<i32>} : memref<16x60xf32, #tpu.memory_space<vmem>>, vector<16x4xf32>,
    %57 = vector.extract_strided_slice %16 {offsets = [0, 2], sizes = [16, 1], strides = [1, 1]} : vector<16x60xf32> to vector<16x1xf32>
    %58 = vector.broadcast %57 : vector<16x1xf32> to vector<16x4xf32>
    %59 = arith.mulf %58, %18 : vector<16x4xf32>
    %60 = vector.extract_strided_slice %16 {offsets = [0, 17], sizes = [16, 1], strides = [1, 1]} : vector<16x60xf32> to vector<16x1xf32>
    %61 = vector.broadcast %60 : vector<16x1xf32> to vector<16x4xf32>
    %62 = arith.mulf %61, %20 : vector<16x4xf32>
    %63 = arith.addf %59, %62 : vector<16x4xf32>
    %64 = vector.extract_strided_slice %16 {offsets = [0, 32], sizes = [16, 1], strides = [1, 1]} : vector<16x60xf32> to vector<16x1xf32>
    %65 = vector.broadcast %64 : vector<16x1xf32> to vector<16x4xf32>
    %66 = arith.mulf %65, %22 : vector<16x4xf32>
    %67 = arith.addf %63, %66 : vector<16x4xf32>
    %68 = vector.extract_strided_slice %16 {offsets = [0, 47], sizes = [16, 1], strides = [1, 1]} : vector<16x60xf32> to vector<16x1xf32>
    %69 = vector.broadcast %68 : vector<16x1xf32> to vector<16x4xf32>
    %70 = arith.mulf %69, %24 : vector<16x4xf32>
    %71 = arith.addf %67, %70 : vector<16x4xf32>
    %c0_25 = arith.constant 0 : index
    %c8 = arith.constant 8 : index
    %72 = vector.load %arg8[%c0_25, %c8] : memref<16x60xf32, #tpu.memory_space<vmem>>, vector<16x4xf32>
    tpu.vector_store %arg8[%c0_25, %c8], %71 {strides = array<i32>} : memref<16x60xf32, #tpu.memory_space<vmem>>, vector<16x4xf32>,
    %73 = vector.extract_strided_slice %16 {offsets = [0, 3], sizes = [16, 1], strides = [1, 1]} : vector<16x60xf32> to vector<16x1xf32>
    %74 = vector.broadcast %73 : vector<16x1xf32> to vector<16x4xf32>
    %75 = arith.mulf %74, %18 : vector<16x4xf32>
    %76 = vector.extract_strided_slice %16 {offsets = [0, 18], sizes = [16, 1], strides = [1, 1]} : vector<16x60xf32> to vector<16x1xf32>
    %77 = vector.broadcast %76 : vector<16x1xf32> to vector<16x4xf32>
    %78 = arith.mulf %77, %20 : vector<16x4xf32>
    %79 = arith.addf %75, %78 : vector<16x4xf32>
    %80 = vector.extract_strided_slice %16 {offsets = [0, 33], sizes = [16, 1], strides = [1, 1]} : vector<16x60xf32> to vector<16x1xf32>
    %81 = vector.broadcast %80 : vector<16x1xf32> to vector<16x4xf32>
    %82 = arith.mulf %81, %22 : vector<16x4xf32>
    %83 = arith.addf %79, %82 : vector<16x4xf32>
    %84 = vector.extract_strided_slice %16 {offsets = [0, 48], sizes = [16, 1], strides = [1, 1]} : vector<16x60xf32> to vector<16x1xf32>
    %85 = vector.broadcast %84 : vector<16x1xf32> to vector<16x4xf32>
    %86 = arith.mulf %85, %24 : vector<16x4xf32>
    %87 = arith.addf %83, %86 : vector<16x4xf32>
    %c0_26 = arith.constant 0 : index
    %c12 = arith.constant 12 : index
    %88 = vector.load %arg8[%c0_26, %c12] : memref<16x60xf32, #tpu.memory_space<vmem>>, vector<16x4xf32>
    tpu.vector_store %arg8[%c0_26, %c12], %87 {strides = array<i32>} : memref<16x60xf32, #tpu.memory_space<vmem>>, vector<16x4xf32>,
    %89 = vector.extract_strided_slice %16 {offsets = [0, 4], sizes = [16, 1], strides = [1, 1]} : vector<16x60xf32> to vector<16x1xf32>
    %90 = vector.broadcast %89 : vector<16x1xf32> to vector<16x4xf32>
    %91 = arith.mulf %90, %18 : vector<16x4xf32>
    %92 = vector.extract_strided_slice %16 {offsets = [0, 19], sizes = [16, 1], strides = [1, 1]} : vector<16x60xf32> to vector<16x1xf32>
    %93 = vector.broadcast %92 : vector<16x1xf32> to vector<16x4xf32>
    %94 = arith.mulf %93, %20 : vector<16x4xf32>
    %95 = arith.addf %91, %94 : vector<16x4xf32>
    %96 = vector.extract_strided_slice %16 {offsets = [0, 34], sizes = [16, 1], strides = [1, 1]} : vector<16x60xf32> to vector<16x1xf32>
    %97 = vector.broadcast %96 : vector<16x1xf32> to vector<16x4xf32>
    %98 = arith.mulf %97, %22 : vector<16x4xf32>
    %99 = arith.addf %95, %98 : vector<16x4xf32>
    %100 = vector.extract_strided_slice %16 {offsets = [0, 49], sizes = [16, 1], strides = [1, 1]} : vector<16x60xf32> to vector<16x1xf32>
    %101 = vector.broadcast %100 : vector<16x1xf32> to vector<16x4xf32>
    %102 = arith.mulf %101, %24 : vector<16x4xf32>
    %103 = arith.addf %99, %102 : vector<16x4xf32>
    %c0_27 = arith.constant 0 : index
    %c16 = arith.constant 16 : index
    %104 = vector.load %arg8[%c0_27, %c16] : memref<16x60xf32, #tpu.memory_space<vmem>>, vector<16x4xf32>
    tpu.vector_store %arg8[%c0_27, %c16], %103 {strides = array<i32>} : memref<16x60xf32, #tpu.memory_space<vmem>>, vector<16x4xf32>,
    %105 = vector.extract_strided_slice %16 {offsets = [0, 5], sizes = [16, 1], strides = [1, 1]} : vector<16x60xf32> to vector<16x1xf32>
    %106 = vector.broadcast %105 : vector<16x1xf32> to vector<16x4xf32>
    %107 = arith.mulf %106, %18 : vector<16x4xf32>
    %108 = vector.extract_strided_slice %16 {offsets = [0, 20], sizes = [16, 1], strides = [1, 1]} : vector<16x60xf32> to vector<16x1xf32>
    %109 = vector.broadcast %108 : vector<16x1xf32> to vector<16x4xf32>
    %110 = arith.mulf %109, %20 : vector<16x4xf32>
    %111 = arith.addf %107, %110 : vector<16x4xf32>
    %112 = vector.extract_strided_slice %16 {offsets = [0, 35], sizes = [16, 1], strides = [1, 1]} : vector<16x60xf32> to vector<16x1xf32>
    %113 = vector.broadcast %112 : vector<16x1xf32> to vector<16x4xf32>
    %114 = arith.mulf %113, %22 : vector<16x4xf32>
    %115 = arith.addf %111, %114 : vector<16x4xf32>
    %116 = vector.extract_strided_slice %16 {offsets = [0, 50], sizes = [16, 1], strides = [1, 1]} : vector<16x60xf32> to vector<16x1xf32>
    %117 = vector.broadcast %116 : vector<16x1xf32> to vector<16x4xf32>
    %118 = arith.mulf %117, %24 : vector<16x4xf32>
    %119 = arith.addf %115, %118 : vector<16x4xf32>
    %c0_28 = arith.constant 0 : index
    %c20 = arith.constant 20 : index
    %120 = vector.load %arg8[%c0_28, %c20] : memref<16x60xf32, #tpu.memory_space<vmem>>, vector<16x4xf32>
    tpu.vector_store %arg8[%c0_28, %c20], %119 {strides = array<i32>} : memref<16x60xf32, #tpu.memory_space<vmem>>, vector<16x4xf32>,
    %121 = vector.extract_strided_slice %16 {offsets = [0, 6], sizes = [16, 1], strides = [1, 1]} : vector<16x60xf32> to vector<16x1xf32>
    %122 = vector.broadcast %121 : vector<16x1xf32> to vector<16x4xf32>
    %123 = arith.mulf %122, %18 : vector<16x4xf32>
    %124 = vector.extract_strided_slice %16 {offsets = [0, 21], sizes = [16, 1], strides = [1, 1]} : vector<16x60xf32> to vector<16x1xf32>
    %125 = vector.broadcast %124 : vector<16x1xf32> to vector<16x4xf32>
    %126 = arith.mulf %125, %20 : vector<16x4xf32>
    %127 = arith.addf %123, %126 : vector<16x4xf32>
    %128 = vector.extract_strided_slice %16 {offsets = [0, 36], sizes = [16, 1], strides = [1, 1]} : vector<16x60xf32> to vector<16x1xf32>
    %129 = vector.broadcast %128 : vector<16x1xf32> to vector<16x4xf32>
    %130 = arith.mulf %129, %22 : vector<16x4xf32>
    %131 = arith.addf %127, %130 : vector<16x4xf32>
    %132 = vector.extract_strided_slice %16 {offsets = [0, 51], sizes = [16, 1], strides = [1, 1]} : vector<16x60xf32> to vector<16x1xf32>
    %133 = vector.broadcast %132 : vector<16x1xf32> to vector<16x4xf32>
    %134 = arith.mulf %133, %24 : vector<16x4xf32>
    %135 = arith.addf %131, %134 : vector<16x4xf32>
    %c0_29 = arith.constant 0 : index
    %c24 = arith.constant 24 : index
    %136 = vector.load %arg8[%c0_29, %c24] : memref<16x60xf32, #tpu.memory_space<vmem>>, vector<16x4xf32>
    tpu.vector_store %arg8[%c0_29, %c24], %135 {strides = array<i32>} : memref<16x60xf32, #tpu.memory_space<vmem>>, vector<16x4xf32>,
    %137 = vector.extract_strided_slice %16 {offsets = [0, 7], sizes = [16, 1], strides = [1, 1]} : vector<16x60xf32> to vector<16x1xf32>
    %138 = vector.broadcast %137 : vector<16x1xf32> to vector<16x4xf32>
    %139 = arith.mulf %138, %18 : vector<16x4xf32>
    %140 = vector.extract_strided_slice %16 {offsets = [0, 22], sizes = [16, 1], strides = [1, 1]} : vector<16x60xf32> to vector<16x1xf32>
    %141 = vector.broadcast %140 : vector<16x1xf32> to vector<16x4xf32>
    %142 = arith.mulf %141, %20 : vector<16x4xf32>
    %143 = arith.addf %139, %142 : vector<16x4xf32>
    %144 = vector.extract_strided_slice %16 {offsets = [0, 37], sizes = [16, 1], strides = [1, 1]} : vector<16x60xf32> to vector<16x1xf32>
    %145 = vector.broadcast %144 : vector<16x1xf32> to vector<16x4xf32>
    %146 = arith.mulf %145, %22 : vector<16x4xf32>
    %147 = arith.addf %143, %146 : vector<16x4xf32>
    %148 = vector.extract_strided_slice %16 {offsets = [0, 52], sizes = [16, 1], strides = [1, 1]} : vector<16x60xf32> to vector<16x1xf32>
    %149 = vector.broadcast %148 : vector<16x1xf32> to vector<16x4xf32>
    %150 = arith.mulf %149, %24 : vector<16x4xf32>
    %151 = arith.addf %147, %150 : vector<16x4xf32>
    %c0_30 = arith.constant 0 : index
    %c28 = arith.constant 28 : index
    %152 = vector.load %arg8[%c0_30, %c28] : memref<16x60xf32, #tpu.memory_space<vmem>>, vector<16x4xf32>
    tpu.vector_store %arg8[%c0_30, %c28], %151 {strides = array<i32>} : memref<16x60xf32, #tpu.memory_space<vmem>>, vector<16x4xf32>,
    %153 = vector.extract_strided_slice %16 {offsets = [0, 8], sizes = [16, 1], strides = [1, 1]} : vector<16x60xf32> to vector<16x1xf32>
    %154 = vector.broadcast %153 : vector<16x1xf32> to vector<16x4xf32>
    %155 = arith.mulf %154, %18 : vector<16x4xf32>
    %156 = vector.extract_strided_slice %16 {offsets = [0, 23], sizes = [16, 1], strides = [1, 1]} : vector<16x60xf32> to vector<16x1xf32>
    %157 = vector.broadcast %156 : vector<16x1xf32> to vector<16x4xf32>
    %158 = arith.mulf %157, %20 : vector<16x4xf32>
    %159 = arith.addf %155, %158 : vector<16x4xf32>
    %160 = vector.extract_strided_slice %16 {offsets = [0, 38], sizes = [16, 1], strides = [1, 1]} : vector<16x60xf32> to vector<16x1xf32>
    %161 = vector.broadcast %160 : vector<16x1xf32> to vector<16x4xf32>
    %162 = arith.mulf %161, %22 : vector<16x4xf32>
    %163 = arith.addf %159, %162 : vector<16x4xf32>
    %164 = vector.extract_strided_slice %16 {offsets = [0, 53], sizes = [16, 1], strides = [1, 1]} : vector<16x60xf32> to vector<16x1xf32>
    %165 = vector.broadcast %164 : vector<16x1xf32> to vector<16x4xf32>
    %166 = arith.mulf %165, %24 : vector<16x4xf32>
    %167 = arith.addf %163, %166 : vector<16x4xf32>
    %c0_31 = arith.constant 0 : index
    %c32 = arith.constant 32 : index
    %168 = vector.load %arg8[%c0_31, %c32] : memref<16x60xf32, #tpu.memory_space<vmem>>, vector<16x4xf32>
    tpu.vector_store %arg8[%c0_31, %c32], %167 {strides = array<i32>} : memref<16x60xf32, #tpu.memory_space<vmem>>, vector<16x4xf32>,
    %169 = vector.extract_strided_slice %16 {offsets = [0, 9], sizes = [16, 1], strides = [1, 1]} : vector<16x60xf32> to vector<16x1xf32>
    %170 = vector.broadcast %169 : vector<16x1xf32> to vector<16x4xf32>
    %171 = arith.mulf %170, %18 : vector<16x4xf32>
    %172 = vector.extract_strided_slice %16 {offsets = [0, 24], sizes = [16, 1], strides = [1, 1]} : vector<16x60xf32> to vector<16x1xf32>
    %173 = vector.broadcast %172 : vector<16x1xf32> to vector<16x4xf32>
    %174 = arith.mulf %173, %20 : vector<16x4xf32>
    %175 = arith.addf %171, %174 : vector<16x4xf32>
    %176 = vector.extract_strided_slice %16 {offsets = [0, 39], sizes = [16, 1], strides = [1, 1]} : vector<16x60xf32> to vector<16x1xf32>
    %177 = vector.broadcast %176 : vector<16x1xf32> to vector<16x4xf32>
    %178 = arith.mulf %177, %22 : vector<16x4xf32>
    %179 = arith.addf %175, %178 : vector<16x4xf32>
    %180 = vector.extract_strided_slice %16 {offsets = [0, 54], sizes = [16, 1], strides = [1, 1]} : vector<16x60xf32> to vector<16x1xf32>
    %181 = vector.broadcast %180 : vector<16x1xf32> to vector<16x4xf32>
    %182 = arith.mulf %181, %24 : vector<16x4xf32>
    %183 = arith.addf %179, %182 : vector<16x4xf32>
    %c0_32 = arith.constant 0 : index
    %c36 = arith.constant 36 : index
    %184 = vector.load %arg8[%c0_32, %c36] : memref<16x60xf32, #tpu.memory_space<vmem>>, vector<16x4xf32>
    tpu.vector_store %arg8[%c0_32, %c36], %183 {strides = array<i32>} : memref<16x60xf32, #tpu.memory_space<vmem>>, vector<16x4xf32>,
    %185 = vector.extract_strided_slice %16 {offsets = [0, 10], sizes = [16, 1], strides = [1, 1]} : vector<16x60xf32> to vector<16x1xf32>
    %186 = vector.broadcast %185 : vector<16x1xf32> to vector<16x4xf32>
    %187 = arith.mulf %186, %18 : vector<16x4xf32>
    %188 = vector.extract_strided_slice %16 {offsets = [0, 25], sizes = [16, 1], strides = [1, 1]} : vector<16x60xf32> to vector<16x1xf32>
    %189 = vector.broadcast %188 : vector<16x1xf32> to vector<16x4xf32>
    %190 = arith.mulf %189, %20 : vector<16x4xf32>
    %191 = arith.addf %187, %190 : vector<16x4xf32>
    %192 = vector.extract_strided_slice %16 {offsets = [0, 40], sizes = [16, 1], strides = [1, 1]} : vector<16x60xf32> to vector<16x1xf32>
    %193 = vector.broadcast %192 : vector<16x1xf32> to vector<16x4xf32>
    %194 = arith.mulf %193, %22 : vector<16x4xf32>
    %195 = arith.addf %191, %194 : vector<16x4xf32>
    %196 = vector.extract_strided_slice %16 {offsets = [0, 55], sizes = [16, 1], strides = [1, 1]} : vector<16x60xf32> to vector<16x1xf32>
    %197 = vector.broadcast %196 : vector<16x1xf32> to vector<16x4xf32>
    %198 = arith.mulf %197, %24 : vector<16x4xf32>
    %199 = arith.addf %195, %198 : vector<16x4xf32>
    %c0_33 = arith.constant 0 : index
    %c40 = arith.constant 40 : index
    %200 = vector.load %arg8[%c0_33, %c40] : memref<16x60xf32, #tpu.memory_space<vmem>>, vector<16x4xf32>
    tpu.vector_store %arg8[%c0_33, %c40], %199 {strides = array<i32>} : memref<16x60xf32, #tpu.memory_space<vmem>>, vector<16x4xf32>,
    %201 = vector.extract_strided_slice %16 {offsets = [0, 11], sizes = [16, 1], strides = [1, 1]} : vector<16x60xf32> to vector<16x1xf32>
    %202 = vector.broadcast %201 : vector<16x1xf32> to vector<16x4xf32>
    %203 = arith.mulf %202, %18 : vector<16x4xf32>
    %204 = vector.extract_strided_slice %16 {offsets = [0, 26], sizes = [16, 1], strides = [1, 1]} : vector<16x60xf32> to vector<16x1xf32>
    %205 = vector.broadcast %204 : vector<16x1xf32> to vector<16x4xf32>
    %206 = arith.mulf %205, %20 : vector<16x4xf32>
    %207 = arith.addf %203, %206 : vector<16x4xf32>
    %208 = vector.extract_strided_slice %16 {offsets = [0, 41], sizes = [16, 1], strides = [1, 1]} : vector<16x60xf32> to vector<16x1xf32>
    %209 = vector.broadcast %208 : vector<16x1xf32> to vector<16x4xf32>
    %210 = arith.mulf %209, %22 : vector<16x4xf32>
    %211 = arith.addf %207, %210 : vector<16x4xf32>
    %212 = vector.extract_strided_slice %16 {offsets = [0, 56], sizes = [16, 1], strides = [1, 1]} : vector<16x60xf32> to vector<16x1xf32>
    %213 = vector.broadcast %212 : vector<16x1xf32> to vector<16x4xf32>
    %214 = arith.mulf %213, %24 : vector<16x4xf32>
    %215 = arith.addf %211, %214 : vector<16x4xf32>
    %c0_34 = arith.constant 0 : index
    %c44 = arith.constant 44 : index
    %216 = vector.load %arg8[%c0_34, %c44] : memref<16x60xf32, #tpu.memory_space<vmem>>, vector<16x4xf32>
    tpu.vector_store %arg8[%c0_34, %c44], %215 {strides = array<i32>} : memref<16x60xf32, #tpu.memory_space<vmem>>, vector<16x4xf32>,
    %217 = vector.extract_strided_slice %16 {offsets = [0, 12], sizes = [16, 1], strides = [1, 1]} : vector<16x60xf32> to vector<16x1xf32>
    %218 = vector.broadcast %217 : vector<16x1xf32> to vector<16x4xf32>
    %219 = arith.mulf %218, %18 : vector<16x4xf32>
    %220 = vector.extract_strided_slice %16 {offsets = [0, 27], sizes = [16, 1], strides = [1, 1]} : vector<16x60xf32> to vector<16x1xf32>
    %221 = vector.broadcast %220 : vector<16x1xf32> to vector<16x4xf32>
    %222 = arith.mulf %221, %20 : vector<16x4xf32>
    %223 = arith.addf %219, %222 : vector<16x4xf32>
    %224 = vector.extract_strided_slice %16 {offsets = [0, 42], sizes = [16, 1], strides = [1, 1]} : vector<16x60xf32> to vector<16x1xf32>
    %225 = vector.broadcast %224 : vector<16x1xf32> to vector<16x4xf32>
    %226 = arith.mulf %225, %22 : vector<16x4xf32>
    %227 = arith.addf %223, %226 : vector<16x4xf32>
    %228 = vector.extract_strided_slice %16 {offsets = [0, 57], sizes = [16, 1], strides = [1, 1]} : vector<16x60xf32> to vector<16x1xf32>
    %229 = vector.broadcast %228 : vector<16x1xf32> to vector<16x4xf32>
    %230 = arith.mulf %229, %24 : vector<16x4xf32>
    %231 = arith.addf %227, %230 : vector<16x4xf32>
    %c0_35 = arith.constant 0 : index
    %c48 = arith.constant 48 : index
    %232 = vector.load %arg8[%c0_35, %c48] : memref<16x60xf32, #tpu.memory_space<vmem>>, vector<16x4xf32>
    tpu.vector_store %arg8[%c0_35, %c48], %231 {strides = array<i32>} : memref<16x60xf32, #tpu.memory_space<vmem>>, vector<16x4xf32>,
    %233 = vector.extract_strided_slice %16 {offsets = [0, 13], sizes = [16, 1], strides = [1, 1]} : vector<16x60xf32> to vector<16x1xf32>
    %234 = vector.broadcast %233 : vector<16x1xf32> to vector<16x4xf32>
    %235 = arith.mulf %234, %18 : vector<16x4xf32>
    %236 = vector.extract_strided_slice %16 {offsets = [0, 28], sizes = [16, 1], strides = [1, 1]} : vector<16x60xf32> to vector<16x1xf32>
    %237 = vector.broadcast %236 : vector<16x1xf32> to vector<16x4xf32>
    %238 = arith.mulf %237, %20 : vector<16x4xf32>
    %239 = arith.addf %235, %238 : vector<16x4xf32>
    %240 = vector.extract_strided_slice %16 {offsets = [0, 43], sizes = [16, 1], strides = [1, 1]} : vector<16x60xf32> to vector<16x1xf32>
    %241 = vector.broadcast %240 : vector<16x1xf32> to vector<16x4xf32>
    %242 = arith.mulf %241, %22 : vector<16x4xf32>
    %243 = arith.addf %239, %242 : vector<16x4xf32>
    %244 = vector.extract_strided_slice %16 {offsets = [0, 58], sizes = [16, 1], strides = [1, 1]} : vector<16x60xf32> to vector<16x1xf32>
    %245 = vector.broadcast %244 : vector<16x1xf32> to vector<16x4xf32>
    %246 = arith.mulf %245, %24 : vector<16x4xf32>
    %247 = arith.addf %243, %246 : vector<16x4xf32>
    %c0_36 = arith.constant 0 : index
    %c52 = arith.constant 52 : index
    %248 = vector.load %arg8[%c0_36, %c52] : memref<16x60xf32, #tpu.memory_space<vmem>>, vector<16x4xf32>
    tpu.vector_store %arg8[%c0_36, %c52], %247 {strides = array<i32>} : memref<16x60xf32, #tpu.memory_space<vmem>>, vector<16x4xf32>,
    %249 = vector.extract_strided_slice %16 {offsets = [0, 14], sizes = [16, 1], strides = [1, 1]} : vector<16x60xf32> to vector<16x1xf32>
    %250 = vector.broadcast %249 : vector<16x1xf32> to vector<16x4xf32>
    %251 = arith.mulf %250, %18 : vector<16x4xf32>
    %252 = vector.extract_strided_slice %16 {offsets = [0, 29], sizes = [16, 1], strides = [1, 1]} : vector<16x60xf32> to vector<16x1xf32>
    %253 = vector.broadcast %252 : vector<16x1xf32> to vector<16x4xf32>
    %254 = arith.mulf %253, %20 : vector<16x4xf32>
    %255 = arith.addf %251, %254 : vector<16x4xf32>
    %256 = vector.extract_strided_slice %16 {offsets = [0, 44], sizes = [16, 1], strides = [1, 1]} : vector<16x60xf32> to vector<16x1xf32>
    %257 = vector.broadcast %256 : vector<16x1xf32> to vector<16x4xf32>
    %258 = arith.mulf %257, %22 : vector<16x4xf32>
    %259 = arith.addf %255, %258 : vector<16x4xf32>
    %260 = vector.extract_strided_slice %16 {offsets = [0, 59], sizes = [16, 1], strides = [1, 1]} : vector<16x60xf32> to vector<16x1xf32>
    %261 = vector.broadcast %260 : vector<16x1xf32> to vector<16x4xf32>
    %262 = arith.mulf %261, %24 : vector<16x4xf32>
    %263 = arith.addf %259, %262 : vector<16x4xf32>
    %c0_37 = arith.constant 0 : index
    %c56 = arith.constant 56 : index
    %264 = vector.load %arg8[%c0_37, %c56] : memref<16x60xf32, #tpu.memory_space<vmem>>, vector<16x4xf32>
    tpu.vector_store %arg8[%c0_37, %c56], %263 {strides = array<i32>} : memref<16x60xf32, #tpu.memory_space<vmem>>, vector<16x4xf32>,
    %c0_38 = arith.constant 0 : index
    %c60 = arith.constant 60 : index
    %265 = vector.load %arg7[%c0_38, %c60] : memref<16x120xf32, #tpu.memory_space<vmem>>, vector<16x60xf32>
    %c4_39 = arith.constant 4 : index
    %c0_40 = arith.constant 0 : index
    %c0_41 = arith.constant 0 : index
    %266 = vector.load %arg2[%c4_39, %c0_40, %c0_41] : memref<8x16x4xf32, #tpu.memory_space<vmem>>, vector<1x16x4xf32>
    %267 = vector.shape_cast %266 : vector<1x16x4xf32> to vector<16x4xf32>
    %c5 = arith.constant 5 : index
    %c0_42 = arith.constant 0 : index
    %c0_43 = arith.constant 0 : index
    %268 = vector.load %arg2[%c5, %c0_42, %c0_43] : memref<8x16x4xf32, #tpu.memory_space<vmem>>, vector<1x16x4xf32>
    %269 = vector.shape_cast %268 : vector<1x16x4xf32> to vector<16x4xf32>
    %c6 = arith.constant 6 : index
    %c0_44 = arith.constant 0 : index
    %c0_45 = arith.constant 0 : index
    %270 = vector.load %arg2[%c6, %c0_44, %c0_45] : memref<8x16x4xf32, #tpu.memory_space<vmem>>, vector<1x16x4xf32>
    %271 = vector.shape_cast %270 : vector<1x16x4xf32> to vector<16x4xf32>
    %c7 = arith.constant 7 : index
    %c0_46 = arith.constant 0 : index
    %c0_47 = arith.constant 0 : index
    %272 = vector.load %arg2[%c7, %c0_46, %c0_47] : memref<8x16x4xf32, #tpu.memory_space<vmem>>, vector<1x16x4xf32>
    %273 = vector.shape_cast %272 : vector<1x16x4xf32> to vector<16x4xf32>
    %274 = vector.extract_strided_slice %265 {offsets = [0, 0], sizes = [16, 1], strides = [1, 1]} : vector<16x60xf32> to vector<16x1xf32>
    %275 = vector.broadcast %274 : vector<16x1xf32> to vector<16x4xf32>
    %276 = arith.mulf %275, %267 : vector<16x4xf32>
    %277 = vector.extract_strided_slice %265 {offsets = [0, 15], sizes = [16, 1], strides = [1, 1]} : vector<16x60xf32> to vector<16x1xf32>
    %278 = vector.broadcast %277 : vector<16x1xf32> to vector<16x4xf32>
    %279 = arith.mulf %278, %269 : vector<16x4xf32>
    %280 = arith.addf %276, %279 : vector<16x4xf32>
    %281 = vector.extract_strided_slice %265 {offsets = [0, 30], sizes = [16, 1], strides = [1, 1]} : vector<16x60xf32> to vector<16x1xf32>
    %282 = vector.broadcast %281 : vector<16x1xf32> to vector<16x4xf32>
    %283 = arith.mulf %282, %271 : vector<16x4xf32>
    %284 = arith.addf %280, %283 : vector<16x4xf32>
    %285 = vector.extract_strided_slice %265 {offsets = [0, 45], sizes = [16, 1], strides = [1, 1]} : vector<16x60xf32> to vector<16x1xf32>
    %286 = vector.broadcast %285 : vector<16x1xf32> to vector<16x4xf32>
    %287 = arith.mulf %286, %273 : vector<16x4xf32>
    %288 = arith.addf %284, %287 : vector<16x4xf32>
    %c0_48 = arith.constant 0 : index
    %c0_49 = arith.constant 0 : index
    %289 = vector.load %arg8[%c0_48, %c0_49] : memref<16x60xf32, #tpu.memory_space<vmem>>, vector<16x4xf32>
    %290 = arith.addf %289, %288 : vector<16x4xf32>
    %c0_50 = arith.constant 0 : index
    %c0_51 = arith.constant 0 : index
    %291 = vector.load %arg8[%c0_50, %c0_51] : memref<16x60xf32, #tpu.memory_space<vmem>>, vector<16x4xf32>
    tpu.vector_store %arg8[%c0_50, %c0_51], %290 {strides = array<i32>} : memref<16x60xf32, #tpu.memory_space<vmem>>, vector<16x4xf32>,
    %292 = vector.extract_strided_slice %265 {offsets = [0, 1], sizes = [16, 1], strides = [1, 1]} : vector<16x60xf32> to vector<16x1xf32>
    %293 = vector.broadcast %292 : vector<16x1xf32> to vector<16x4xf32>
    %294 = arith.mulf %293, %267 : vector<16x4xf32>
    %295 = vector.extract_strided_slice %265 {offsets = [0, 16], sizes = [16, 1], strides = [1, 1]} : vector<16x60xf32> to vector<16x1xf32>
    %296 = vector.broadcast %295 : vector<16x1xf32> to vector<16x4xf32>
    %297 = arith.mulf %296, %269 : vector<16x4xf32>
    %298 = arith.addf %294, %297 : vector<16x4xf32>
    %299 = vector.extract_strided_slice %265 {offsets = [0, 31], sizes = [16, 1], strides = [1, 1]} : vector<16x60xf32> to vector<16x1xf32>
    %300 = vector.broadcast %299 : vector<16x1xf32> to vector<16x4xf32>
    %301 = arith.mulf %300, %271 : vector<16x4xf32>
    %302 = arith.addf %298, %301 : vector<16x4xf32>
    %303 = vector.extract_strided_slice %265 {offsets = [0, 46], sizes = [16, 1], strides = [1, 1]} : vector<16x60xf32> to vector<16x1xf32>
    %304 = vector.broadcast %303 : vector<16x1xf32> to vector<16x4xf32>
    %305 = arith.mulf %304, %273 : vector<16x4xf32>
    %306 = arith.addf %302, %305 : vector<16x4xf32>
    %c0_52 = arith.constant 0 : index
    %c4_53 = arith.constant 4 : index
    %307 = vector.load %arg8[%c0_52, %c4_53] : memref<16x60xf32, #tpu.memory_space<vmem>>, vector<16x4xf32>
    %308 = arith.addf %307, %306 : vector<16x4xf32>
    %c0_54 = arith.constant 0 : index
    %c4_55 = arith.constant 4 : index
    %309 = vector.load %arg8[%c0_54, %c4_55] : memref<16x60xf32, #tpu.memory_space<vmem>>, vector<16x4xf32>
    tpu.vector_store %arg8[%c0_54, %c4_55], %308 {strides = array<i32>} : memref<16x60xf32, #tpu.memory_space<vmem>>, vector<16x4xf32>,
    %310 = vector.extract_strided_slice %265 {offsets = [0, 2], sizes = [16, 1], strides = [1, 1]} : vector<16x60xf32> to vector<16x1xf32>
    %311 = vector.broadcast %310 : vector<16x1xf32> to vector<16x4xf32>
    %312 = arith.mulf %311, %267 : vector<16x4xf32>
    %313 = vector.extract_strided_slice %265 {offsets = [0, 17], sizes = [16, 1], strides = [1, 1]} : vector<16x60xf32> to vector<16x1xf32>
    %314 = vector.broadcast %313 : vector<16x1xf32> to vector<16x4xf32>
    %315 = arith.mulf %314, %269 : vector<16x4xf32>
    %316 = arith.addf %312, %315 : vector<16x4xf32>
    %317 = vector.extract_strided_slice %265 {offsets = [0, 32], sizes = [16, 1], strides = [1, 1]} : vector<16x60xf32> to vector<16x1xf32>
    %318 = vector.broadcast %317 : vector<16x1xf32> to vector<16x4xf32>
    %319 = arith.mulf %318, %271 : vector<16x4xf32>
    %320 = arith.addf %316, %319 : vector<16x4xf32>
    %321 = vector.extract_strided_slice %265 {offsets = [0, 47], sizes = [16, 1], strides = [1, 1]} : vector<16x60xf32> to vector<16x1xf32>
    %322 = vector.broadcast %321 : vector<16x1xf32> to vector<16x4xf32>
    %323 = arith.mulf %322, %273 : vector<16x4xf32>
    %324 = arith.addf %320, %323 : vector<16x4xf32>
    %c0_56 = arith.constant 0 : index
    %c8_57 = arith.constant 8 : index
    %325 = vector.load %arg8[%c0_56, %c8_57] : memref<16x60xf32, #tpu.memory_space<vmem>>, vector<16x4xf32>
    %326 = arith.addf %325, %324 : vector<16x4xf32>
    %c0_58 = arith.constant 0 : index
    %c8_59 = arith.constant 8 : index
    %327 = vector.load %arg8[%c0_58, %c8_59] : memref<16x60xf32, #tpu.memory_space<vmem>>, vector<16x4xf32>
    tpu.vector_store %arg8[%c0_58, %c8_59], %326 {strides = array<i32>} : memref<16x60xf32, #tpu.memory_space<vmem>>, vector<16x4xf32>,
    %328 = vector.extract_strided_slice %265 {offsets = [0, 3], sizes = [16, 1], strides = [1, 1]} : vector<16x60xf32> to vector<16x1xf32>
    %329 = vector.broadcast %328 : vector<16x1xf32> to vector<16x4xf32>
    %330 = arith.mulf %329, %267 : vector<16x4xf32>
    %331 = vector.extract_strided_slice %265 {offsets = [0, 18], sizes = [16, 1], strides = [1, 1]} : vector<16x60xf32> to vector<16x1xf32>
    %332 = vector.broadcast %331 : vector<16x1xf32> to vector<16x4xf32>
    %333 = arith.mulf %332, %269 : vector<16x4xf32>
    %334 = arith.addf %330, %333 : vector<16x4xf32>
    %335 = vector.extract_strided_slice %265 {offsets = [0, 33], sizes = [16, 1], strides = [1, 1]} : vector<16x60xf32> to vector<16x1xf32>
    %336 = vector.broadcast %335 : vector<16x1xf32> to vector<16x4xf32>
    %337 = arith.mulf %336, %271 : vector<16x4xf32>
    %338 = arith.addf %334, %337 : vector<16x4xf32>
    %339 = vector.extract_strided_slice %265 {offsets = [0, 48], sizes = [16, 1], strides = [1, 1]} : vector<16x60xf32> to vector<16x1xf32>
    %340 = vector.broadcast %339 : vector<16x1xf32> to vector<16x4xf32>
    %341 = arith.mulf %340, %273 : vector<16x4xf32>
    %342 = arith.addf %338, %341 : vector<16x4xf32>
    %c0_60 = arith.constant 0 : index
    %c12_61 = arith.constant 12 : index
    %343 = vector.load %arg8[%c0_60, %c12_61] : memref<16x60xf32, #tpu.memory_space<vmem>>, vector<16x4xf32>
    %344 = arith.addf %343, %342 : vector<16x4xf32>
    %c0_62 = arith.constant 0 : index
    %c12_63 = arith.constant 12 : index
    %345 = vector.load %arg8[%c0_62, %c12_63] : memref<16x60xf32, #tpu.memory_space<vmem>>, vector<16x4xf32>
    tpu.vector_store %arg8[%c0_62, %c12_63], %344 {strides = array<i32>} : memref<16x60xf32, #tpu.memory_space<vmem>>, vector<16x4xf32>,
    %346 = vector.extract_strided_slice %265 {offsets = [0, 4], sizes = [16, 1], strides = [1, 1]} : vector<16x60xf32> to vector<16x1xf32>
    %347 = vector.broadcast %346 : vector<16x1xf32> to vector<16x4xf32>
    %348 = arith.mulf %347, %267 : vector<16x4xf32>
    %349 = vector.extract_strided_slice %265 {offsets = [0, 19], sizes = [16, 1], strides = [1, 1]} : vector<16x60xf32> to vector<16x1xf32>
    %350 = vector.broadcast %349 : vector<16x1xf32> to vector<16x4xf32>
    %351 = arith.mulf %350, %269 : vector<16x4xf32>
    %352 = arith.addf %348, %351 : vector<16x4xf32>
    %353 = vector.extract_strided_slice %265 {offsets = [0, 34], sizes = [16, 1], strides = [1, 1]} : vector<16x60xf32> to vector<16x1xf32>
    %354 = vector.broadcast %353 : vector<16x1xf32> to vector<16x4xf32>
    %355 = arith.mulf %354, %271 : vector<16x4xf32>
    %356 = arith.addf %352, %355 : vector<16x4xf32>
    %357 = vector.extract_strided_slice %265 {offsets = [0, 49], sizes = [16, 1], strides = [1, 1]} : vector<16x60xf32> to vector<16x1xf32>
    %358 = vector.broadcast %357 : vector<16x1xf32> to vector<16x4xf32>
    %359 = arith.mulf %358, %273 : vector<16x4xf32>
    %360 = arith.addf %356, %359 : vector<16x4xf32>
    %c0_64 = arith.constant 0 : index
    %c16_65 = arith.constant 16 : index
    %361 = vector.load %arg8[%c0_64, %c16_65] : memref<16x60xf32, #tpu.memory_space<vmem>>, vector<16x4xf32>
    %362 = arith.addf %361, %360 : vector<16x4xf32>
    %c0_66 = arith.constant 0 : index
    %c16_67 = arith.constant 16 : index
    %363 = vector.load %arg8[%c0_66, %c16_67] : memref<16x60xf32, #tpu.memory_space<vmem>>, vector<16x4xf32>
    tpu.vector_store %arg8[%c0_66, %c16_67], %362 {strides = array<i32>} : memref<16x60xf32, #tpu.memory_space<vmem>>, vector<16x4xf32>,
    %364 = vector.extract_strided_slice %265 {offsets = [0, 5], sizes = [16, 1], strides = [1, 1]} : vector<16x60xf32> to vector<16x1xf32>
    %365 = vector.broadcast %364 : vector<16x1xf32> to vector<16x4xf32>
    %366 = arith.mulf %365, %267 : vector<16x4xf32>
    %367 = vector.extract_strided_slice %265 {offsets = [0, 20], sizes = [16, 1], strides = [1, 1]} : vector<16x60xf32> to vector<16x1xf32>
    %368 = vector.broadcast %367 : vector<16x1xf32> to vector<16x4xf32>
    %369 = arith.mulf %368, %269 : vector<16x4xf32>
    %370 = arith.addf %366, %369 : vector<16x4xf32>
    %371 = vector.extract_strided_slice %265 {offsets = [0, 35], sizes = [16, 1], strides = [1, 1]} : vector<16x60xf32> to vector<16x1xf32>
    %372 = vector.broadcast %371 : vector<16x1xf32> to vector<16x4xf32>
    %373 = arith.mulf %372, %271 : vector<16x4xf32>
    %374 = arith.addf %370, %373 : vector<16x4xf32>
    %375 = vector.extract_strided_slice %265 {offsets = [0, 50], sizes = [16, 1], strides = [1, 1]} : vector<16x60xf32> to vector<16x1xf32>
    %376 = vector.broadcast %375 : vector<16x1xf32> to vector<16x4xf32>
    %377 = arith.mulf %376, %273 : vector<16x4xf32>
    %378 = arith.addf %374, %377 : vector<16x4xf32>
    %c0_68 = arith.constant 0 : index
    %c20_69 = arith.constant 20 : index
    %379 = vector.load %arg8[%c0_68, %c20_69] : memref<16x60xf32, #tpu.memory_space<vmem>>, vector<16x4xf32>
    %380 = arith.addf %379, %378 : vector<16x4xf32>
    %c0_70 = arith.constant 0 : index
    %c20_71 = arith.constant 20 : index
    %381 = vector.load %arg8[%c0_70, %c20_71] : memref<16x60xf32, #tpu.memory_space<vmem>>, vector<16x4xf32>
    tpu.vector_store %arg8[%c0_70, %c20_71], %380 {strides = array<i32>} : memref<16x60xf32, #tpu.memory_space<vmem>>, vector<16x4xf32>,
    %382 = vector.extract_strided_slice %265 {offsets = [0, 6], sizes = [16, 1], strides = [1, 1]} : vector<16x60xf32> to vector<16x1xf32>
    %383 = vector.broadcast %382 : vector<16x1xf32> to vector<16x4xf32>
    %384 = arith.mulf %383, %267 : vector<16x4xf32>
    %385 = vector.extract_strided_slice %265 {offsets = [0, 21], sizes = [16, 1], strides = [1, 1]} : vector<16x60xf32> to vector<16x1xf32>
    %386 = vector.broadcast %385 : vector<16x1xf32> to vector<16x4xf32>
    %387 = arith.mulf %386, %269 : vector<16x4xf32>
    %388 = arith.addf %384, %387 : vector<16x4xf32>
    %389 = vector.extract_strided_slice %265 {offsets = [0, 36], sizes = [16, 1], strides = [1, 1]} : vector<16x60xf32> to vector<16x1xf32>
    %390 = vector.broadcast %389 : vector<16x1xf32> to vector<16x4xf32>
    %391 = arith.mulf %390, %271 : vector<16x4xf32>
    %392 = arith.addf %388, %391 : vector<16x4xf32>
    %393 = vector.extract_strided_slice %265 {offsets = [0, 51], sizes = [16, 1], strides = [1, 1]} : vector<16x60xf32> to vector<16x1xf32>
    %394 = vector.broadcast %393 : vector<16x1xf32> to vector<16x4xf32>
    %395 = arith.mulf %394, %273 : vector<16x4xf32>
    %396 = arith.addf %392, %395 : vector<16x4xf32>
    %c0_72 = arith.constant 0 : index
    %c24_73 = arith.constant 24 : index
    %397 = vector.load %arg8[%c0_72, %c24_73] : memref<16x60xf32, #tpu.memory_space<vmem>>, vector<16x4xf32>
    %398 = arith.addf %397, %396 : vector<16x4xf32>
    %c0_74 = arith.constant 0 : index
    %c24_75 = arith.constant 24 : index
    %399 = vector.load %arg8[%c0_74, %c24_75] : memref<16x60xf32, #tpu.memory_space<vmem>>, vector<16x4xf32>
    tpu.vector_store %arg8[%c0_74, %c24_75], %398 {strides = array<i32>} : memref<16x60xf32, #tpu.memory_space<vmem>>, vector<16x4xf32>,
    %400 = vector.extract_strided_slice %265 {offsets = [0, 7], sizes = [16, 1], strides = [1, 1]} : vector<16x60xf32> to vector<16x1xf32>
    %401 = vector.broadcast %400 : vector<16x1xf32> to vector<16x4xf32>
    %402 = arith.mulf %401, %267 : vector<16x4xf32>
    %403 = vector.extract_strided_slice %265 {offsets = [0, 22], sizes = [16, 1], strides = [1, 1]} : vector<16x60xf32> to vector<16x1xf32>
    %404 = vector.broadcast %403 : vector<16x1xf32> to vector<16x4xf32>
    %405 = arith.mulf %404, %269 : vector<16x4xf32>
    %406 = arith.addf %402, %405 : vector<16x4xf32>
    %407 = vector.extract_strided_slice %265 {offsets = [0, 37], sizes = [16, 1], strides = [1, 1]} : vector<16x60xf32> to vector<16x1xf32>
    %408 = vector.broadcast %407 : vector<16x1xf32> to vector<16x4xf32>
    %409 = arith.mulf %408, %271 : vector<16x4xf32>
    %410 = arith.addf %406, %409 : vector<16x4xf32>
    %411 = vector.extract_strided_slice %265 {offsets = [0, 52], sizes = [16, 1], strides = [1, 1]} : vector<16x60xf32> to vector<16x1xf32>
    %412 = vector.broadcast %411 : vector<16x1xf32> to vector<16x4xf32>
    %413 = arith.mulf %412, %273 : vector<16x4xf32>
    %414 = arith.addf %410, %413 : vector<16x4xf32>
    %c0_76 = arith.constant 0 : index
    %c28_77 = arith.constant 28 : index
    %415 = vector.load %arg8[%c0_76, %c28_77] : memref<16x60xf32, #tpu.memory_space<vmem>>, vector<16x4xf32>
    %416 = arith.addf %415, %414 : vector<16x4xf32>
    %c0_78 = arith.constant 0 : index
    %c28_79 = arith.constant 28 : index
    %417 = vector.load %arg8[%c0_78, %c28_79] : memref<16x60xf32, #tpu.memory_space<vmem>>, vector<16x4xf32>
    tpu.vector_store %arg8[%c0_78, %c28_79], %416 {strides = array<i32>} : memref<16x60xf32, #tpu.memory_space<vmem>>, vector<16x4xf32>,
    %418 = vector.extract_strided_slice %265 {offsets = [0, 8], sizes = [16, 1], strides = [1, 1]} : vector<16x60xf32> to vector<16x1xf32>
    %419 = vector.broadcast %418 : vector<16x1xf32> to vector<16x4xf32>
    %420 = arith.mulf %419, %267 : vector<16x4xf32>
    %421 = vector.extract_strided_slice %265 {offsets = [0, 23], sizes = [16, 1], strides = [1, 1]} : vector<16x60xf32> to vector<16x1xf32>
    %422 = vector.broadcast %421 : vector<16x1xf32> to vector<16x4xf32>
    %423 = arith.mulf %422, %269 : vector<16x4xf32>
    %424 = arith.addf %420, %423 : vector<16x4xf32>
    %425 = vector.extract_strided_slice %265 {offsets = [0, 38], sizes = [16, 1], strides = [1, 1]} : vector<16x60xf32> to vector<16x1xf32>
    %426 = vector.broadcast %425 : vector<16x1xf32> to vector<16x4xf32>
    %427 = arith.mulf %426, %271 : vector<16x4xf32>
    %428 = arith.addf %424, %427 : vector<16x4xf32>
    %429 = vector.extract_strided_slice %265 {offsets = [0, 53], sizes = [16, 1], strides = [1, 1]} : vector<16x60xf32> to vector<16x1xf32>
    %430 = vector.broadcast %429 : vector<16x1xf32> to vector<16x4xf32>
    %431 = arith.mulf %430, %273 : vector<16x4xf32>
    %432 = arith.addf %428, %431 : vector<16x4xf32>
    %c0_80 = arith.constant 0 : index
    %c32_81 = arith.constant 32 : index
    %433 = vector.load %arg8[%c0_80, %c32_81] : memref<16x60xf32, #tpu.memory_space<vmem>>, vector<16x4xf32>
    %434 = arith.addf %433, %432 : vector<16x4xf32>
    %c0_82 = arith.constant 0 : index
    %c32_83 = arith.constant 32 : index
    %435 = vector.load %arg8[%c0_82, %c32_83] : memref<16x60xf32, #tpu.memory_space<vmem>>, vector<16x4xf32>
    tpu.vector_store %arg8[%c0_82, %c32_83], %434 {strides = array<i32>} : memref<16x60xf32, #tpu.memory_space<vmem>>, vector<16x4xf32>,
    %436 = vector.extract_strided_slice %265 {offsets = [0, 9], sizes = [16, 1], strides = [1, 1]} : vector<16x60xf32> to vector<16x1xf32>
    %437 = vector.broadcast %436 : vector<16x1xf32> to vector<16x4xf32>
    %438 = arith.mulf %437, %267 : vector<16x4xf32>
    %439 = vector.extract_strided_slice %265 {offsets = [0, 24], sizes = [16, 1], strides = [1, 1]} : vector<16x60xf32> to vector<16x1xf32>
    %440 = vector.broadcast %439 : vector<16x1xf32> to vector<16x4xf32>
    %441 = arith.mulf %440, %269 : vector<16x4xf32>
    %442 = arith.addf %438, %441 : vector<16x4xf32>
    %443 = vector.extract_strided_slice %265 {offsets = [0, 39], sizes = [16, 1], strides = [1, 1]} : vector<16x60xf32> to vector<16x1xf32>
    %444 = vector.broadcast %443 : vector<16x1xf32> to vector<16x4xf32>
    %445 = arith.mulf %444, %271 : vector<16x4xf32>
    %446 = arith.addf %442, %445 : vector<16x4xf32>
    %447 = vector.extract_strided_slice %265 {offsets = [0, 54], sizes = [16, 1], strides = [1, 1]} : vector<16x60xf32> to vector<16x1xf32>
    %448 = vector.broadcast %447 : vector<16x1xf32> to vector<16x4xf32>
    %449 = arith.mulf %448, %273 : vector<16x4xf32>
    %450 = arith.addf %446, %449 : vector<16x4xf32>
    %c0_84 = arith.constant 0 : index
    %c36_85 = arith.constant 36 : index
    %451 = vector.load %arg8[%c0_84, %c36_85] : memref<16x60xf32, #tpu.memory_space<vmem>>, vector<16x4xf32>
    %452 = arith.addf %451, %450 : vector<16x4xf32>
    %c0_86 = arith.constant 0 : index
    %c36_87 = arith.constant 36 : index
    %453 = vector.load %arg8[%c0_86, %c36_87] : memref<16x60xf32, #tpu.memory_space<vmem>>, vector<16x4xf32>
    tpu.vector_store %arg8[%c0_86, %c36_87], %452 {strides = array<i32>} : memref<16x60xf32, #tpu.memory_space<vmem>>, vector<16x4xf32>,
    %454 = vector.extract_strided_slice %265 {offsets = [0, 10], sizes = [16, 1], strides = [1, 1]} : vector<16x60xf32> to vector<16x1xf32>
    %455 = vector.broadcast %454 : vector<16x1xf32> to vector<16x4xf32>
    %456 = arith.mulf %455, %267 : vector<16x4xf32>
    %457 = vector.extract_strided_slice %265 {offsets = [0, 25], sizes = [16, 1], strides = [1, 1]} : vector<16x60xf32> to vector<16x1xf32>
    %458 = vector.broadcast %457 : vector<16x1xf32> to vector<16x4xf32>
    %459 = arith.mulf %458, %269 : vector<16x4xf32>
    %460 = arith.addf %456, %459 : vector<16x4xf32>
    %461 = vector.extract_strided_slice %265 {offsets = [0, 40], sizes = [16, 1], strides = [1, 1]} : vector<16x60xf32> to vector<16x1xf32>
    %462 = vector.broadcast %461 : vector<16x1xf32> to vector<16x4xf32>
    %463 = arith.mulf %462, %271 : vector<16x4xf32>
    %464 = arith.addf %460, %463 : vector<16x4xf32>
    %465 = vector.extract_strided_slice %265 {offsets = [0, 55], sizes = [16, 1], strides = [1, 1]} : vector<16x60xf32> to vector<16x1xf32>
    %466 = vector.broadcast %465 : vector<16x1xf32> to vector<16x4xf32>
    %467 = arith.mulf %466, %273 : vector<16x4xf32>
    %468 = arith.addf %464, %467 : vector<16x4xf32>
    %c0_88 = arith.constant 0 : index
    %c40_89 = arith.constant 40 : index
    %469 = vector.load %arg8[%c0_88, %c40_89] : memref<16x60xf32, #tpu.memory_space<vmem>>, vector<16x4xf32>
    %470 = arith.addf %469, %468 : vector<16x4xf32>
    %c0_90 = arith.constant 0 : index
    %c40_91 = arith.constant 40 : index
    %471 = vector.load %arg8[%c0_90, %c40_91] : memref<16x60xf32, #tpu.memory_space<vmem>>, vector<16x4xf32>
    tpu.vector_store %arg8[%c0_90, %c40_91], %470 {strides = array<i32>} : memref<16x60xf32, #tpu.memory_space<vmem>>, vector<16x4xf32>,
    %472 = vector.extract_strided_slice %265 {offsets = [0, 11], sizes = [16, 1], strides = [1, 1]} : vector<16x60xf32> to vector<16x1xf32>
    %473 = vector.broadcast %472 : vector<16x1xf32> to vector<16x4xf32>
    %474 = arith.mulf %473, %267 : vector<16x4xf32>
    %475 = vector.extract_strided_slice %265 {offsets = [0, 26], sizes = [16, 1], strides = [1, 1]} : vector<16x60xf32> to vector<16x1xf32>
    %476 = vector.broadcast %475 : vector<16x1xf32> to vector<16x4xf32>
    %477 = arith.mulf %476, %269 : vector<16x4xf32>
    %478 = arith.addf %474, %477 : vector<16x4xf32>
    %479 = vector.extract_strided_slice %265 {offsets = [0, 41], sizes = [16, 1], strides = [1, 1]} : vector<16x60xf32> to vector<16x1xf32>
    %480 = vector.broadcast %479 : vector<16x1xf32> to vector<16x4xf32>
    %481 = arith.mulf %480, %271 : vector<16x4xf32>
    %482 = arith.addf %478, %481 : vector<16x4xf32>
    %483 = vector.extract_strided_slice %265 {offsets = [0, 56], sizes = [16, 1], strides = [1, 1]} : vector<16x60xf32> to vector<16x1xf32>
    %484 = vector.broadcast %483 : vector<16x1xf32> to vector<16x4xf32>
    %485 = arith.mulf %484, %273 : vector<16x4xf32>
    %486 = arith.addf %482, %485 : vector<16x4xf32>
    %c0_92 = arith.constant 0 : index
    %c44_93 = arith.constant 44 : index
    %487 = vector.load %arg8[%c0_92, %c44_93] : memref<16x60xf32, #tpu.memory_space<vmem>>, vector<16x4xf32>
    %488 = arith.addf %487, %486 : vector<16x4xf32>
    %c0_94 = arith.constant 0 : index
    %c44_95 = arith.constant 44 : index
    %489 = vector.load %arg8[%c0_94, %c44_95] : memref<16x60xf32, #tpu.memory_space<vmem>>, vector<16x4xf32>
    tpu.vector_store %arg8[%c0_94, %c44_95], %488 {strides = array<i32>} : memref<16x60xf32, #tpu.memory_space<vmem>>, vector<16x4xf32>,
    %490 = vector.extract_strided_slice %265 {offsets = [0, 12], sizes = [16, 1], strides = [1, 1]} : vector<16x60xf32> to vector<16x1xf32>
    %491 = vector.broadcast %490 : vector<16x1xf32> to vector<16x4xf32>
    %492 = arith.mulf %491, %267 : vector<16x4xf32>
    %493 = vector.extract_strided_slice %265 {offsets = [0, 27], sizes = [16, 1], strides = [1, 1]} : vector<16x60xf32> to vector<16x1xf32>
    %494 = vector.broadcast %493 : vector<16x1xf32> to vector<16x4xf32>
    %495 = arith.mulf %494, %269 : vector<16x4xf32>
    %496 = arith.addf %492, %495 : vector<16x4xf32>
    %497 = vector.extract_strided_slice %265 {offsets = [0, 42], sizes = [16, 1], strides = [1, 1]} : vector<16x60xf32> to vector<16x1xf32>
    %498 = vector.broadcast %497 : vector<16x1xf32> to vector<16x4xf32>
    %499 = arith.mulf %498, %271 : vector<16x4xf32>
    %500 = arith.addf %496, %499 : vector<16x4xf32>
    %501 = vector.extract_strided_slice %265 {offsets = [0, 57], sizes = [16, 1], strides = [1, 1]} : vector<16x60xf32> to vector<16x1xf32>
    %502 = vector.broadcast %501 : vector<16x1xf32> to vector<16x4xf32>
    %503 = arith.mulf %502, %273 : vector<16x4xf32>
    %504 = arith.addf %500, %503 : vector<16x4xf32>
    %c0_96 = arith.constant 0 : index
    %c48_97 = arith.constant 48 : index
    %505 = vector.load %arg8[%c0_96, %c48_97] : memref<16x60xf32, #tpu.memory_space<vmem>>, vector<16x4xf32>
    %506 = arith.addf %505, %504 : vector<16x4xf32>
    %c0_98 = arith.constant 0 : index
    %c48_99 = arith.constant 48 : index
    %507 = vector.load %arg8[%c0_98, %c48_99] : memref<16x60xf32, #tpu.memory_space<vmem>>, vector<16x4xf32>
    tpu.vector_store %arg8[%c0_98, %c48_99], %506 {strides = array<i32>} : memref<16x60xf32, #tpu.memory_space<vmem>>, vector<16x4xf32>,
    %508 = vector.extract_strided_slice %265 {offsets = [0, 13], sizes = [16, 1], strides = [1, 1]} : vector<16x60xf32> to vector<16x1xf32>
    %509 = vector.broadcast %508 : vector<16x1xf32> to vector<16x4xf32>
    %510 = arith.mulf %509, %267 : vector<16x4xf32>
    %511 = vector.extract_strided_slice %265 {offsets = [0, 28], sizes = [16, 1], strides = [1, 1]} : vector<16x60xf32> to vector<16x1xf32>
    %512 = vector.broadcast %511 : vector<16x1xf32> to vector<16x4xf32>
    %513 = arith.mulf %512, %269 : vector<16x4xf32>
    %514 = arith.addf %510, %513 : vector<16x4xf32>
    %515 = vector.extract_strided_slice %265 {offsets = [0, 43], sizes = [16, 1], strides = [1, 1]} : vector<16x60xf32> to vector<16x1xf32>
    %516 = vector.broadcast %515 : vector<16x1xf32> to vector<16x4xf32>
    %517 = arith.mulf %516, %271 : vector<16x4xf32>
    %518 = arith.addf %514, %517 : vector<16x4xf32>
    %519 = vector.extract_strided_slice %265 {offsets = [0, 58], sizes = [16, 1], strides = [1, 1]} : vector<16x60xf32> to vector<16x1xf32>
    %520 = vector.broadcast %519 : vector<16x1xf32> to vector<16x4xf32>
    %521 = arith.mulf %520, %273 : vector<16x4xf32>
    %522 = arith.addf %518, %521 : vector<16x4xf32>
    %c0_100 = arith.constant 0 : index
    %c52_101 = arith.constant 52 : index
    %523 = vector.load %arg8[%c0_100, %c52_101] : memref<16x60xf32, #tpu.memory_space<vmem>>, vector<16x4xf32>
    %524 = arith.addf %523, %522 : vector<16x4xf32>
    %c0_102 = arith.constant 0 : index
    %c52_103 = arith.constant 52 : index
    %525 = vector.load %arg8[%c0_102, %c52_103] : memref<16x60xf32, #tpu.memory_space<vmem>>, vector<16x4xf32>
    tpu.vector_store %arg8[%c0_102, %c52_103], %524 {strides = array<i32>} : memref<16x60xf32, #tpu.memory_space<vmem>>, vector<16x4xf32>,
    %526 = vector.extract_strided_slice %265 {offsets = [0, 14], sizes = [16, 1], strides = [1, 1]} : vector<16x60xf32> to vector<16x1xf32>
    %527 = vector.broadcast %526 : vector<16x1xf32> to vector<16x4xf32>
    %528 = arith.mulf %527, %267 : vector<16x4xf32>
    %529 = vector.extract_strided_slice %265 {offsets = [0, 29], sizes = [16, 1], strides = [1, 1]} : vector<16x60xf32> to vector<16x1xf32>
    %530 = vector.broadcast %529 : vector<16x1xf32> to vector<16x4xf32>
    %531 = arith.mulf %530, %269 : vector<16x4xf32>
    %532 = arith.addf %528, %531 : vector<16x4xf32>
    %533 = vector.extract_strided_slice %265 {offsets = [0, 44], sizes = [16, 1], strides = [1, 1]} : vector<16x60xf32> to vector<16x1xf32>
    %534 = vector.broadcast %533 : vector<16x1xf32> to vector<16x4xf32>
    %535 = arith.mulf %534, %271 : vector<16x4xf32>
    %536 = arith.addf %532, %535 : vector<16x4xf32>
    %537 = vector.extract_strided_slice %265 {offsets = [0, 59], sizes = [16, 1], strides = [1, 1]} : vector<16x60xf32> to vector<16x1xf32>
    %538 = vector.broadcast %537 : vector<16x1xf32> to vector<16x4xf32>
    %539 = arith.mulf %538, %273 : vector<16x4xf32>
    %540 = arith.addf %536, %539 : vector<16x4xf32>
    %c0_104 = arith.constant 0 : index
    %c56_105 = arith.constant 56 : index
    %541 = vector.load %arg8[%c0_104, %c56_105] : memref<16x60xf32, #tpu.memory_space<vmem>>, vector<16x4xf32>
    %542 = arith.addf %541, %540 : vector<16x4xf32>
    %c0_106 = arith.constant 0 : index
    %c56_107 = arith.constant 56 : index
    %543 = vector.load %arg8[%c0_106, %c56_107] : memref<16x60xf32, #tpu.memory_space<vmem>>, vector<16x4xf32>
    tpu.vector_store %arg8[%c0_106, %c56_107], %542 {strides = array<i32>} : memref<16x60xf32, #tpu.memory_space<vmem>>, vector<16x4xf32>,
    %c0_108 = arith.constant 0 : index
    %c0_109 = arith.constant 0 : index
    %544 = vector.load %arg8[%c0_108, %c0_109] : memref<16x60xf32, #tpu.memory_space<vmem>>, vector<16x60xf32>
    %c0_110 = arith.constant 0 : index
    %c0_111 = arith.constant 0 : index
    %545 = vector.load %arg5[%c0_110, %c0_111] : memref<60x128xf32, #tpu.memory_space<vmem>>, vector<60x128xf32>
    %cst_112 = arith.constant dense<0.000000e+00> : vector<16x128xf32>
    %546 = tpu.matmul %544, %545, %cst_112 {dimension_numbers = #tpu.dot_dimension_numbers<[1], [0], [0], [1], [0, 0, 1, 1], [], []>} : vector<16x60xf32>, vector<60x128xf32>, vector<16x128xf32> -> vector<16x128xf32>
    %c0_113 = arith.constant 0 : index
    %c0_114 = arith.constant 0 : index
    %547 = vector.load %arg6[%c0_113, %c0_114] : memref<16x128xf32, #tpu.memory_space<vmem>>, vector<16x128xf32>
    tpu.vector_store %arg6[%c0_113, %c0_114], %546 {strides = array<i32>} : memref<16x128xf32, #tpu.memory_space<vmem>>, vector<16x128xf32>,
    return
  }
  func.func @transform_0(%arg0: i32) -> (i32, i32) {
    %c0_i32 = arith.constant 0 : i32
    %c0_i32_0 = arith.constant 0 : i32
    return %arg0, %c0_i32 : i32, i32
  }
  func.func @transform_1(%arg0: i32) -> (i32, i32, i32) {
    %c0_i32 = arith.constant 0 : i32
    %c0_i32_0 = arith.constant 0 : i32
    %c0_i32_1 = arith.constant 0 : i32
    return %c0_i32, %arg0, %c0_i32_0 : i32, i32, i32
  }
  func.func @transform_2(%arg0: i32) -> (i32, i32) {
    %c0_i32 = arith.constant 0 : i32
    %c0_i32_0 = arith.constant 0 : i32
    %c0_i32_1 = arith.constant 0 : i32
    return %c0_i32, %c0_i32_0 : i32, i32
  }
  func.func @transform_3(%arg0: i32) -> (i32, i32) {
    %c0_i32 = arith.constant 0 : i32
    %c0_i32_0 = arith.constant 0 : i32
    %c0_i32_1 = arith.constant 0 : i32
    return %c0_i32, %c0_i32_0 : i32, i32
  }
  func.func @transform_4(%arg0: i32) -> (i32, i32) {
    %c0_i32 = arith.constant 0 : i32
    %c0_i32_0 = arith.constant 0 : i32
    %c0_i32_1 = arith.constant 0 : i32
    return %c0_i32, %c0_i32_0 : i32, i32
  }
  func.func @transform_5(%arg0: i32) -> (i32, i32) {
    %c0_i32 = arith.constant 0 : i32
    %c0_i32_0 = arith.constant 0 : i32
    return %arg0, %c0_i32 : i32, i32
  }
}

</mosaic_0001>

<bundles_post_ra>
// kernel: tpu_custom_call.1
= control target key start
LH: loop header
LB: loop body
LE: loop exit
PB: predicated region body
PF: predicated region fallthrough
CT: control target
= control target key end

     0   :  { %vm36_vm0 = vcmask 392192   ;;  %s3927_s0 = inlined_call_operand.vmem [shape: f32[16,48], index: 0, kind: input, shape index: {}]   ;;  %s3928_s1 = inlined_call_operand.vmem [shape: f32[8,16,4], index: 1, kind: input, shape index: {}]   ;;  %s3929_s2 = inlined_call_operand.vmem [shape: f32[48,120], index: 2, kind: input, shape index: {}]   ;;  %s3930_s3 = inlined_call_operand.vmem [shape: f32[1,120], index: 3, kind: input, shape index: {}]   ;;  %s3931_s4 = inlined_call_operand.vmem [shape: f32[60,128], index: 4, kind: input, shape index: {}]   ;;  %s3932_s5 = inlined_call_operand.hbm [shape: f32[16,128], index: 5, kind: output, shape index: {}]  }
   0x1   :  { %v28_v0 = vld [vmem:[%s3929_s2 + $0x28] sm:$0xff]  ;;  %v27_v1 = vld [vmem:[%s3929_s2 + $0x20] sm:$0xff]  ;;  %v26_v2 = vld [vmem:[%s3929_s2 + $0x18] sm:$0xff] }
   0x2   :  { %2065 = vmatprep.subr.mxu0 %v28_v0  ;;  %v21_v3 = vld [vmem:[%s3927_s0] sm:$0xff] }
   0x3   :  { %2066 = vmatpush3.msra.mxu0 %v28_v0 }
   0x4   :  { %10 = vsyncpa [#allocation5], 0  ;;  %2067 = vmatprep.subr.mxu0 %v27_v1  ;;  %2077 = vmatprep.mubr.msk.f32.mxu0 %vm36_vm0, %v21_v3  ;;  %v25_v4 = vld [vmem:[%s3929_s2 + $0x10] sm:$0xff]  ;;  %v24_v5 = vld [vmem:[%s3929_s2 + $0x8] sm:$0xff]  ;;  %v2484_v8 = vmov 15   ;;  %v2485_v9 = vmov 0  }
   0x5   :  { %2068 = vmatpush3.msra.mxu0 %v27_v1  ;;  %v23_v6 = vld [vmem:[%s3929_s2] sm:$0xff]  ;;  %v22_v7 = vld [vmem:[%s3927_s0 + $0x8] sm:$0xff]  ;;  %2236 = vset.pattern.permute.xlu1 %v2484_v8  ;;  %vm140_vm5 = vcmask 982016   ;;  %v2486_v34 = vmov 30   ;;  %v2487_v35 = vmov 45   ;;  %v2488_v36 = vmov 1  }
   0x6   :  { %2069 = vmatprep.subr.mxu0 %v26_v2  ;;  %2235 = vset.pattern.permute.xlu0 %v2485_v9  ;;  %v2027_v10 = vld [vmem:[%s3930_s3] ss:$0 sm:$0xff]  ;;  %v2489_v37 = vmov 31   ;;  %v2490_v38 = vmov 16   ;;  %v2491_v39 = vmov 17   ;;  %v2492_v40 = vmov 46  }
   0x7   :  { %2070 = vmatpush3.msra.mxu0 %v26_v2  ;;  %v2493_v41 = vmov 3   ;;  %v2494_v42 = vmov 2   ;;  %v2495_v43 = vmov 48   ;;  %v2496_v44 = vmov 32   ;;  %s2540_s16 = smov 8   ;;  %s2541_s17 = smov 16  }
   0x8   :  { %2071 = vmatprep.subr.mxu0 %v25_v4  ;;  %v2497_v45 = vmov 19   ;;  %v2498_v46 = vmov 47   ;;  %v2499_v47 = vmov 5   ;;  %v2500_v48 = vmov 18   ;;  %s2542_s18 = smov 24   ;;  %s2543_s19 = smov 32  }
   0x9   :  { %2072 = vmatpush3.msra.mxu0 %v25_v4  ;;  %v2501_v49 = vmov 50   ;;  %v2502_v50 = vmov 33   ;;  %v2503_v51 = vmov 21   ;;  %v2504_v52 = vmov 4   ;;  %s2548_s28 = smov 4   ;;  %s2550_s29 = smov 12  }
   0xa   :  { %2073 = vmatprep.subr.mxu0 %v24_v5  ;;  %v2505_v53 = vmov 7   ;;  %v2506_v54 = vmov 34   ;;  %v2507_v55 = vmov 52   ;;  %v2508_v56 = vmov 49   ;;  %s2551_s30 = smov 20   ;;  %s2552_s6 = smov 28  }
   0xb   :  { %2074 = vmatpush3.msra.mxu0 %v24_v5  ;;  %v2509_v57 = vmov 23   ;;  %v2510_v58 = vmov 20   ;;  %v2511_v59 = vmov 9   ;;  %v2512_v60 = vmov 35   ;;  %s2553_s7 = smov 36   ;;  %s2554_s8 = smov 40  }
   0xc   :  { %2075 = vmatprep.subr.mxu0 %v23_v6  ;;  %v2513_v61 = vmov 54   ;;  %v2514_v62 = vmov 6   ;;  %v2515_v63 = vmov 25   ;;  %v2516_v1 = vmov 36   ;;  %s2555_s9 = smov 44   ;;  %s2556_s10 = smov 48  }
   0xd   :  { %2076 = vmatpush3.msra.mxu0 %v23_v6  ;;  %v2517_v2 = vmov 51   ;;  %v2518_v3 = vmov 22   ;;  %v2519_v4 = vmov 37   ;;  %v2520_v5 = vmov 8   ;;  %s2557_s0 = smov 52   ;;  %s2558_s2 = smov 56  }
   0xe   :  { %2078 = vmatmul.mubr.msk.f32.vlgmr.msra.gmra.mxu0 %vm36_vm0, %v22_v7  ;;  %v2521_v6 = vmov 38   ;;  %v2522_v7 = vmov 53   ;;  %vm204_vm6 = vcmask 31744   ;;  %vm261_vm7 = vcmask 64544  }
   0xf   :  { %vm318_vm8 = vcmask 97344   ;;  %vm375_vm9 = vcmask 130144   ;;  %vm432_vm10 = vcmask 162944   ;;  %vm489_vm11 = vcmask 195744  }
  0x10   :  { %vm546_vm12 = vcmask 228544   ;;  %vm603_vm13 = vcmask 261344   ;;  %vm660_vm14 = vcmask 294144   ;;  %vm717_vm15 = vcmask 326944  }
  0x11   :  { %vm774_vm0 = vcmask 359744  }
  0xce   :  { %v2079_v11 = vpop.f32.mrf.mxu0 }
  0xcf   :  { %v115_v12 = vadd.f32 %v2079_v11, %v2027_v10  ;;  %v2776_v11 = vld [vmem:[%s3928_s1 + $0x18] sm:$0xff] }
  0xd0   :  { %v109_v13 = vpop.f32.mrf.mxu0 }
  0xd1   :  { %v119_v14 = vmax.f32 %v115_v12, 0.0  ;;  %v110_v15 = vadd.f32 %v2027_v10, %v109_v13  ;;  %v2524_v10 = vmov 39   ;;  %v2781_v12 = vld [vmem:[%s3928_s1 + $0x8] sm:$0xff] }
  0xd3   :  { %2446 = vrsqrt.f32 %v119_v14  ;;  %v118_v16 = vmax.f32 %v110_v15, 0.0  ;;  %vm129_vm1 = vcmp.eq.f32.partialorder %v119_v14, inf  ;;  %v132_v19 = vand.u32 2147483648, %v119_v14 }
  0xd4   :  { %vm131_vm2 = vcmp.eq.f32.partialorder %v119_v14, 0.0  ;;  %v2525_v15 = vmov 10  }
  0xd5   :  { %2448 = vrsqrt.f32 %v118_v16  ;;  %vm122_vm3 = vcmp.eq.f32.partialorder %v118_v16, inf  ;;  %v125_v25 = vand.u32 2147483648, %v118_v16  ;;  %vm124_vm4 = vcmp.eq.f32.partialorder %v118_v16, 0.0 }
  0xe0   :  { %v2447_v17 = vpop.eup %2446 }
  0xe1   :  { %v128_v18 = vmul.f32 %v2447_v17, %v119_v14 }
  0xe2   :  { %v2449_v20 = vpop.eup %2448 }
  0xe3   :  { %v130_v21 = vsel %vm129_vm1, %v119_v14, %v128_v18  ;;  %v121_v23 = vmul.f32 %v2449_v20, %v118_v16  ;;  %v2790_v18 = vld [vmem:[%s3928_s1 + $0x28] sm:$0xff]  ;;  %v2795_v20 = vld [vmem:[%s3928_s1 + $0x38] sm:$0xff]  ;;  %vm831_vm1 = vcmask 392544  }
  0xe4   :  { %v133_v22 = vsel %vm131_vm2, %v132_v19, %v130_v21  ;;  %vm888_vm2 = vcmask 425344  }
  0xe5   :  { %v135_v24 = vmul.f32 5.0, %v133_v22  ;;  %v123_v26 = vsel %vm122_vm3, %v118_v16, %v121_v23  ;;  %vm945_vm3 = vcmask 458144  }
  0xe6   :  { %v126_v28 = vsel %vm124_vm4, %v125_v25, %v123_v26  ;;  %vm1002_vm4 = vcmask 490944  }
  0xe7   :  { %v137_v27 = vsub.f32 1.0, %v135_v24  ;;  %v134_v29 = vmul.f32 5.0, %v126_v28  ;;  %v2526_v24 = vmov 40  }
  0xe9   :  { %v139_v30 = vmax.f32 %v137_v27, 0.0  ;;  %v136_v31 = vsub.f32 1.0, %v134_v29 }
  0xeb   :  { %142 = vst.msk [vmem:[#allocation2 + $0x8] sm:$0xff] %vm140_vm5, %v139_v30  ;;  %v138_v32 = vmax.f32 %v136_v31, 0.0 }
  0xed   :  { %141 = vst.msk [vmem:[#allocation2] sm:$0xff] %vm140_vm5, %v138_v32  ;;  %vm1930_vm5 = vcmask 1043456  }
  0xf2   :  { %v2681_v33 = vld [vmem:[#allocation2 + $0x8] sm:$0xff] }
  0xf3   :  { %173 = vperm.xlu1 %2236, %v2681_v33   ;;  %163 = vperm.xlu0 %2235, %v2681_v33  }
  0xf4   :  { %v2742_v0 = vld [vmem:[#allocation2] sm:$0xff] }
  0xf7   :  { %2237 = vset.pattern.permute.xlu1 %v2486_v34  ;;  %2238 = vset.pattern.permute.xlu0 %v2487_v35 }
  0xf8   :  { %185 = vperm.xlu1 %2237, %v2681_v33   ;;  %197 = vperm.xlu0 %2238, %v2681_v33  }
  0xfc   :  { %2239 = vset.pattern.permute.xlu1 %v2488_v36  ;;  %2241 = vset.pattern.permute.xlu0 %v2489_v37 }
  0xfd   :  { %212 = vperm.xlu1 %2239, %v2681_v33   ;;  %234 = vperm.xlu0 %2241, %v2681_v33  }
 0x101   :  { %2240 = vset.pattern.permute.xlu1 %v2490_v38  ;;  %2244 = vset.pattern.permute.xlu0 %v2491_v39 }
 0x102   :  { %222 = vperm.xlu1 %2240, %v2681_v33   ;;  %279 = vperm.xlu0 %2244, %v2681_v33  }
 0x106   :  { %2242 = vset.pattern.permute.xlu1 %v2492_v40  ;;  %2247 = vset.pattern.permute.xlu0 %v2493_v41 }
 0x107   :  { %246 = vperm.xlu1 %2242, %v2681_v33   ;;  %326 = vperm.xlu0 %2247, %v2681_v33  }
 0x10b   :  { %2243 = vset.pattern.permute.xlu1 %v2494_v42  ;;  %2250 = vset.pattern.permute.xlu0 %v2495_v43 }
 0x10c   :  { %269 = vperm.xlu1 %2243, %v2681_v33   ;;  %360 = vperm.xlu0 %2250, %v2681_v33  }
 0x110   :  { %2245 = vset.pattern.permute.xlu1 %v2496_v44  ;;  %2252 = vset.pattern.permute.xlu0 %v2497_v45 }
 0x111   :  { %291 = vperm.xlu1 %2245, %v2681_v33   ;;  %393 = vperm.xlu0 %2252, %v2681_v33  }
 0x115   :  { %2246 = vset.pattern.permute.xlu1 %v2498_v46  ;;  %2255 = vset.pattern.permute.xlu0 %v2499_v47 }
 0x116   :  { %303 = vperm.xlu1 %2246, %v2681_v33   ;;  %440 = vperm.xlu0 %2255, %v2681_v33  }
 0x11a   :  { %2248 = vset.pattern.permute.xlu1 %v2500_v48  ;;  %2258 = vset.pattern.permute.xlu0 %v2501_v49 }
 0x11b   :  { %336 = vperm.xlu1 %2248, %v2681_v33   ;;  %474 = vperm.xlu0 %2258, %v2681_v33  }
 0x11f   :  { %2249 = vset.pattern.permute.xlu1 %v2502_v50  ;;  %2260 = vset.pattern.permute.xlu0 %v2503_v51 }
 0x120   :  { %348 = vperm.xlu1 %2249, %v2681_v33   ;;  %507 = vperm.xlu0 %2260, %v2681_v33  }
 0x124   :  { %2251 = vset.pattern.permute.xlu1 %v2504_v52  ;;  %2263 = vset.pattern.permute.xlu0 %v2505_v53 }
 0x125   :  { %383 = vperm.xlu1 %2251, %v2681_v33   ;;  %554 = vperm.xlu0 %2263, %v2681_v33  }
 0x129   :  { %2253 = vset.pattern.permute.xlu1 %v2506_v54  ;;  %2266 = vset.pattern.permute.xlu0 %v2507_v55 }
 0x12a   :  { %405 = vperm.xlu1 %2253, %v2681_v33   ;;  %588 = vperm.xlu0 %2266, %v2681_v33  }
 0x12e   :  { %2254 = vset.pattern.permute.xlu1 %v2508_v56  ;;  %2268 = vset.pattern.permute.xlu0 %v2509_v57 }
 0x12f   :  { %417 = vperm.xlu1 %2254, %v2681_v33   ;;  %621 = vperm.xlu0 %2268, %v2681_v33  }
 0x133   :  { %2256 = vset.pattern.permute.xlu1 %v2510_v58  ;;  %2271 = vset.pattern.permute.xlu0 %v2511_v59 }
 0x134   :  { %450 = vperm.xlu1 %2256, %v2681_v33   ;;  %668 = vperm.xlu0 %2271, %v2681_v33  }
 0x138   :  { %2257 = vset.pattern.permute.xlu1 %v2512_v60  ;;  %2274 = vset.pattern.permute.xlu0 %v2513_v61 }
 0x139   :  { %462 = vperm.xlu1 %2257, %v2681_v33   ;;  %702 = vperm.xlu0 %2274, %v2681_v33  }
 0x13d   :  { %2259 = vset.pattern.permute.xlu1 %v2514_v62  ;;  %2276 = vset.pattern.permute.xlu0 %v2515_v63 }
 0x13e   :  { %497 = vperm.xlu1 %2259, %v2681_v33   ;;  %735 = vperm.xlu0 %2276, %v2681_v33  }
 0x142   :  { %2261 = vset.pattern.permute.xlu1 %v2516_v1  ;;  %2278 = vset.pattern.permute.xlu0 %v2485_v9  ;;  %v2523_v9 = vmov 24  }
 0x143   :  { %519 = vperm.xlu1 %2261, %v2681_v33   ;;  %158 = vperm.xlu0 %2278, %v2742_v0  }
 0x147   :  { %2262 = vset.pattern.permute.xlu1 %v2517_v2  ;;  %2280 = vset.pattern.permute.xlu0 %v2486_v34  ;;  %v2527_v34 = vmov 55  }
 0x148   :  { %531 = vperm.xlu1 %2262, %v2681_v33   ;;  %181 = vperm.xlu0 %2280, %v2742_v0  }
 0x14c   :  { %2264 = vset.pattern.permute.xlu1 %v2518_v3  ;;  %2283 = vset.pattern.permute.xlu0 %v2490_v38 }
 0x14d   :  { %564 = vperm.xlu1 %2264, %v2681_v33   ;;  %218 = vperm.xlu0 %2283, %v2742_v0  }
 0x151   :  { %2265 = vset.pattern.permute.xlu1 %v2519_v4  ;;  %2286 = vset.pattern.permute.xlu0 %v2494_v42 }
 0x152   :  { %576 = vperm.xlu1 %2265, %v2681_v33   ;;  %265 = vperm.xlu0 %2286, %v2742_v0  }
 0x156   :  { %2267 = vset.pattern.permute.xlu1 %v2520_v5  ;;  %2289 = vset.pattern.permute.xlu0 %v2498_v46 }
 0x157   :  { %611 = vperm.xlu1 %2267, %v2681_v33   ;;  %299 = vperm.xlu0 %2289, %v2742_v0  }
 0x15b   :  { %2269 = vset.pattern.permute.xlu1 %v2521_v6  ;;  %2292 = vset.pattern.permute.xlu0 %v2502_v50  ;;  %v2531_v50 = vmov 12  }
 0x15c   :  { %633 = vperm.xlu1 %2269, %v2681_v33   ;;  %344 = vperm.xlu0 %2292, %v2742_v0  }
 0x160   :  { %2270 = vset.pattern.permute.xlu1 %v2522_v7  ;;  %2294 = vset.pattern.permute.xlu0 %v2504_v52  ;;  %v2532_v52 = vmov 27  }
 0x161   :  { %645 = vperm.xlu1 %2270, %v2681_v33   ;;  %379 = vperm.xlu0 %2294, %v2742_v0  }
 0x165   :  { %2272 = vset.pattern.permute.xlu1 %v2523_v9  ;;  %2297 = vset.pattern.permute.xlu0 %v2508_v56 }
 0x166   :  { %678 = vperm.xlu1 %2272, %v2681_v33   ;;  %413 = vperm.xlu0 %2297, %v2742_v0  }
 0x16a   :  { %2273 = vset.pattern.permute.xlu1 %v2524_v10  ;;  %2300 = vset.pattern.permute.xlu0 %v2512_v60  ;;  %v2533_v60 = vmov 57  }
 0x16b   :  { %690 = vperm.xlu1 %2273, %v2681_v33   ;;  %458 = vperm.xlu0 %2300, %v2742_v0  }
 0x16e   :  { %v174_v13 = vpop.permute.xlu1 %173  ;;  %v164_v14 = vpop.permute.xlu0 %163 }
 0x16f   :  { %2275 = vset.pattern.permute.xlu1 %v2525_v15  ;;  %2302 = vset.pattern.permute.xlu0 %v2514_v62  ;;  %v177_v16 = vmul.f32 %v2776_v11, %v174_v13  ;;  %v167_v17 = vmul.f32 %v164_v14, %v2781_v12  ;;  %v2537_v14 = vmov 14  }
 0x170   :  { %725 = vperm.xlu1 %2275, %v2681_v33   ;;  %493 = vperm.xlu0 %2302, %v2742_v0  }
 0x171   :  { %v179_v22 = vadd.f32 %v177_v16, %v167_v17  ;;  %v2538_v16 = vmov 29  }
 0x173   :  { %v186_v19 = vpop.permute.xlu1 %185  ;;  %v198_v21 = vpop.permute.xlu0 %197 }
 0x174   :  { %v189_v23 = vmul.f32 %v2790_v18, %v186_v19  ;;  %2277 = vset.pattern.permute.xlu1 %v2526_v24  ;;  %2305 = vset.pattern.permute.xlu0 %v2517_v2  ;;  %v201_v26 = vmul.f32 %v2795_v20, %v198_v21  ;;  %v2534_v2 = vmov 13  }
 0x175   :  { %747 = vperm.xlu1 %2277, %v2681_v33   ;;  %527 = vperm.xlu0 %2305, %v2742_v0  }
 0x176   :  { %v191_v25 = vadd.f32 %v189_v23, %v179_v22 }
 0x178   :  { %v203_v27 = vadd.f32 %v201_v26, %v191_v25  ;;  %v2802_v28 = vpop.permute.xlu1 %212  ;;  %v3933_v25 = vmov 59  }
 0x179   :  { %2279 = vset.pattern.permute.xlu1 %v2484_v8  ;;  %2308 = vset.pattern.permute.xlu0 %v2519_v4 }
 0x17a   :  { %169 = vperm.xlu1 %2279, %v2742_v0   ;;  %572 = vperm.xlu0 %2308, %v2742_v0   ;;  %206 = vst.msk [vmem:[#allocation3 + $0x8] sm:$0xff] %vm204_vm6, %v203_v27 }
 0x17d   :  { %v2808_v29 = vpop.permute.xlu1 %222 }
 0x17e   :  { %2281 = vset.pattern.permute.xlu1 %v2487_v35  ;;  %2310 = vset.pattern.permute.xlu0 %v2520_v5  ;;  %v2535_v5 = vmov 43  }
 0x17f   :  { %193 = vperm.xlu1 %2281, %v2742_v0   ;;  %607 = vperm.xlu0 %2310, %v2742_v0  }
 0x182   :  { %v2813_v30 = vpop.permute.xlu1 %246 }
 0x183   :  { %2282 = vset.pattern.permute.xlu1 %v2488_v36  ;;  %2313 = vset.pattern.permute.xlu0 %v2522_v7  ;;  %v2528_v36 = vmov 11  }
 0x184   :  { %208 = vperm.xlu1 %2282, %v2742_v0   ;;  %641 = vperm.xlu0 %2313, %v2742_v0  }
 0x187   :  { %v2818_v8 = vpop.permute.xlu1 %269 }
 0x188   :  { %2284 = vset.pattern.permute.xlu1 %v2489_v37  ;;  %2316 = vset.pattern.permute.xlu0 %v2524_v10  ;;  %v2840_v37 = vpop.permute.xlu0 %234  ;;  %v2536_v10 = vmov 58  }
 0x189   :  { %230 = vperm.xlu1 %2284, %v2742_v0   ;;  %686 = vperm.xlu0 %2316, %v2742_v0  }
 0x18c   :  { %v2823_v31 = vpop.permute.xlu1 %291 }
 0x18d   :  { %2285 = vset.pattern.permute.xlu1 %v2492_v40  ;;  %2318 = vset.pattern.permute.xlu0 %v2525_v15  ;;  %v2848_v40 = vpop.permute.xlu0 %279  ;;  %v295_v19 = vmul.f32 %v2790_v18, %v2823_v31 }
 0x18e   :  { %242 = vperm.xlu1 %2285, %v2742_v0   ;;  %721 = vperm.xlu0 %2318, %v2742_v0  }
 0x191   :  { %v2828_v32 = vpop.permute.xlu1 %303  ;;  %v2858_v46 = vpop.permute.xlu0 %326 }
 0x192   :  { %2287 = vset.pattern.permute.xlu1 %v2491_v39  ;;  %2321 = vset.pattern.permute.xlu0 %v2527_v34  ;;  %v2529_v39 = vmov 41   ;;  %v307_v22 = vmul.f32 %v2795_v20, %v2828_v32 }
 0x193   :  { %275 = vperm.xlu1 %2287, %v2742_v0   ;;  %755 = vperm.xlu0 %2321, %v2742_v0  }
 0x195   :  { %v2868_v56 = vpop.permute.xlu0 %360 }
 0x196   :  { %v2834_v35 = vpop.permute.xlu1 %336 }
 0x197   :  { %2288 = vset.pattern.permute.xlu1 %v2496_v44  ;;  %2323 = vset.pattern.permute.xlu0 %v2528_v36  ;;  %v2530_v44 = vmov 56  }
 0x198   :  { %287 = vperm.xlu1 %2288, %v2742_v0   ;;  %782 = vperm.xlu0 %2323, %v2681_v33  }
 0x19b   :  { %v2842_v38 = vpop.permute.xlu1 %348 }
 0x19c   :  { %2290 = vset.pattern.permute.xlu1 %v2493_v41  ;;  %2327 = vset.pattern.permute.xlu0 %v2529_v39 }
 0x19d   :  { %322 = vperm.xlu1 %2290, %v2742_v0   ;;  %800 = vperm.xlu0 %2327, %v2742_v0  }
 0x1a0   :  { %v2850_v42 = vpop.permute.xlu1 %383 }
 0x1a1   :  { %2291 = vset.pattern.permute.xlu1 %v2500_v48  ;;  %2329 = vset.pattern.permute.xlu0 %v2530_v44 }
 0x1a2   :  { %332 = vperm.xlu1 %2291, %v2742_v0   ;;  %816 = vperm.xlu0 %2329, %v2681_v33  }
 0x1a5   :  { %v2856_v41 = vpop.permute.xlu1 %405 }
 0x1a6   :  { %2293 = vset.pattern.permute.xlu1 %v2495_v43  ;;  %2331 = vset.pattern.permute.xlu0 %v2531_v50 }
 0x1a7   :  { %356 = vperm.xlu1 %2293, %v2742_v0   ;;  %835 = vperm.xlu0 %2331, %v2742_v0  }
 0x1aa   :  { %v2864_v48 = vpop.permute.xlu1 %417 }
 0x1ab   :  { %2295 = vset.pattern.permute.xlu1 %v2497_v45  ;;  %2333 = vset.pattern.permute.xlu0 %v2532_v52  ;;  %v394_v45 = vpop.permute.xlu0 %393 }
 0x1ac   :  { %389 = vperm.xlu1 %2295, %v2742_v0   ;;  %849 = vperm.xlu0 %2333, %v2681_v33   ;;  %v397_v27 = vmul.f32 %v2776_v11, %v394_v45 }
 0x1af   :  { %v2872_v43 = vpop.permute.xlu1 %450 }
 0x1b0   :  { %2296 = vset.pattern.permute.xlu1 %v2506_v54  ;;  %2336 = vset.pattern.permute.xlu0 %v2533_v60  ;;  %v2884_v54 = vpop.permute.xlu0 %440 }
 0x1b1   :  { %401 = vperm.xlu1 %2296, %v2742_v0   ;;  %869 = vperm.xlu0 %2336, %v2742_v0  }
 0x1b4   :  { %v2878_v62 = vpop.permute.xlu1 %462 }
 0x1b5   :  { %2298 = vset.pattern.permute.xlu1 %v2499_v47  ;;  %2339 = vset.pattern.permute.xlu0 %v2534_v2  ;;  %v2890_v47 = vpop.permute.xlu0 %474 }
 0x1b6   :  { %436 = vperm.xlu1 %2298, %v2742_v0   ;;  %896 = vperm.xlu0 %2339, %v2681_v33  }
 0x1b9   :  { %v498_v4 = vpop.permute.xlu1 %497  ;;  %v508_v13 = vpop.permute.xlu0 %507 }
 0x1ba   :  { %2299 = vset.pattern.permute.xlu1 %v2510_v58  ;;  %2341 = vset.pattern.permute.xlu0 %v2535_v5 }
 0x1bb   :  { %446 = vperm.xlu1 %2299, %v2742_v0   ;;  %914 = vperm.xlu0 %2341, %v2742_v0  }
 0x1bd   :  { %v2906_v17 = vpop.permute.xlu0 %554 }
 0x1be   :  { %v520_v7 = vpop.permute.xlu1 %519 }
 0x1bf   :  { %2301 = vset.pattern.permute.xlu1 %v2501_v49  ;;  %2344 = vset.pattern.permute.xlu0 %v2536_v10  ;;  %v273_v49 = vmul.f32 %v2818_v8, %v2781_v12  ;;  %v409_v8 = vmul.f32 %v2790_v18, %v2856_v41 }
 0x1c0   :  { %470 = vperm.xlu1 %2301, %v2742_v0   ;;  %930 = vperm.xlu0 %2344, %v2681_v33  }
 0x1c1   :  { %v2927_v31 = vpop.permute.xlu0 %588 }
 0x1c3   :  { %v532_v58 = vpop.permute.xlu1 %531 }
 0x1c4   :  { %2303 = vset.pattern.permute.xlu1 %v2503_v51  ;;  %2345 = vset.pattern.permute.xlu0 %v2537_v14  ;;  %v283_v51 = vmul.f32 %v2776_v11, %v2848_v40 }
 0x1c5   :  { %503 = vperm.xlu1 %2303, %v2742_v0   ;;  %949 = vperm.xlu0 %2345, %v2742_v0  }
 0x1c6   :  { %v285_v21 = vadd.f32 %v283_v51, %v273_v49  ;;  %v511_v51 = vmul.f32 %v2776_v11, %v508_v13 }
 0x1c8   :  { %v2900_v15 = vpop.permute.xlu1 %564  ;;  %v297_v26 = vadd.f32 %v295_v19, %v285_v21  ;;  %v523_v19 = vmul.f32 %v2790_v18, %v520_v7 }
 0x1c9   :  { %2304 = vset.pattern.permute.xlu1 %v2516_v1  ;;  %2348 = vset.pattern.permute.xlu0 %v2538_v16  ;;  %v387_v1 = vmul.f32 %v2850_v42, %v2781_v12  ;;  %v501_v42 = vmul.f32 %v498_v4, %v2781_v12 }
 0x1ca   :  { %515 = vperm.xlu1 %2304, %v2742_v0   ;;  %963 = vperm.xlu0 %2348, %v2681_v33   ;;  %v309_v32 = vadd.f32 %v307_v22, %v297_v26  ;;  %v535_v22 = vmul.f32 %v2795_v20, %v532_v58 }
 0x1cb   :  { %v399_v40 = vadd.f32 %v397_v27, %v387_v1  ;;  %v513_v21 = vadd.f32 %v511_v51, %v501_v42 }
 0x1cd   :  { %v2918_v23 = vpop.permute.xlu1 %576  ;;  %v411_v45 = vadd.f32 %v409_v8, %v399_v40  ;;  %v525_v1 = vadd.f32 %v523_v19, %v513_v21  ;;  %v2979_v19 = vld [vmem:[%s3928_s1 + $0x20] sm:$0xff] }
 0x1ce   :  { %2306 = vset.pattern.permute.xlu1 %v2505_v53  ;;  %2350 = vset.pattern.permute.xlu0 %v3933_v25  ;;  %v421_v53 = vmul.f32 %v2795_v20, %v2864_v48  ;;  %v622_v48 = vpop.permute.xlu0 %621  ;;  %v216_v25 = vmul.f32 %v2802_v28, %v2781_v12  ;;  %v330_v28 = vmul.f32 %v2858_v46, %v2781_v12 }
 0x1cf   :  { %550 = vperm.xlu1 %2306, %v2742_v0   ;;  %983 = vperm.xlu0 %2350, %v2742_v0   ;;  %v537_v7 = vadd.f32 %v535_v22, %v525_v1 }
 0x1d0   :  { %v423_v41 = vadd.f32 %v421_v53, %v411_v45 }
 0x1d2   :  { %v612_v49 = vpop.permute.xlu1 %611  ;;  %v2945_v8 = vpop.permute.xlu0 %668 }
 0x1d3   :  { %2307 = vset.pattern.permute.xlu1 %v2518_v3  ;;  %314 = vrot.lane.b32.xlu0 %v309_v32, %s2540_s16  ;;  %v615_v4 = vmul.f32 %v612_v49, %v2781_v12  ;;  %v625_v3 = vmul.f32 %v2776_v11, %v622_v48 }
 0x1d4   :  { %560 = vperm.xlu1 %2307, %v2742_v0  }
 0x1d5   :  { %v627_v27 = vadd.f32 %v625_v3, %v615_v4  ;;  %v2994_v4 = vld [vmem:[%s3928_s1 + $0x30] sm:$0xff] }
 0x1d6   :  { %v2954_v42 = vpop.permute.xlu0 %702 }
 0x1d7   :  { %v634_v26 = vpop.permute.xlu1 %633  ;;  %428 = vrot.lane.b32.xlu0 %v423_v41, %s2541_s17  ;;  %v2984_v41 = vld [vmem:[%s3928_s1 + $0x10] sm:$0xff] }
 0x1d8   :  { %2309 = vset.pattern.permute.xlu1 %v2507_v55  ;;  %v637_v13 = vmul.f32 %v2790_v18, %v634_v26 }
 0x1d9   :  { %584 = vperm.xlu1 %2309, %v2742_v0  }
 0x1da   :  { %v639_v32 = vadd.f32 %v637_v13, %v627_v27 }
 0x1db   :  { %542 = vrot.lane.b32.xlu0 %v537_v7, %s2542_s18 }
 0x1dc   :  { %v646_v58 = vpop.permute.xlu1 %645 }
 0x1dd   :  { %v649_v40 = vmul.f32 %v2795_v20, %v646_v58  ;;  %2311 = vset.pattern.permute.xlu1 %v2509_v57  ;;  %v2961_v57 = vpop.permute.xlu0 %735  ;;  %v2544_v58 = vmov 26  }
 0x1de   :  { %617 = vperm.xlu1 %2311, %v2742_v0  }
 0x1df   :  { %v651_v55 = vadd.f32 %v649_v40, %v639_v32 }
 0x1e1   :  { %v2950_v53 = vpop.permute.xlu1 %678  ;;  %656 = vrot.lane.b32.xlu0 %v651_v55, %s2543_s19  ;;  %v159_v45 = vpop.permute.xlu0 %158 }
 0x1e2   :  { %2312 = vset.pattern.permute.xlu1 %v2521_v6 }
 0x1e3   :  { %629 = vperm.xlu1 %2312, %v2742_v0  }
 0x1e6   :  { %v2957_v49 = vpop.permute.xlu1 %690 }
 0x1e7   :  { %2314 = vset.pattern.permute.xlu1 %v2511_v59  ;;  %v2974_v59 = vld [vmem:[%s3928_s1] sm:$0xff] }
 0x1e8   :  { %664 = vperm.xlu1 %2314, %v2742_v0  }
 0x1eb   :  { %v2963_v51 = vpop.permute.xlu1 %725 }
 0x1ec   :  { %2315 = vset.pattern.permute.xlu1 %v2523_v9  ;;  %v182_v9 = vpop.permute.xlu0 %181 }
 0x1ed   :  { %674 = vperm.xlu1 %2315, %v2742_v0   ;;  %v188_v48 = vmul.f32 %v2979_v19, %v182_v9 }
 0x1f0   :  { %v2967_v6 = vpop.permute.xlu1 %747 }
 0x1f1   :  { %2317 = vset.pattern.permute.xlu1 %v2513_v61  ;;  %v166_v61 = vmul.f32 %v159_v45, %v2974_v59  ;;  %v2545_v45 = vmov 42  }
 0x1f2   :  { %698 = vperm.xlu1 %2317, %v2742_v0  }
 0x1f5   :  { %v170_v21 = vpop.permute.xlu1 %169 }
 0x1f6   :  { %v176_v22 = vmul.f32 %v2984_v41, %v170_v21  ;;  %2319 = vset.pattern.permute.xlu1 %v2515_v63 }
 0x1f7   :  { %731 = vperm.xlu1 %2319, %v2742_v0  }
 0x1f8   :  { %v178_v1 = vadd.f32 %v176_v22, %v166_v61  ;;  %v2546_v22 = vmov 28  }
 0x1fa   :  { %v194_v26 = vpop.permute.xlu1 %193  ;;  %v190_v3 = vadd.f32 %v188_v48, %v178_v1 }
 0x1fb   :  { %v200_v7 = vmul.f32 %v2994_v4, %v194_v26  ;;  %2320 = vset.pattern.permute.xlu1 %v2526_v24 }
 0x1fc   :  { %743 = vperm.xlu1 %2320, %v2742_v0  }
 0x1fd   :  { %v202_v13 = vadd.f32 %v200_v7, %v190_v3 }
 0x1ff   :  { %v2999_v63 = vpop.permute.xlu1 %208  ;;  %205 = vst.msk [vmem:[#allocation3] sm:$0xff] %vm204_vm6, %v202_v13 }
 0x200   :  { %2322 = vset.pattern.permute.xlu1 %v2527_v34 }
 0x201   :  { %759 = vperm.xlu1 %2322, %v2681_v33  }
 0x204   :  { %v3004_v27 = vpop.permute.xlu1 %230 }
 0x205   :  { %2324 = vset.pattern.permute.xlu1 %v2544_v58 }
 0x206   :  { %792 = vperm.xlu1 %2324, %v2681_v33  }
 0x209   :  { %v3007_v32 = vpop.permute.xlu1 %242 }
 0x20a   :  { %2325 = vset.pattern.permute.xlu1 %v2528_v36 }
 0x20b   :  { %778 = vperm.xlu1 %2325, %v2742_v0  }
 0x20e   :  { %v3011_v24 = vpop.permute.xlu1 %275 }
 0x20f   :  { %2326 = vset.pattern.permute.xlu1 %v2544_v58 }
 0x210   :  { %788 = vperm.xlu1 %2326, %v2742_v0  }
 0x213   :  { %v3014_v34 = vpop.permute.xlu1 %287 }
 0x214   :  { %2328 = vset.pattern.permute.xlu1 %v2529_v39 }
 0x215   :  { %804 = vperm.xlu1 %2328, %v2681_v33  }
 0x218   :  { %v3018_v40 = vpop.permute.xlu1 %322 }
 0x219   :  { %2330 = vset.pattern.permute.xlu1 %v2530_v44  ;;  %v3033_v44 = vpop.permute.xlu0 %218 }
 0x21a   :  { %812 = vperm.xlu1 %2330, %v2742_v0  }
 0x21d   :  { %v3022_v36 = vpop.permute.xlu1 %332 }
 0x21e   :  { %2332 = vset.pattern.permute.xlu1 %v2531_v50  ;;  %v3038_v50 = vpop.permute.xlu0 %265 }
 0x21f   :  { %839 = vperm.xlu1 %2332, %v2681_v33  }
 0x222   :  { %v3026_v55 = vpop.permute.xlu1 %356 }
 0x223   :  { %2334 = vset.pattern.permute.xlu1 %v2532_v52  ;;  %v3044_v52 = vpop.permute.xlu0 %299 }
 0x224   :  { %845 = vperm.xlu1 %2334, %v2742_v0  }
 0x227   :  { %v3030_v39 = vpop.permute.xlu1 %389  ;;  %v3052_v1 = vpop.permute.xlu0 %344 }
 0x228   :  { %2335 = vset.pattern.permute.xlu1 %v2545_v45 }
 0x229   :  { %857 = vperm.xlu1 %2335, %v2742_v0  }
 0x22b   :  { %v3058_v26 = vpop.permute.xlu0 %379 }
 0x22c   :  { %v3035_v9 = vpop.permute.xlu1 %401 }
 0x22d   :  { %861 = vperm.xlu1 %2335, %v2681_v33  }
 0x22f   :  { %v3064_v3 = vpop.permute.xlu0 %413 }
 0x231   :  { %2337 = vset.pattern.permute.xlu1 %v2533_v60  ;;  %v3041_v21 = vpop.permute.xlu1 %436 }
 0x232   :  { %873 = vperm.xlu1 %2337, %v2681_v33  }
 0x233   :  { %v3070_v13 = vpop.permute.xlu0 %458 }
 0x236   :  { %2338 = vset.pattern.permute.xlu1 %v2534_v2  ;;  %v3047_v61 = vpop.permute.xlu1 %446 }
 0x237   :  { %892 = vperm.xlu1 %2338, %v2742_v0  }
 0x23b   :  { %2340 = vset.pattern.permute.xlu1 %v2546_v22  ;;  %v3050_v48 = vpop.permute.xlu1 %470  ;;  %v2547_v22 = vmov 44  }
 0x23c   :  { %902 = vperm.xlu1 %2340, %v2742_v0  }
 0x240   :  { %906 = vperm.xlu1 %2340, %v2681_v33   ;;  %v3056_v60 = vpop.permute.xlu1 %503 }
 0x244   :  { %2342 = vset.pattern.permute.xlu1 %v2535_v5  ;;  %v3077_v5 = vpop.permute.xlu0 %493 }
 0x245   :  { %918 = vperm.xlu1 %2342, %v2681_v33   ;;  %v3062_v2 = vpop.permute.xlu1 %515 }
 0x249   :  { %2343 = vset.pattern.permute.xlu1 %v2536_v10  ;;  %v226_v10 = vmul.f32 %v2776_v11, %v2808_v29  ;;  %v340_v29 = vmul.f32 %v2776_v11, %v2834_v35  ;;  %v454_v35 = vmul.f32 %v2776_v11, %v2872_v43 }
 0x24a   :  { %926 = vperm.xlu1 %2343, %v2742_v0   ;;  %v3068_v7 = vpop.permute.xlu1 %550 }
 0x24b   :  { %3934 = vst [vmem:[#allocation7_spill] sm:$0xff] %v3068_v7  ;;  %v3089_v7 = vpop.permute.xlu0 %527 }
 0x24e   :  { %2346 = vset.pattern.permute.xlu1 %v2537_v14 }
 0x24f   :  { %953 = vperm.xlu1 %2346, %v2681_v33   ;;  %v3074_v58 = vpop.permute.xlu1 %560 }
 0x250   :  { %3935 = vst [vmem:[#allocation8_spill] sm:$0xff] %v3074_v58 }
 0x253   :  { %2347 = vset.pattern.permute.xlu1 %v2538_v16  ;;  %v228_v16 = vadd.f32 %v226_v10, %v216_v25  ;;  %v352_v25 = vmul.f32 %v2790_v18, %v2842_v38  ;;  %v3104_v10 = vpop.permute.xlu0 %572  ;;  %v466_v38 = vmul.f32 %v2790_v18, %v2878_v62 }
 0x254   :  { %959 = vperm.xlu1 %2347, %v2742_v0   ;;  %v3080_v45 = vpop.permute.xlu1 %584 }
 0x255   :  { %3936 = vst [vmem:[#allocation9_spill] sm:$0xff] %v3080_v45  ;;  %v238_v45 = vmul.f32 %v2790_v18, %v2840_v37  ;;  %v342_v37 = vadd.f32 %v340_v29, %v330_v28  ;;  %v568_v29 = vmul.f32 %v2776_v11, %v2900_v15  ;;  %v478_v15 = vmul.f32 %v2795_v20, %v2890_v47 }
 0x256   :  { %v592_v47 = vmul.f32 %v2795_v20, %v2927_v31  ;;  %v729_v31 = vmul.f32 %v2963_v51, %v2781_v12 }
 0x257   :  { %v354_v46 = vadd.f32 %v352_v25, %v342_v37  ;;  %v3120_v43 = vpop.permute.xlu0 %607  ;;  %v682_v25 = vmul.f32 %v2776_v11, %v2950_v53 }
 0x258   :  { %2349 = vset.pattern.permute.xlu1 %v2547_v22  ;;  %v240_v22 = vadd.f32 %v238_v45, %v228_v16 }
 0x259   :  { %971 = vperm.xlu1 %2349, %v2742_v0   ;;  %v3085_v14 = vpop.permute.xlu1 %617  ;;  %v250_v0 = vmul.f32 %v2795_v20, %v2813_v30  ;;  %v444_v30 = vmul.f32 %v2884_v54, %v2781_v12 }
 0x25a   :  { %3937 = vst [vmem:[#allocation10_spill] sm:$0xff] %v3085_v14  ;;  %v3939_v14 = vmov 59  }
 0x25b   :  { %v252_v16 = vadd.f32 %v250_v0, %v240_v22  ;;  %v558_v22 = vmul.f32 %v2906_v17, %v2781_v12 }
 0x25d   :  { %975 = vperm.xlu1 %2349, %v2681_v33   ;;  %v570_v28 = vadd.f32 %v568_v29, %v558_v22 }
 0x25e   :  { %v3096_v58 = vpop.permute.xlu1 %629 }
 0x25f   :  { %3938 = vst [vmem:[#allocation11_spill] sm:$0xff] %v3096_v58  ;;  %v364_v58 = vmul.f32 %v2795_v20, %v2868_v56  ;;  %v580_v56 = vmul.f32 %v2790_v18, %v2918_v23  ;;  %v694_v23 = vmul.f32 %v2790_v18, %v2957_v49 }
 0x261   :  { %2351 = vset.pattern.permute.xlu1 %v3939_v14  ;;  %v456_v14 = vadd.f32 %v454_v35, %v444_v30  ;;  %v366_v54 = vadd.f32 %v364_v58, %v354_v46  ;;  %v672_v58 = vmul.f32 %v2945_v8, %v2781_v12  ;;  %v582_v37 = vadd.f32 %v580_v56, %v570_v28  ;;  %v3138_v35 = vpop.permute.xlu0 %641 }
 0x262   :  { %987 = vperm.xlu1 %2351, %v2681_v33   ;;  %v2549_v33 = vmov 60   ;;  %v706_v8 = vmul.f32 %v2795_v20, %v2954_v42  ;;  %v739_v42 = vmul.f32 %v2776_v11, %v2961_v57 }
 0x263   :  { %v3110_v45 = vpop.permute.xlu1 %664  ;;  %2353 = vset.pattern.permute.xlu0 %v2549_v33  ;;  %v468_v62 = vadd.f32 %v466_v38, %v456_v14  ;;  %v684_v30 = vadd.f32 %v682_v25, %v672_v58  ;;  %v594_v53 = vadd.f32 %v592_v47, %v582_v37 }
 0x264   :  { %v741_v22 = vadd.f32 %v739_v42, %v729_v31 }
 0x265   :  { %v480_v17 = vadd.f32 %v478_v15, %v468_v62  ;;  %v696_v46 = vadd.f32 %v694_v23, %v684_v30  ;;  %v3147_v38 = vpop.permute.xlu0 %686 }
 0x266   :  { %257 = vrot.lane.b32.xlu1 %v252_v16, %s2548_s28 }
 0x267   :  { %2352 = vset.pattern.permute.xlu1 %v2549_v33  ;;  %v708_v14 = vadd.f32 %v706_v8, %v696_v46 }
 0x268   :  { %v3127_v0 = vpop.permute.xlu1 %674 }
 0x269   :  { %v3157_v33 = vpop.permute.xlu0 %721 }
 0x26a   :  { %371 = vrot.lane.b32.xlu1 %v366_v54, %s2550_s29  ;;  %v751_v54 = vmul.f32 %v2790_v18, %v2967_v6 }
 0x26c   :  { %v753_v56 = vadd.f32 %v751_v54, %v741_v22 }
 0x26d   :  { %v3140_v16 = vpop.permute.xlu1 %698  ;;  %v3164_v28 = vpop.permute.xlu0 %755 }
 0x26e   :  { %485 = vrot.lane.b32.xlu1 %v480_v17, %s2551_s30 }
 0x271   :  { %v783_v51 = vpop.permute.xlu0 %782 }
 0x272   :  { %599 = vrot.lane.b32.xlu1 %v594_v53, %s2552_s6  ;;  %v3150_v49 = vpop.permute.xlu1 %731  ;;  %v786_v23 = vmul.f32 %v783_v51, %v2781_v12 }
 0x275   :  { %v3169_v37 = vpop.permute.xlu0 %800 }
 0x276   :  { %713 = vrot.lane.b32.xlu1 %v708_v14, %s2553_s7 }
 0x277   :  { %v3155_v29 = vpop.permute.xlu1 %743 }
 0x279   :  { %v817_v47 = vpop.permute.xlu0 %816 }
 0x27a   :  { %v820_v8 = vmul.f32 %v2795_v20, %v817_v47 }
 0x27c   :  { %v760_v62 = vpop.permute.xlu1 %759 }
 0x27d   :  { %v763_v15 = vmul.f32 %v2795_v20, %v760_v62  ;;  %v3182_v62 = vpop.permute.xlu0 %835 }
 0x27f   :  { %v765_v25 = vadd.f32 %v763_v15, %v753_v56 }
 0x281   :  { %v793_v58 = vpop.permute.xlu1 %792  ;;  %770 = vrot.lane.b32.xlu0 %v765_v25, %s2554_s8  ;;  %v850_v15 = vpop.permute.xlu0 %849 }
 0x282   :  { %v796_v6 = vmul.f32 %v2776_v11, %v793_v58  ;;  %v853_v51 = vmul.f32 %v2776_v11, %v850_v15  ;;  %v249_v15 = vmul.f32 %v2994_v4, %v3007_v32  ;;  %v282_v32 = vmul.f32 %v2984_v41, %v3011_v24 }
 0x283   :  { %v329_v24 = vmul.f32 %v3018_v40, %v2974_v59  ;;  %v386_v40 = vmul.f32 %v3058_v26, %v2974_v59 }
 0x284   :  { %v798_v53 = vadd.f32 %v796_v6, %v786_v23  ;;  %v215_v23 = vmul.f32 %v2999_v63, %v2974_v59 }
 0x286   :  { %v3167_v17 = vpop.permute.xlu1 %778 }
 0x28b   :  { %v3171_v57 = vpop.permute.xlu1 %788 }
 0x290   :  { %v805_v30 = vpop.permute.xlu1 %804 }
 0x291   :  { %v808_v46 = vmul.f32 %v2790_v18, %v805_v30 }
 0x293   :  { %v810_v14 = vadd.f32 %v808_v46, %v798_v53  ;;  %v225_v53 = vmul.f32 %v2984_v41, %v3033_v44  ;;  %v237_v46 = vmul.f32 %v2979_v19, %v3004_v27 }
 0x295   :  { %v822_v31 = vadd.f32 %v820_v8, %v810_v14  ;;  %v3177_v42 = vpop.permute.xlu1 %812  ;;  %v3195_v8 = vpop.permute.xlu0 %869 }
 0x297   :  { %827 = vrot.lane.b32.xlu1 %v822_v31, %s2555_s9 }
 0x29a   :  { %v840_v54 = vpop.permute.xlu1 %839 }
 0x29b   :  { %v843_v25 = vmul.f32 %v840_v54, %v2781_v12  ;;  %v227_v54 = vadd.f32 %v225_v53, %v215_v23 }
 0x29d   :  { %v855_v47 = vadd.f32 %v853_v51, %v843_v25  ;;  %v897_v25 = vpop.permute.xlu0 %896 }
 0x29f   :  { %v3180_v22 = vpop.permute.xlu1 %845 }
 0x2a1   :  { %v3206_v51 = vpop.permute.xlu0 %914 }
 0x2a2   :  { %3941 = vst [vmem:[#allocation13_spill] sm:$0xff] %v3206_v51 }
 0x2a4   :  { %v3184_v56 = vpop.permute.xlu1 %857 }
 0x2a5   :  { %3940 = vst [vmem:[#allocation12_spill] sm:$0xff] %v3184_v56  ;;  %v239_v56 = vadd.f32 %v237_v46, %v227_v54  ;;  %v931_v53 = vpop.permute.xlu0 %930 }
 0x2a7   :  { %v251_v44 = vadd.f32 %v249_v15, %v239_v56  ;;  %v294_v56 = vmul.f32 %v2979_v19, %v3014_v34  ;;  %v306_v34 = vmul.f32 %v2994_v4, %v3044_v52  ;;  %v408_v52 = vmul.f32 %v2979_v19, %v3035_v9 }
 0x2a8   :  { %v862_v58 = vpop.permute.xlu1 %861  ;;  %v420_v9 = vmul.f32 %v2994_v4, %v3064_v3  ;;  %v3942_v3 = vld [vmem:[#allocation8_spill] sm:$0xff] }
 0x2a9   :  { %v865_v6 = vmul.f32 %v2790_v18, %v862_v58 }
 0x2ab   :  { %v867_v14 = vadd.f32 %v865_v6, %v855_v47  ;;  %v900_v47 = vmul.f32 %v897_v25, %v2781_v12 }
 0x2ad   :  { %v874_v30 = vpop.permute.xlu1 %873 }
 0x2ae   :  { %v877_v31 = vmul.f32 %v2795_v20, %v874_v30  ;;  %v272_v30 = vmul.f32 %v3038_v50, %v2974_v59 }
 0x2b0   :  { %v879_v58 = vadd.f32 %v877_v31, %v867_v14  ;;  %v339_v14 = vmul.f32 %v2984_v41, %v3022_v36  ;;  %v284_v15 = vadd.f32 %v282_v32, %v272_v30  ;;  %v351_v36 = vmul.f32 %v2979_v19, %v3052_v1 }
 0x2b1   :  { %v363_v30 = vmul.f32 %v2994_v4, %v3026_v55  ;;  %v453_v1 = vmul.f32 %v2984_v41, %v3047_v61  ;;  %v510_v55 = vmul.f32 %v2984_v41, %v3056_v60  ;;  %v465_v61 = vmul.f32 %v2979_v19, %v3070_v13 }
 0x2b2   :  { %v3200_v63 = vpop.permute.xlu1 %892  ;;  %884 = vrot.lane.b32.xlu0 %v879_v58, %s2556_s10  ;;  %v934_v58 = vmul.f32 %v2795_v20, %v931_v53  ;;  %v296_v25 = vadd.f32 %v294_v56, %v284_v15  ;;  %v341_v50 = vadd.f32 %v339_v14, %v329_v24  ;;  %v3239_v56 = vpop.permute.xlu0 %949  ;;  %v522_v15 = vmul.f32 %v2979_v19, %v3062_v2 }
 0x2b3   :  { %v477_v60 = vmul.f32 %v2994_v4, %v3050_v48  ;;  %v579_v48 = vmul.f32 %v2979_v19, %v3104_v10  ;;  %v681_v10 = vmul.f32 %v2984_v41, %v3127_v0  ;;  %v728_v0 = vmul.f32 %v3157_v33, %v2974_v59 }
 0x2b4   :  { %v308_v32 = vadd.f32 %v306_v34, %v296_v25  ;;  %v567_v25 = vmul.f32 %v2984_v41, %v3942_v3  ;;  %v795_v33 = vmul.f32 %v2984_v41, %v3171_v57 }
 0x2b6   :  { %255 = vrot.lane.b32.xlu0 %v251_v44, %s2548_s28  ;;  %v964_v24 = vpop.permute.xlu0 %963 }
 0x2b7   :  { %v3204_v27 = vpop.permute.xlu1 %902 }
 0x2bb   :  { %v907_v6 = vpop.permute.xlu1 %906 }
 0x2bc   :  { %v910_v23 = vmul.f32 %v2776_v11, %v907_v6 }
 0x2be   :  { %v912_v31 = vadd.f32 %v910_v23, %v900_v47  ;;  %v396_v23 = vmul.f32 %v2984_v41, %v3030_v39  ;;  %v353_v47 = vadd.f32 %v351_v36, %v341_v50  ;;  %v3943_v50 = vld [vmem:[#allocation7_spill] sm:$0xff] }
 0x2c0   :  { %v919_v46 = vpop.permute.xlu1 %918  ;;  %v398_v53 = vadd.f32 %v396_v23, %v386_v40  ;;  %v365_v26 = vadd.f32 %v363_v30, %v353_v47  ;;  %v534_v23 = vmul.f32 %v2994_v4, %v3089_v7  ;;  %v3268_v40 = vpop.permute.xlu0 %983  ;;  %v614_v30 = vmul.f32 %v3120_v43, %v2974_v59 }
 0x2c1   :  { %v922_v54 = vmul.f32 %v2790_v18, %v919_v46  ;;  %v443_v46 = vmul.f32 %v3041_v21, %v2974_v59  ;;  %v500_v21 = vmul.f32 %v3077_v5, %v2974_v59  ;;  %v671_v43 = vmul.f32 %v3110_v45, %v2974_v59 }
 0x2c2   :  { %v410_v14 = vadd.f32 %v408_v52, %v398_v53  ;;  %v738_v45 = vmul.f32 %v2984_v41, %v3150_v49 }
 0x2c3   :  { %v924_v44 = vadd.f32 %v922_v54, %v912_v31  ;;  %v455_v31 = vadd.f32 %v453_v1, %v443_v46  ;;  %v512_v13 = vadd.f32 %v510_v55, %v500_v21  ;;  %v967_v55 = vmul.f32 %v2776_v11, %v964_v24 }
 0x2c4   :  { %v648_v11 = vmul.f32 %v2994_v4, %v3138_v35  ;;  %v750_v35 = vmul.f32 %v2979_v19, %v3155_v29  ;;  %v740_v49 = vadd.f32 %v738_v45, %v728_v0  ;;  %v785_v29 = vmul.f32 %v3167_v17, %v2974_v59 }
 0x2c5   :  { %v936_v6 = vadd.f32 %v934_v58, %v924_v44  ;;  %v3222_v51 = vpop.permute.xlu1 %926  ;;  %v422_v58 = vadd.f32 %v420_v9, %v410_v14  ;;  %v467_v44 = vadd.f32 %v465_v61, %v455_v31  ;;  %v524_v34 = vadd.f32 %v522_v15, %v512_v13  ;;  %v3946_v14 = vld [vmem:[#allocation11_spill] sm:$0xff] }
 0x2c6   :  { %v636_v31 = vmul.f32 %v2979_v19, %v3946_v14  ;;  %v797_v57 = vadd.f32 %v795_v33, %v785_v29  ;;  %v807_v17 = vmul.f32 %v2979_v19, %v3169_v37  ;;  %v909_v37 = vmul.f32 %v2984_v41, %v3204_v27 }
 0x2c7   :  { %941 = vrot.lane.b32.xlu1 %v936_v6, %s2557_s0  ;;  %v557_v6 = vmul.f32 %v3943_v50, %v2974_v59  ;;  %v479_v36 = vadd.f32 %v477_v60, %v467_v44  ;;  %v536_v52 = vadd.f32 %v534_v23, %v524_v34  ;;  %v852_v23 = vmul.f32 %v2984_v41, %v3180_v22 }
 0x2c8   :  { %v876_v27 = vmul.f32 %v2994_v4, %v3195_v8 }
 0x2c9   :  { %v569_v2 = vadd.f32 %v567_v25, %v557_v6  ;;  %v752_v6 = vadd.f32 %v750_v35, %v740_v49 }
 0x2ca   :  { %v954_v39 = vpop.permute.xlu1 %953 }
 0x2cb   :  { %312 = vrot.lane.b32.xlu1 %v308_v32, %s2540_s16  ;;  %v3944_v32 = vld [vmem:[#allocation10_spill] sm:$0xff]  ;;  %v957_v1 = vmul.f32 %v954_v39, %v2781_v12  ;;  %v581_v46 = vadd.f32 %v579_v48, %v569_v2  ;;  %v315_v12 = vpop.permute.xlu0 %314 }
 0x2cc   :  { %v624_v47 = vmul.f32 %v2984_v41, %v3944_v32  ;;  %v3314_v2 = vld [vmem:[#allocation2 + $0x8] sm:$0xff] }
 0x2cd   :  { %v969_v39 = vadd.f32 %v967_v55, %v957_v1  ;;  %v2559_v1 = vmov 90  }
 0x2ce   :  { %v626_v61 = vadd.f32 %v624_v47, %v614_v30  ;;  %v819_v47 = vmul.f32 %v2994_v4, %v3177_v42  ;;  %v3947_v30 = vld [vmem:[#allocation12_spill] sm:$0xff] }
 0x2cf   :  { %v3250_v54 = vpop.permute.xlu1 %959  ;;  %369 = vrot.lane.b32.xlu1 %v365_v26, %s2550_s29  ;;  %v3945_v26 = vld [vmem:[#allocation9_spill] sm:$0xff]  ;;  %v429_v50 = vpop.permute.xlu0 %428  ;;  %v864_v22 = vmul.f32 %v2979_v19, %v3947_v30 }
 0x2d0   :  { %v591_v7 = vmul.f32 %v2994_v4, %v3945_v26  ;;  %v638_v15 = vadd.f32 %v636_v31, %v626_v61  ;;  %v966_v55 = vmul.f32 %v2984_v41, %v3250_v54  ;;  %v3948_v61 = vld [vmem:[#allocation13_spill] sm:$0xff]  ;;  %v933_v41 = vmul.f32 %v2994_v4, %v3222_v51 }
 0x2d1   :  { %v990_v51 = vmul.f32 %v2994_v4, %v3268_v40  ;;  %v3411_v30 = vld [vmem:[%s3928_s1 + $0x40] sm:$0xff] }
 0x2d2   :  { %v593_v21 = vadd.f32 %v591_v7, %v581_v46  ;;  %v650_v25 = vadd.f32 %v648_v11, %v638_v15  ;;  %v899_v7 = vmul.f32 %v3200_v63, %v2974_v59  ;;  %v921_v63 = vmul.f32 %v2979_v19, %v3948_v61 }
 0x2d3   :  { %426 = vrot.lane.b32.xlu1 %v422_v58, %s2541_s17  ;;  %v683_v58 = vadd.f32 %v681_v10, %v671_v43  ;;  %v543_v48 = vpop.permute.xlu0 %542  ;;  %v956_v43 = vmul.f32 %v3239_v56, %v2974_v59  ;;  %v2565_v11 = vmov 106  }
 0x2d4   :  { %v3264_v5 = vpop.permute.xlu1 %971  ;;  %v911_v10 = vadd.f32 %v909_v37, %v899_v7  ;;  %v3424_v37 = vld [vmem:[%s3928_s1 + $0x68] sm:$0xff]  ;;  %v3430_v7 = vld [vmem:[%s3928_s1 + $0x60] sm:$0xff] }
 0x2d5   :  { %v978_v54 = vmul.f32 %v2979_v19, %v3264_v5  ;;  %v2562_v5 = vmov 91  }
 0x2d7   :  { %483 = vrot.lane.b32.xlu1 %v479_v36, %s2551_s30  ;;  %v762_v36 = vmul.f32 %v2994_v4, %v3164_v28  ;;  %v842_v28 = vmul.f32 %v3182_v62, %v2974_v59  ;;  %v3333_v62 = vld [vmem:[#allocation2] sm:$0xff]  ;;  %v657_v31 = vpop.permute.xlu0 %656  ;;  %v2561_v59 = vmov 76  }
 0x2d8   :  { %v976_v53 = vpop.permute.xlu1 %975 }
 0x2d9   :  { %v979_v9 = vmul.f32 %v2790_v18, %v976_v53  ;;  %v693_v18 = vmul.f32 %v2979_v19, %v3147_v38  ;;  %v764_v32 = vadd.f32 %v762_v36, %v752_v6  ;;  %v809_v53 = vadd.f32 %v807_v17, %v797_v57 }
 0x2da   :  { %v854_v46 = vadd.f32 %v852_v23, %v842_v28 }
 0x2db   :  { %540 = vrot.lane.b32.xlu1 %v536_v52, %s2542_s18  ;;  %v981_v60 = vadd.f32 %v979_v9, %v969_v39  ;;  %v695_v13 = vadd.f32 %v693_v18, %v683_v58  ;;  %v821_v42 = vadd.f32 %v819_v47, %v809_v53  ;;  %v2560_v9 = vmov 105   ;;  %v3406_v47 = vld [vmem:[%s3928_s1 + $0x50] sm:$0xff]  ;;  %v3419_v53 = vld [vmem:[%s3928_s1 + $0x78] sm:$0xff] }
 0x2dc   :  { %v866_v26 = vadd.f32 %v864_v22, %v854_v46  ;;  %v923_v39 = vadd.f32 %v921_v63, %v911_v10  ;;  %v2566_v18 = vmov 62  }
 0x2dd   :  { %v988_v44 = vpop.permute.xlu1 %987 }
 0x2de   :  { %v991_v3 = vmul.f32 %v2795_v20, %v988_v44  ;;  %v705_v20 = vmul.f32 %v2994_v4, %v3140_v16  ;;  %v878_v8 = vadd.f32 %v876_v27, %v866_v26  ;;  %v935_v56 = vadd.f32 %v933_v41, %v923_v39 }
 0x2df   :  { %597 = vrot.lane.b32.xlu1 %v593_v21, %s2552_s6  ;;  %v968_v21 = vadd.f32 %v966_v55, %v956_v43  ;;  %v2563_v44 = vmov 75   ;;  %v2564_v4 = vmov 61  }
 0x2e0   :  { %v993_v24 = vadd.f32 %v991_v3, %v981_v60  ;;  %v707_v16 = vadd.f32 %v705_v20, %v695_v13 }
 0x2e1   :  { %v258_v38 = vpop.permute.xlu1 %257  ;;  %v980_v58 = vadd.f32 %v978_v54, %v968_v21 }
 0x2e2   :  { %263 = vst.msk [vmem:[#allocation3 + $0x8] sm:$0xff] %vm261_vm7, %v258_v38  ;;  %998 = vrot.lane.b32.xlu0 %v993_v24, %s2558_s2 }
 0x2e3   :  { %654 = vrot.lane.b32.xlu1 %v650_v25, %s2543_s19  ;;  %320 = vst.msk [vmem:[#allocation3 + $0x8] sm:$0xff] %vm318_vm8, %v315_v12  ;;  %v992_v19 = vadd.f32 %v990_v51, %v980_v58 }
 0x2e5   :  { %v372_v34 = vpop.permute.xlu1 %371 }
 0x2e6   :  { %377 = vst.msk [vmem:[#allocation3 + $0x8] sm:$0xff] %vm375_vm9, %v372_v34  ;;  %1026 = vperm.xlu0 %2353, %v3314_v2  }
 0x2e7   :  { %711 = vrot.lane.b32.xlu1 %v707_v16, %s2553_s7  ;;  %434 = vst.msk [vmem:[#allocation3 + $0x8] sm:$0xff] %vm432_vm10, %v429_v50 }
 0x2e9   :  { %v486_v52 = vpop.permute.xlu1 %485 }
 0x2ea   :  { %491 = vst.msk [vmem:[#allocation3 + $0x8] sm:$0xff] %vm489_vm11, %v486_v52  ;;  %2355 = vset.pattern.permute.xlu0 %v2559_v1 }
 0x2eb   :  { %768 = vrot.lane.b32.xlu1 %v764_v32, %s2554_s8  ;;  %1044 = vperm.xlu0 %2355, %v3333_v62   ;;  %548 = vst.msk [vmem:[#allocation3 + $0x8] sm:$0xff] %vm546_vm12, %v543_v48  ;;  %v3396_v48 = vld [vmem:[%s3928_s1 + $0x58] sm:$0xff]  ;;  %v3401_v32 = vld [vmem:[%s3928_s1 + $0x48] sm:$0xff] }
 0x2ed   :  { %v600_v14 = vpop.permute.xlu1 %599 }
 0x2ee   :  { %605 = vst.msk [vmem:[#allocation3 + $0x8] sm:$0xff] %vm603_vm13, %v600_v14 }
 0x2ef   :  { %825 = vrot.lane.b32.xlu1 %v821_v42, %s2555_s9  ;;  %2358 = vset.pattern.permute.xlu0 %v2560_v9  ;;  %662 = vst.msk [vmem:[#allocation3 + $0x8] sm:$0xff] %vm660_vm14, %v657_v31 }
 0x2f0   :  { %1060 = vperm.xlu0 %2358, %v3314_v2  }
 0x2f1   :  { %v714_v12 = vpop.permute.xlu1 %713 }
 0x2f2   :  { %719 = vst.msk [vmem:[#allocation3 + $0x8] sm:$0xff] %vm717_vm15, %v714_v12 }
 0x2f3   :  { %882 = vrot.lane.b32.xlu1 %v878_v8, %s2556_s10  ;;  %v771_v15 = vpop.permute.xlu0 %770 }
 0x2f4   :  { %776 = vst.msk [vmem:[#allocation3 + $0x8] sm:$0xff] %vm774_vm0, %v771_v15  ;;  %2360 = vset.pattern.permute.xlu0 %v2561_v59 }
 0x2f5   :  { %1084 = vperm.xlu0 %2360, %v3333_v62  }
 0x2f7   :  { %939 = vrot.lane.b32.xlu1 %v935_v56, %s2557_s0 }
 0x2f9   :  { %2363 = vset.pattern.permute.xlu0 %v2562_v5 }
 0x2fa   :  { %1100 = vperm.xlu0 %2363, %v3314_v2  }
 0x2fb   :  { %996 = vrot.lane.b32.xlu1 %v992_v19, %s2558_s2 }
 0x2fe   :  { %2365 = vset.pattern.permute.xlu0 %v2566_v18 }
 0x2ff   :  { %1021 = vperm.xlu1 %2352, %v3333_v62  }
 0x303   :  { %2354 = vset.pattern.permute.xlu1 %v2563_v44 }
 0x304   :  { %1032 = vperm.xlu1 %2354, %v3333_v62  }
 0x308   :  { %1036 = vperm.xlu1 %2354, %v3314_v2  }
 0x309   :  { %v828_v60 = vpop.permute.xlu1 %827 }
 0x30a   :  { %833 = vst.msk [vmem:[#allocation3 + $0x8] sm:$0xff] %vm831_vm1, %v828_v60 }
 0x30c   :  { %2356 = vset.pattern.permute.xlu1 %v2559_v1 }
 0x30d   :  { %1048 = vperm.xlu1 %2356, %v3314_v2  }
 0x311   :  { %2357 = vset.pattern.permute.xlu1 %v2560_v9  ;;  %v3437_v9 = vld [vmem:[%s3928_s1 + $0x70] sm:$0xff] }
 0x312   :  { %1056 = vperm.xlu1 %2357, %v3333_v62  }
 0x316   :  { %2359 = vset.pattern.permute.xlu1 %v2564_v4 }
 0x317   :  { %1074 = vperm.xlu1 %2359, %v3333_v62  }
 0x31b   :  { %1078 = vperm.xlu1 %2359, %v3314_v2  }
 0x31f   :  { %2361 = vset.pattern.permute.xlu1 %v2561_v59 }
 0x320   :  { %1088 = vperm.xlu1 %2361, %v3314_v2  }
 0x324   :  { %2362 = vset.pattern.permute.xlu1 %v2562_v5  ;;  %v885_v40 = vpop.permute.xlu0 %884 }
 0x325   :  { %890 = vst.msk [vmem:[#allocation3 + $0x8] sm:$0xff] %vm888_vm2, %v885_v40  ;;  %1096 = vperm.xlu1 %2362, %v3333_v62  }
 0x328   :  { %v256_v3 = vpop.permute.xlu0 %255 }
 0x329   :  { %262 = vst.msk [vmem:[#allocation3] sm:$0xff] %vm261_vm7, %v256_v3  ;;  %2364 = vset.pattern.permute.xlu1 %v2565_v11 }
 0x32a   :  { %1108 = vperm.xlu1 %2364, %v3333_v62  }
 0x32e   :  { %1112 = vperm.xlu1 %2364, %v3314_v2  }
 0x332   :  { %2366 = vset.pattern.permute.xlu1 %v2566_v18 }
 0x339   :  { %v942_v45 = vpop.permute.xlu1 %941 }
 0x33a   :  { %947 = vst.msk [vmem:[#allocation3 + $0x8] sm:$0xff] %vm945_vm3, %v942_v45 }
 0x33d   :  { %v313_v0 = vpop.permute.xlu1 %312 }
 0x33e   :  { %319 = vst.msk [vmem:[#allocation3] sm:$0xff] %vm318_vm8, %v313_v0 }
 0x341   :  { %v370_v24 = vpop.permute.xlu1 %369 }
 0x342   :  { %376 = vst.msk [vmem:[#allocation3] sm:$0xff] %vm375_vm9, %v370_v24 }
 0x345   :  { %v427_v25 = vpop.permute.xlu1 %426 }
 0x346   :  { %433 = vst.msk [vmem:[#allocation3] sm:$0xff] %vm432_vm10, %v427_v25 }
 0x349   :  { %v484_v13 = vpop.permute.xlu1 %483 }
 0x34a   :  { %490 = vst.msk [vmem:[#allocation3] sm:$0xff] %vm489_vm11, %v484_v13 }
 0x34d   :  { %v541_v20 = vpop.permute.xlu1 %540 }
 0x34e   :  { %547 = vst.msk [vmem:[#allocation3] sm:$0xff] %vm546_vm12, %v541_v20 }
 0x351   :  { %v598_v35 = vpop.permute.xlu1 %597 }
 0x352   :  { %604 = vst.msk [vmem:[#allocation3] sm:$0xff] %vm603_vm13, %v598_v35 }
 0x354   :  { %v999_v38 = vpop.permute.xlu0 %998 }
 0x355   :  { %1004 = vst.msk [vmem:[#allocation3 + $0x8] sm:$0xff] %vm1002_vm4, %v999_v38  ;;  %v655_v50 = vpop.permute.xlu1 %654 }
 0x356   :  { %661 = vst.msk [vmem:[#allocation3] sm:$0xff] %vm660_vm14, %v655_v50 }
 0x359   :  { %v712_v49 = vpop.permute.xlu1 %711 }
 0x35a   :  { %718 = vst.msk [vmem:[#allocation3] sm:$0xff] %vm717_vm15, %v712_v49  ;;  %v2567_v49 = vmov 77  }
 0x35c   :  { %v1068_v8 = vld [vmem:[#allocation3 + $0x8] sm:$0xff] }
 0x35d   :  { %v769_v33 = vpop.permute.xlu1 %768 }
 0x35e   :  { %775 = vst.msk [vmem:[#allocation3] sm:$0xff] %vm774_vm0, %v769_v33  ;;  %v2568_v33 = vmov 107  }
 0x361   :  { %v826_v16 = vpop.permute.xlu1 %825  ;;  %v1027_v57 = vpop.permute.xlu0 %1026 }
 0x362   :  { %832 = vst.msk [vmem:[#allocation3] sm:$0xff] %vm831_vm1, %v826_v16  ;;  %v1030_v1 = vmul.f32 %v3401_v32, %v1027_v57  ;;  %v2569_v16 = vmov 92   ;;  %v2574_v57 = vmov 64  }
 0x365   :  { %v883_v6 = vpop.permute.xlu1 %882 }
 0x366   :  { %889 = vst.msk [vmem:[#allocation3] sm:$0xff] %vm888_vm2, %v883_v6  ;;  %v1045_v17 = vpop.permute.xlu0 %1044  ;;  %v2570_v6 = vmov 78  }
 0x367   :  { %v1051_v61 = vmul.f32 %v3430_v7, %v1045_v17  ;;  %v2576_v17 = vmov 65  }
 0x369   :  { %v940_v29 = vpop.permute.xlu1 %939 }
 0x36a   :  { %946 = vst.msk [vmem:[#allocation3] sm:$0xff] %vm945_vm3, %v940_v29  ;;  %v2571_v29 = vmov 93  }
 0x36b   :  { %v1061_v46 = vpop.permute.xlu0 %1060 }
 0x36c   :  { %v1064_v10 = vmul.f32 %v3419_v53, %v1061_v46  ;;  %v2581_v46 = vmov 96  }
 0x36d   :  { %v997_v34 = vpop.permute.xlu1 %996 }
 0x36e   :  { %1003 = vst.msk [vmem:[#allocation3] sm:$0xff] %vm1002_vm4, %v997_v34  ;;  %v2572_v34 = vmov 108  }
 0x370   :  { %v1085_v51 = vpop.permute.xlu0 %1084 }
 0x371   :  { %v1091_v44 = vmul.f32 %v3406_v47, %v1085_v51  ;;  %v2595_v51 = vmov 82  }
 0x375   :  { %v1067_v21 = vld [vmem:[#allocation3] sm:$0xff]  ;;  %v1101_v11 = vpop.permute.xlu0 %1100 }
 0x376   :  { %v1104_v25 = vmul.f32 %v3424_v37, %v1101_v11 }
 0x37a   :  { %v1022_v36 = vpop.permute.xlu1 %1021 }
 0x37b   :  { %v1029_v42 = vmul.f32 %v3411_v30, %v1022_v36  ;;  %v2573_v36 = vmov 63  }
 0x37f   :  { %v1033_v23 = vpop.permute.xlu1 %1032 }
 0x380   :  { %v1039_v52 = vmul.f32 %v3406_v47, %v1033_v23  ;;  %v2575_v23 = vmov 94  }
 0x382   :  { %v1041_v27 = vadd.f32 %v1039_v52, %v1029_v42  ;;  %v2579_v52 = vmov 81   ;;  %v2582_v42 = vmov 111  }
 0x383   :  { %v1037_v28 = vpop.permute.xlu1 %1036 }
 0x384   :  { %v1040_v22 = vmul.f32 %v3396_v48, %v1037_v28  ;;  %v1053_v41 = vadd.f32 %v1051_v61, %v1041_v27  ;;  %v2577_v28 = vmov 80   ;;  %v2586_v27 = vmov 68  }
 0x385   :  { %v2589_v61 = vmov 95  }
 0x386   :  { %v1042_v14 = vadd.f32 %v1040_v22, %v1030_v1  ;;  %v2578_v22 = vmov 110   ;;  %v2580_v1 = vmov 79  }
 0x388   :  { %v1049_v26 = vpop.permute.xlu1 %1048 }
 0x389   :  { %v1052_v31 = vmul.f32 %v3424_v37, %v1049_v26  ;;  %v2583_v26 = vmov 67  }
 0x38b   :  { %v1054_v55 = vadd.f32 %v1052_v31, %v1042_v14  ;;  %v2584_v14 = vmov 109   ;;  %v2585_v31 = vmov 97  }
 0x38d   :  { %v1066_v63 = vadd.f32 %v1064_v10, %v1054_v55  ;;  %v1057_v43 = vpop.permute.xlu1 %1056  ;;  %v2587_v10 = vmov 83   ;;  %v2588_v55 = vmov 113  }
 0x38e   :  { %v1063_v54 = vmul.f32 %v3437_v9, %v1057_v43  ;;  %v2591_v43 = vmov 99  }
 0x38f   :  { %v1070_v12 = vadd.f32 %v1068_v8, %v1066_v63  ;;  %v2590_v63 = vmov 84   ;;  %v2592_v8 = vmov 66  }
 0x390   :  { %v1065_v39 = vadd.f32 %v1063_v54, %v1053_v41  ;;  %v2593_v41 = vmov 114  }
 0x391   :  { %1072 = vst.msk [vmem:[#allocation3 + $0x8] sm:$0xff] %vm204_vm6, %v1070_v12 }
 0x392   :  { %v1069_v15 = vadd.f32 %v1067_v21, %v1065_v39  ;;  %v1075_v59 = vpop.permute.xlu1 %1074  ;;  %v2594_v21 = vmov 85  }
 0x393   :  { %v1081_v19 = vmul.f32 %v3411_v30, %v1075_v59 }
 0x394   :  { %1071 = vst.msk [vmem:[#allocation3] sm:$0xff] %vm204_vm6, %v1069_v15  ;;  %vm1923_vm6 = vcmask 490496  }
 0x395   :  { %v1093_v40 = vadd.f32 %v1091_v44, %v1081_v19 }
 0x396   :  { %v1079_v56 = vpop.permute.xlu1 %1078 }
 0x397   :  { %v1082_v3 = vmul.f32 %v3401_v32, %v1079_v56 }
 0x398   :  { %v1120_v15 = vld [vmem:[#allocation3 + $0x8] sm:$0xff] }
 0x39b   :  { %v1089_v58 = vpop.permute.xlu1 %1088  ;;  %v1119_v54 = vld [vmem:[#allocation3] sm:$0xff] }
 0x39c   :  { %v1092_v60 = vmul.f32 %v3396_v48, %v1089_v58 }
 0x39e   :  { %v1094_v45 = vadd.f32 %v1092_v60, %v1082_v3 }
 0x3a0   :  { %v1097_v5 = vpop.permute.xlu1 %1096  ;;  %v1106_v35 = vadd.f32 %v1104_v25, %v1094_v45 }
 0x3a1   :  { %v1103_v4 = vmul.f32 %v3430_v7, %v1097_v5 }
 0x3a3   :  { %v1105_v0 = vadd.f32 %v1103_v4, %v1093_v40  ;;  %v2596_v4 = vmov 112  }
 0x3a5   :  { %v1109_v18 = vpop.permute.xlu1 %1108 }
 0x3a6   :  { %v1115_v24 = vmul.f32 %v3437_v9, %v1109_v18 }
 0x3a8   :  { %v1117_v13 = vadd.f32 %v1115_v24, %v1105_v0 }
 0x3a9   :  { %v1113_v20 = vpop.permute.xlu1 %1112 }
 0x3aa   :  { %v1116_v38 = vmul.f32 %v3419_v53, %v1113_v20  ;;  %1123 = vrot.lane.b32.xlu0 %v1117_v13, %s2548_s28  ;;  %v2597_v20 = vmov 98  }
 0x3ac   :  { %v1118_v50 = vadd.f32 %v1116_v38, %v1106_v35 }
 0x3ae   :  { %1134 = vperm.xlu0 %2365, %v3333_v62   ;;  %1125 = vrot.lane.b32.xlu1 %v1118_v50, %s2548_s28 }
 0x3b2   :  { %2368 = vset.pattern.permute.xlu0 %v2567_v49  ;;  %1138 = vperm.xlu1 %2366, %v3314_v2  }
 0x3b3   :  { %1148 = vperm.xlu0 %2368, %v3314_v2  }
 0x3b6   :  { %2367 = vset.pattern.permute.xlu1 %v2567_v49 }
 0x3b7   :  { %2370 = vset.pattern.permute.xlu0 %v2568_v33  ;;  %1144 = vperm.xlu1 %2367, %v3333_v62  }
 0x3b8   :  { %1168 = vperm.xlu0 %2370, %v3333_v62  }
 0x3bb   :  { %2369 = vset.pattern.permute.xlu1 %v2569_v16 }
 0x3bc   :  { %2373 = vset.pattern.permute.xlu0 %v2570_v6  ;;  %1156 = vperm.xlu1 %2369, %v3333_v62  }
 0x3bd   :  { %1204 = vperm.xlu0 %2373, %v3333_v62  }
 0x3c0   :  { %1160 = vperm.xlu1 %2369, %v3314_v2  }
 0x3c1   :  { %2375 = vset.pattern.permute.xlu0 %v2571_v29 }
 0x3c2   :  { %1216 = vperm.xlu0 %2375, %v3333_v62  }
 0x3c4   :  { %2371 = vset.pattern.permute.xlu1 %v2568_v33 }
 0x3c5   :  { %1172 = vperm.xlu1 %2371, %v3314_v2  }
 0x3c6   :  { %2378 = vset.pattern.permute.xlu0 %v2572_v34 }
 0x3c7   :  { %1232 = vperm.xlu0 %2378, %v3314_v2  }
 0x3c9   :  { %2372 = vset.pattern.permute.xlu1 %v2573_v36 }
 0x3ca   :  { %1194 = vperm.xlu1 %2372, %v3333_v62  }
 0x3cb   :  { %2381 = vset.pattern.permute.xlu0 %v2574_v57 }
 0x3cc   :  { %1258 = vperm.xlu0 %2381, %v3314_v2  }
 0x3ce   :  { %1198 = vperm.xlu1 %2372, %v3314_v2  }
 0x3d0   :  { %2383 = vset.pattern.permute.xlu0 %v2575_v23 }
 0x3d1   :  { %1280 = vperm.xlu0 %2383, %v3314_v2  }
 0x3d2   :  { %2374 = vset.pattern.permute.xlu1 %v2570_v6 }
 0x3d3   :  { %1208 = vperm.xlu1 %2374, %v3314_v2  }
 0x3d5   :  { %2385 = vset.pattern.permute.xlu0 %v2576_v17 }
 0x3d6   :  { %1314 = vperm.xlu0 %2385, %v3333_v62  }
 0x3d7   :  { %2376 = vset.pattern.permute.xlu1 %v2571_v29 }
 0x3d8   :  { %1220 = vperm.xlu1 %2376, %v3314_v2  }
 0x3da   :  { %2388 = vset.pattern.permute.xlu0 %v2577_v28 }
 0x3db   :  { %1328 = vperm.xlu0 %2388, %v3314_v2  }
 0x3dc   :  { %2377 = vset.pattern.permute.xlu1 %v2572_v34 }
 0x3dd   :  { %1228 = vperm.xlu1 %2377, %v3333_v62  }
 0x3df   :  { %2390 = vset.pattern.permute.xlu0 %v2578_v22 }
 0x3e0   :  { %1348 = vperm.xlu0 %2390, %v3333_v62  }
 0x3e1   :  { %2379 = vset.pattern.permute.xlu1 %v2574_v57 }
 0x3e2   :  { %1254 = vperm.xlu1 %2379, %v3333_v62  }
 0x3e4   :  { %2393 = vset.pattern.permute.xlu0 %v2579_v52 }
 0x3e5   :  { %1384 = vperm.xlu0 %2393, %v3333_v62  }
 0x3e6   :  { %2380 = vset.pattern.permute.xlu1 %v2580_v1 }
 0x3e7   :  { %1264 = vperm.xlu1 %2380, %v3333_v62  }
 0x3e9   :  { %2395 = vset.pattern.permute.xlu0 %v2581_v46 }
 0x3ea   :  { %1396 = vperm.xlu0 %2395, %v3333_v62  }
 0x3eb   :  { %1268 = vperm.xlu1 %2380, %v3314_v2  }
 0x3ee   :  { %2398 = vset.pattern.permute.xlu0 %v2582_v42 }
 0x3ef   :  { %1412 = vperm.xlu0 %2398, %v3314_v2   ;;  %2382 = vset.pattern.permute.xlu1 %v2575_v23 }
 0x3f0   :  { %1276 = vperm.xlu1 %2382, %v3333_v62  }
 0x3f3   :  { %2401 = vset.pattern.permute.xlu0 %v2583_v26 }
 0x3f4   :  { %1438 = vperm.xlu0 %2401, %v3314_v2   ;;  %2384 = vset.pattern.permute.xlu1 %v2584_v14 }
 0x3f5   :  { %1288 = vperm.xlu1 %2384, %v3333_v62  }
 0x3f8   :  { %2403 = vset.pattern.permute.xlu0 %v2585_v31 }
 0x3f9   :  { %1460 = vperm.xlu0 %2403, %v3314_v2   ;;  %1292 = vperm.xlu1 %2384, %v3314_v2  }
 0x3fd   :  { %2405 = vset.pattern.permute.xlu0 %v2586_v27  ;;  %2386 = vset.pattern.permute.xlu1 %v2577_v28 }
 0x3fe   :  { %1494 = vperm.xlu0 %2405, %v3333_v62   ;;  %1324 = vperm.xlu1 %2386, %v3333_v62  }
 0x402   :  { %2408 = vset.pattern.permute.xlu0 %v2587_v10  ;;  %2387 = vset.pattern.permute.xlu1 %v2576_v17 }
 0x403   :  { %1508 = vperm.xlu0 %2408, %v3314_v2   ;;  %1318 = vperm.xlu1 %2387, %v3314_v2  }
 0x407   :  { %2410 = vset.pattern.permute.xlu0 %v2588_v55  ;;  %2389 = vset.pattern.permute.xlu1 %v2589_v61 }
 0x408   :  { %1528 = vperm.xlu0 %2410, %v3333_v62   ;;  %1336 = vperm.xlu1 %2389, %v3333_v62  }
 0x40c   :  { %2413 = vset.pattern.permute.xlu0 %v2590_v63  ;;  %1340 = vperm.xlu1 %2389, %v3314_v2  }
 0x40d   :  { %1564 = vperm.xlu0 %2413, %v3333_v62  }
 0x410   :  { %2391 = vset.pattern.permute.xlu1 %v2578_v22  ;;  %v2598_v22 = vmov 69  }
 0x411   :  { %1568 = vperm.xlu0 %2413, %v3314_v2   ;;  %1352 = vperm.xlu1 %2391, %v3314_v2  }
 0x415   :  { %2414 = vset.pattern.permute.xlu0 %v2591_v43  ;;  %2392 = vset.pattern.permute.xlu1 %v2592_v8 }
 0x416   :  { %1576 = vperm.xlu0 %2414, %v3333_v62   ;;  %1374 = vperm.xlu1 %2392, %v3333_v62  }
 0x41a   :  { %2417 = vset.pattern.permute.xlu0 %v2593_v41  ;;  %1378 = vperm.xlu1 %2392, %v3314_v2  }
 0x41b   :  { %1592 = vperm.xlu0 %2417, %v3314_v2  }
 0x41c   :  { %v1124_v12 = vpop.permute.xlu0 %1123 }
 0x41d   :  { %v1129_v39 = vadd.f32 %v1124_v12, %v1119_v54  ;;  %v2600_v54 = vmov 71  }
 0x41e   :  { %2394 = vset.pattern.permute.xlu1 %v2579_v52 }
 0x41f   :  { %1131 = vst.msk [vmem:[#allocation3] sm:$0xff] %vm261_vm7, %v1129_v39  ;;  %1388 = vperm.xlu1 %2394, %v3314_v2   ;;  %2421 = vset.pattern.permute.xlu0 %v2594_v21 }
 0x420   :  { %v1126_v59 = vpop.permute.xlu1 %1125 }
 0x421   :  { %v1130_v56 = vadd.f32 %v1126_v59, %v1120_v15 }
 0x423   :  { %1132 = vst.msk [vmem:[#allocation3 + $0x8] sm:$0xff] %vm261_vm7, %v1130_v56  ;;  %2396 = vset.pattern.permute.xlu1 %v2581_v46 }
 0x424   :  { %1400 = vperm.xlu1 %2396, %v3314_v2  }
 0x428   :  { %2397 = vset.pattern.permute.xlu1 %v2582_v42 }
 0x429   :  { %1408 = vperm.xlu1 %2397, %v3333_v62   ;;  %v1135_v60 = vpop.permute.xlu0 %1134 }
 0x42a   :  { %v1141_v36 = vmul.f32 %v3411_v30, %v1135_v60 }
 0x42d   :  { %2399 = vset.pattern.permute.xlu1 %v2583_v26  ;;  %v1139_v58 = vpop.permute.xlu1 %1138 }
 0x42e   :  { %1434 = vperm.xlu1 %2399, %v3333_v62   ;;  %v1149_v3 = vpop.permute.xlu0 %1148  ;;  %v1142_v46 = vmul.f32 %v3401_v32, %v1139_v58 }
 0x42f   :  { %v1152_v42 = vmul.f32 %v3396_v48, %v1149_v3  ;;  %v2602_v3 = vmov 70  }
 0x432   :  { %2400 = vset.pattern.permute.xlu1 %v2595_v51  ;;  %v1145_v19 = vpop.permute.xlu1 %1144 }
 0x433   :  { %1444 = vperm.xlu1 %2400, %v3333_v62   ;;  %v1169_v18 = vpop.permute.xlu0 %1168  ;;  %v1151_v29 = vmul.f32 %v3406_v47, %v1145_v19 }
 0x434   :  { %v1175_v52 = vmul.f32 %v3437_v9, %v1169_v18 }
 0x435   :  { %v1153_v17 = vadd.f32 %v1151_v29, %v1141_v36 }
 0x437   :  { %1448 = vperm.xlu1 %2400, %v3314_v2   ;;  %v1157_v5 = vpop.permute.xlu1 %1156 }
 0x438   :  { %v1205_v0 = vpop.permute.xlu0 %1204  ;;  %v1163_v57 = vmul.f32 %v3430_v7, %v1157_v5  ;;  %v2601_v5 = vmov 101  }
 0x439   :  { %v1211_v13 = vmul.f32 %v3406_v47, %v1205_v0 }
 0x43a   :  { %v1165_v28 = vadd.f32 %v1163_v57, %v1153_v17 }
 0x43b   :  { %2402 = vset.pattern.permute.xlu1 %v2585_v31  ;;  %v1161_v44 = vpop.permute.xlu1 %1160  ;;  %v2599_v31 = vmov 100  }
 0x43c   :  { %1456 = vperm.xlu1 %2402, %v3333_v62   ;;  %v1177_v26 = vadd.f32 %v1175_v52, %v1165_v28  ;;  %v2605_v52 = vmov 115  }
 0x43d   :  { %v1217_v38 = vpop.permute.xlu0 %1216 }
 0x43e   :  { %v1223_v49 = vmul.f32 %v3430_v7, %v1217_v38 }
 0x440   :  { %2404 = vset.pattern.permute.xlu1 %v2596_v4  ;;  %v1173_v40 = vpop.permute.xlu1 %1172 }
 0x441   :  { %1468 = vperm.xlu1 %2404, %v3333_v62   ;;  %v1176_v61 = vmul.f32 %v3419_v53, %v1173_v40 }
 0x442   :  { %v1233_v14 = vpop.permute.xlu0 %1232 }
 0x445   :  { %1472 = vperm.xlu1 %2404, %v3314_v2   ;;  %v1195_v11 = vpop.permute.xlu1 %1194 }
 0x446   :  { %v1201_v25 = vmul.f32 %v3411_v30, %v1195_v11 }
 0x447   :  { %v1259_v8 = vpop.permute.xlu0 %1258 }
 0x448   :  { %v1213_v50 = vadd.f32 %v1211_v13, %v1201_v25  ;;  %v1262_v59 = vmul.f32 %v3401_v32, %v1259_v8  ;;  %v2603_v13 = vmov 72  }
 0x449   :  { %2406 = vset.pattern.permute.xlu1 %v2587_v10  ;;  %v3519_v45 = vpop.permute.xlu1 %1198 }
 0x44a   :  { %1504 = vperm.xlu1 %2406, %v3333_v62   ;;  %v1225_v16 = vadd.f32 %v1223_v49, %v1213_v50 }
 0x44c   :  { %v1281_v56 = vpop.permute.xlu0 %1280 }
 0x44d   :  { %v1284_v19 = vmul.f32 %v3424_v37, %v1281_v56 }
 0x44e   :  { %2407 = vset.pattern.permute.xlu1 %v2586_v27  ;;  %v3523_v24 = vpop.permute.xlu1 %1208  ;;  %v1164_v27 = vmul.f32 %v3424_v37, %v1161_v44 }
 0x44f   :  { %1498 = vperm.xlu1 %2407, %v3314_v2   ;;  %v1212_v11 = vmul.f32 %v3396_v48, %v3523_v24 }
 0x451   :  { %v3580_v0 = vpop.permute.xlu0 %1314 }
 0x453   :  { %2409 = vset.pattern.permute.xlu1 %v2597_v20  ;;  %v3528_v35 = vpop.permute.xlu1 %1220 }
 0x454   :  { %1516 = vperm.xlu1 %2409, %v3333_v62   ;;  %v1224_v25 = vmul.f32 %v3424_v37, %v3528_v35 }
 0x456   :  { %v1329_v50 = vpop.permute.xlu0 %1328 }
 0x458   :  { %1520 = vperm.xlu1 %2409, %v3314_v2   ;;  %v1229_v33 = vpop.permute.xlu1 %1228 }
 0x459   :  { %v1235_v6 = vmul.f32 %v3437_v9, %v1229_v33  ;;  %v1332_v33 = vmul.f32 %v3396_v48, %v1329_v50 }
 0x45b   :  { %v1237_v34 = vadd.f32 %v1235_v6, %v1225_v16  ;;  %v2604_v6 = vmov 102   ;;  %v3598_v36 = vpop.permute.xlu0 %1348 }
 0x45c   :  { %2411 = vset.pattern.permute.xlu1 %v2588_v55  ;;  %v1154_v55 = vadd.f32 %v1152_v42, %v1142_v46 }
 0x45d   :  { %1532 = vperm.xlu1 %2411, %v3314_v2   ;;  %v3539_v23 = vpop.permute.xlu1 %1254  ;;  %1243 = vrot.lane.b32.xlu0 %v1237_v34, %s2550_s29 }
 0x45e   :  { %v1166_v63 = vadd.f32 %v1164_v27, %v1154_v55 }
 0x460   :  { %v1178_v39 = vadd.f32 %v1176_v61, %v1166_v63  ;;  %v3605_v46 = vpop.permute.xlu0 %1384 }
 0x461   :  { %2412 = vset.pattern.permute.xlu1 %v2598_v22  ;;  %1628 = vperm.xlu0 %2421, %v3314_v2  }
 0x462   :  { %1554 = vperm.xlu1 %2412, %v3333_v62   ;;  %v3545_v1 = vpop.permute.xlu1 %1264 }
 0x465   :  { %2423 = vset.pattern.permute.xlu0 %v2599_v31  ;;  %v3616_v27 = vpop.permute.xlu0 %1396 }
 0x466   :  { %v1269_v10 = vpop.permute.xlu1 %1268  ;;  %1183 = vrot.lane.b32.xlu1 %v1177_v26, %s2540_s16  ;;  %1640 = vperm.xlu0 %2423, %v3314_v2   ;;  %v1271_v26 = vmul.f32 %v3406_v47, %v3545_v1  ;;  %v2607_v1 = vmov 86  }
 0x467   :  { %v1272_v15 = vmul.f32 %v3396_v48, %v1269_v10  ;;  %v2606_v10 = vmov 73  }
 0x469   :  { %v1274_v51 = vadd.f32 %v1272_v15, %v1262_v59 }
 0x46a   :  { %1558 = vperm.xlu1 %2412, %v3314_v2   ;;  %2425 = vset.pattern.permute.xlu0 %v2600_v54 }
 0x46b   :  { %v3555_v12 = vpop.permute.xlu1 %1276  ;;  %1674 = vperm.xlu0 %2425, %v3333_v62   ;;  %v1286_v60 = vadd.f32 %v1284_v19, %v1274_v51  ;;  %v2608_v19 = vmov 103  }
 0x46e   :  { %1185 = vrot.lane.b32.xlu1 %v1178_v39, %s2540_s16  ;;  %v1413_v39 = vpop.permute.xlu0 %1412 }
 0x46f   :  { %1678 = vperm.xlu0 %2425, %v3314_v2   ;;  %2415 = vset.pattern.permute.xlu1 %v2591_v43 }
 0x470   :  { %v3563_v58 = vpop.permute.xlu1 %1288 }
 0x471   :  { %v1295_v61 = vmul.f32 %v3437_v9, %v3563_v58  ;;  %v1416_v58 = vmul.f32 %v3419_v53, %v1413_v39 }
 0x472   :  { %1580 = vperm.xlu1 %2415, %v3314_v2  }
 0x473   :  { %2428 = vset.pattern.permute.xlu0 %v2601_v5 }
 0x474   :  { %v1293_v44 = vpop.permute.xlu1 %1292 }
 0x475   :  { %v1296_v4 = vmul.f32 %v3419_v53, %v1293_v44 }
 0x476   :  { %2416 = vset.pattern.permute.xlu1 %v2593_v41  ;;  %v1202_v41 = vmul.f32 %v3401_v32, %v3519_v45  ;;  %v1236_v45 = vmul.f32 %v3419_v53, %v1233_v14  ;;  %v1261_v14 = vmul.f32 %v3411_v30, %v3539_v23 }
 0x477   :  { %v1298_v40 = vadd.f32 %v1296_v4, %v1286_v60  ;;  %1588 = vperm.xlu1 %2416, %v3333_v62   ;;  %v1439_v4 = vpop.permute.xlu0 %1438 }
 0x478   :  { %v1214_v20 = vadd.f32 %v1212_v11, %v1202_v41  ;;  %v1273_v55 = vadd.f32 %v1271_v26, %v1261_v14  ;;  %v2609_v11 = vmov 116   ;;  %v2610_v41 = vmov 74  }
 0x479   :  { %v3571_v43 = vpop.permute.xlu1 %1324  ;;  %1305 = vrot.lane.b32.xlu0 %v1298_v40, %s2541_s17 }
 0x47a   :  { %v1226_v24 = vadd.f32 %v1224_v25, %v1214_v20  ;;  %v1331_v25 = vmul.f32 %v3406_v47, %v3571_v43  ;;  %v1355_v43 = vmul.f32 %v3437_v9, %v3598_v36 }
 0x47b   :  { %2418 = vset.pattern.permute.xlu1 %v2602_v3 }
 0x47c   :  { %1614 = vperm.xlu1 %2418, %v3333_v62   ;;  %v1238_v49 = vadd.f32 %v1236_v45, %v1226_v24 }
 0x47d   :  { %1700 = vperm.xlu0 %2428, %v3314_v2  }
 0x47e   :  { %v1319_v18 = vpop.permute.xlu1 %1318 }
 0x480   :  { %2419 = vset.pattern.permute.xlu1 %v2594_v21  ;;  %v1322_v21 = vmul.f32 %v3401_v32, %v1319_v18 }
 0x481   :  { %1624 = vperm.xlu1 %2419, %v3333_v62   ;;  %2430 = vset.pattern.permute.xlu0 %v2603_v13 }
 0x482   :  { %1734 = vperm.xlu0 %2430, %v3333_v62   ;;  %v1334_v29 = vadd.f32 %v1332_v33, %v1322_v21  ;;  %v2611_v21 = vmov 87  }
 0x483   :  { %v3587_v38 = vpop.permute.xlu1 %1336 }
 0x484   :  { %v1343_v13 = vmul.f32 %v3430_v7, %v3587_v38 }
 0x485   :  { %2420 = vset.pattern.permute.xlu1 %v2602_v3  ;;  %v1461_v3 = vpop.permute.xlu0 %1460 }
 0x486   :  { %1618 = vperm.xlu1 %2420, %v3314_v2   ;;  %1738 = vperm.xlu0 %2430, %v3314_v2  }
 0x487   :  { %v1341_v35 = vpop.permute.xlu1 %1340 }
 0x488   :  { %v1344_v16 = vmul.f32 %v3424_v37, %v1341_v35 }
 0x489   :  { %v1495_v45 = vpop.permute.xlu0 %1494 }
 0x48a   :  { %1245 = vrot.lane.b32.xlu1 %v1238_v49, %s2550_s29  ;;  %2433 = vset.pattern.permute.xlu0 %v2604_v6  ;;  %v1346_v57 = vadd.f32 %v1344_v16, %v1334_v29 }
 0x48b   :  { %2422 = vset.pattern.permute.xlu1 %v2599_v31  ;;  %v1283_v31 = vmul.f32 %v3430_v7, %v3555_v12 }
 0x48c   :  { %v1353_v34 = vpop.permute.xlu1 %1352 }
 0x48d   :  { %v1356_v17 = vmul.f32 %v3419_v53, %v1353_v34  ;;  %v1285_v8 = vadd.f32 %v1283_v31, %v1273_v55  ;;  %v3656_v38 = vpop.permute.xlu0 %1508  ;;  %v1464_v34 = vmul.f32 %v3424_v37, %v1461_v3  ;;  %v2613_v31 = vmov 117  }
 0x48e   :  { %1636 = vperm.xlu1 %2422, %v3333_v62  }
 0x48f   :  { %v1358_v28 = vadd.f32 %v1356_v17, %v1346_v57  ;;  %v1297_v23 = vadd.f32 %v1295_v61, %v1285_v8  ;;  %v3664_v57 = vld [vmem:[#allocation2 + $0x8] sm:$0xff]  ;;  %v1391_v61 = vmul.f32 %v3406_v47, %v3605_v46  ;;  %v1501_v8 = vmul.f32 %v3411_v30, %v1495_v45 }
 0x491   :  { %v3602_v22 = vpop.permute.xlu1 %1374  ;;  %1365 = vrot.lane.b32.xlu0 %v1358_v28, %s2551_s30  ;;  %v1529_v36 = vpop.permute.xlu0 %1528 }
 0x492   :  { %2424 = vset.pattern.permute.xlu1 %v2605_v52 }
 0x493   :  { %1648 = vperm.xlu1 %2424, %v3333_v62  }
 0x495   :  { %v1379_v42 = vpop.permute.xlu1 %1378  ;;  %1760 = vperm.xlu0 %2433, %v3314_v2   ;;  %v3672_v26 = vpop.permute.xlu0 %1564 }
 0x496   :  { %v1382_v12 = vmul.f32 %v3401_v32, %v1379_v42  ;;  %v3669_v42 = vld [vmem:[#allocation2] sm:$0xff] }
 0x497   :  { %1652 = vperm.xlu1 %2424, %v3314_v2  }
 0x499   :  { %2435 = vset.pattern.permute.xlu0 %v2606_v10  ;;  %v1381_v10 = vmul.f32 %v3411_v30, %v3602_v22  ;;  %v1403_v22 = vmul.f32 %v3430_v7, %v3616_v27 }
 0x49a   :  { %v1389_v63 = vpop.permute.xlu1 %1388  ;;  %1794 = vperm.xlu0 %2435, %v3333_v62  }
 0x49b   :  { %2426 = vset.pattern.permute.xlu1 %v2607_v1  ;;  %v1392_v54 = vmul.f32 %v3396_v48, %v1389_v63  ;;  %v2614_v1 = vmov 119  }
 0x49c   :  { %1684 = vperm.xlu1 %2426, %v3333_v62  }
 0x49d   :  { %v1394_v59 = vadd.f32 %v1392_v54, %v1382_v12  ;;  %v1393_v54 = vadd.f32 %v1391_v61, %v1381_v10 }
 0x49e   :  { %1798 = vperm.xlu0 %2435, %v3314_v2  }
 0x49f   :  { %v1401_v15 = vpop.permute.xlu1 %1400 }
 0x4a0   :  { %v1404_v56 = vmul.f32 %v3424_v37, %v1401_v15  ;;  %1303 = vrot.lane.b32.xlu1 %v1297_v23, %s2541_s17 }
 0x4a2   :  { %v1406_v51 = vadd.f32 %v1404_v56, %v1394_v59  ;;  %2438 = vset.pattern.permute.xlu0 %v2608_v19  ;;  %v2615_v59 = vmov 88   ;;  %v1535_v56 = vmul.f32 %v3437_v9, %v1529_v36 }
 0x4a4   :  { %v1418_v44 = vadd.f32 %v1416_v58, %v1406_v51  ;;  %v3629_v60 = vpop.permute.xlu1 %1408  ;;  %1688 = vperm.xlu1 %2426, %v3314_v2   ;;  %v1405_v58 = vadd.f32 %v1403_v22, %v1393_v54 }
 0x4a5   :  { %v1415_v12 = vmul.f32 %v3437_v9, %v3629_v60 }
 0x4a6   :  { %1425 = vrot.lane.b32.xlu0 %v1418_v44, %s2542_s18 }
 0x4a8   :  { %2427 = vset.pattern.permute.xlu1 %v2601_v5  ;;  %v1321_v5 = vmul.f32 %v3411_v30, %v3580_v0  ;;  %v2612_v0 = vmov 104  }
 0x4a9   :  { %v3634_v40 = vpop.permute.xlu1 %1434  ;;  %1696 = vperm.xlu1 %2427, %v3333_v62  }
 0x4aa   :  { %1820 = vperm.xlu0 %2438, %v3314_v2   ;;  %v1333_v24 = vadd.f32 %v1331_v25, %v1321_v5  ;;  %v1179_v5 = vld [vmem:[#allocation3] sm:$0xff] }
 0x4ac   :  { %v1345_v50 = vadd.f32 %v1343_v13, %v1333_v24  ;;  %v2616_v24 = vmov 118  }
 0x4ad   :  { %2429 = vset.pattern.permute.xlu1 %v2609_v11 }
 0x4ae   :  { %v3638_v18 = vpop.permute.xlu1 %1444  ;;  %1708 = vperm.xlu1 %2429, %v3333_v62   ;;  %2440 = vset.pattern.permute.xlu0 %v2610_v41  ;;  %v1357_v49 = vadd.f32 %v1355_v43, %v1345_v50 }
 0x4af   :  { %1854 = vperm.xlu0 %2440, %v3333_v62  }
 0x4b2   :  { %v1449_v20 = vpop.permute.xlu1 %1448  ;;  %1712 = vperm.xlu1 %2429, %v3314_v2  }
 0x4b3   :  { %1858 = vperm.xlu0 %2440, %v3314_v2   ;;  %v1452_v33 = vmul.f32 %v3396_v48, %v1449_v20  ;;  %v1442_v2 = vmul.f32 %v3401_v32, %v1439_v4  ;;  %v1417_v4 = vadd.f32 %v1415_v12, %v1405_v58  ;;  %v1512_v12 = vmul.f32 %v3396_v48, %v3656_v38 }
 0x4b5   :  { %v1454_v29 = vadd.f32 %v1452_v33, %v1442_v2 }
 0x4b6   :  { %2431 = vset.pattern.permute.xlu1 %v2611_v21  ;;  %v1451_v21 = vmul.f32 %v3406_v47, %v3638_v18 }
 0x4b7   :  { %v3652_v35 = vpop.permute.xlu1 %1456  ;;  %1744 = vperm.xlu1 %2431, %v3333_v62   ;;  %2443 = vset.pattern.permute.xlu0 %v2612_v0  ;;  %v1466_v17 = vadd.f32 %v1464_v34, %v1454_v29 }
 0x4b8   :  { %v1463_v43 = vmul.f32 %v3430_v7, %v3652_v35  ;;  %v1571_v35 = vmul.f32 %v3406_v47, %v3672_v26 }
 0x4bb   :  { %1363 = vrot.lane.b32.xlu1 %v1357_v49, %s2551_s30  ;;  %v1180_v49 = vld [vmem:[#allocation3 + $0x8] sm:$0xff] }
 0x4bc   :  { %v3661_v16 = vpop.permute.xlu1 %1468 }
 0x4bd   :  { %v1475_v34 = vmul.f32 %v3437_v9, %v3661_v16 }
 0x4bf   :  { %1748 = vperm.xlu1 %2431, %v3664_v57  }
 0x4c0   :  { %v1473_v62 = vpop.permute.xlu1 %1472 }
 0x4c1   :  { %v1476_v28 = vmul.f32 %v3419_v53, %v1473_v62 }
 0x4c3   :  { %v1478_v52 = vadd.f32 %v1476_v28, %v1466_v17  ;;  %2432 = vset.pattern.permute.xlu1 %v2604_v6  ;;  %v3681_v6 = vpop.permute.xlu0 %1568  ;;  %v2617_v17 = vmov 89  }
 0x4c4   :  { %1756 = vperm.xlu1 %2432, %v3669_v42  }
 0x4c5   :  { %v1505_v14 = vpop.permute.xlu1 %1504  ;;  %1485 = vrot.lane.b32.xlu0 %v1478_v52, %s2552_s6 }
 0x4c6   :  { %v1511_v63 = vmul.f32 %v3406_v47, %v1505_v14 }
 0x4c7   :  { %v1577_v15 = vpop.permute.xlu0 %1576 }
 0x4c8   :  { %2434 = vset.pattern.permute.xlu1 %v2613_v31  ;;  %v1513_v39 = vadd.f32 %v1511_v63, %v1501_v8 }
 0x4c9   :  { %1768 = vperm.xlu1 %2434, %v3669_v42   ;;  %1880 = vperm.xlu0 %2443, %v3664_v57  }
 0x4ca   :  { %v3679_v55 = vpop.permute.xlu1 %1498 }
 0x4cb   :  { %v3700_v27 = vpop.permute.xlu0 %1592  ;;  %v1502_v22 = vmul.f32 %v3401_v32, %v3679_v55 }
 0x4cd   :  { %1772 = vperm.xlu1 %2434, %v3664_v57   ;;  %2445 = vset.pattern.permute.xlu0 %v2614_v1 }
 0x4cf   :  { %v1517_v23 = vpop.permute.xlu1 %1516  ;;  %v1244_v11 = vpop.permute.xlu0 %1243 }
 0x4d0   :  { %v1523_v46 = vmul.f32 %v3430_v7, %v1517_v23 }
 0x4d1   :  { %2436 = vset.pattern.permute.xlu1 %v2615_v59 }
 0x4d2   :  { %v1525_v51 = vadd.f32 %v1523_v46, %v1513_v39  ;;  %1804 = vperm.xlu1 %2436, %v3669_v42  }
 0x4d3   :  { %v3696_v44 = vpop.permute.xlu1 %1520 }
 0x4d4   :  { %v1537_v3 = vadd.f32 %v1535_v56, %v1525_v51  ;;  %v1524_v39 = vmul.f32 %v3424_v37, %v3696_v44 }
 0x4d6   :  { %1423 = vrot.lane.b32.xlu1 %v1417_v4, %s2542_s18  ;;  %1543 = vrot.lane.b32.xlu0 %v1537_v3, %s2543_s19  ;;  %v3764_v3 = vld [vmem:[%s3928_s1 + $0x50] sm:$0xff] }
 0x4d8   :  { %v1533_v60 = vpop.permute.xlu1 %1532 }
 0x4d9   :  { %v1536_v59 = vmul.f32 %v3419_v53, %v1533_v60 }
 0x4da   :  { %1808 = vperm.xlu1 %2436, %v3664_v57  }
 0x4dc   :  { %v3704_v25 = vpop.permute.xlu0 %1628 }
 0x4dd   :  { %v1555_v41 = vpop.permute.xlu1 %1554 }
 0x4de   :  { %2437 = vset.pattern.permute.xlu1 %v2608_v19  ;;  %v1441_v19 = vmul.f32 %v3411_v30, %v3634_v40  ;;  %v1561_v36 = vmul.f32 %v3411_v30, %v1555_v41  ;;  %v1583_v30 = vmul.f32 %v3430_v7, %v1577_v15  ;;  %v1514_v15 = vadd.f32 %v1512_v12, %v1502_v22 }
 0x4df   :  { %1816 = vperm.xlu1 %2437, %v3669_v42  }
 0x4e0   :  { %v1453_v29 = vadd.f32 %v1451_v21, %v1441_v19  ;;  %v1573_v14 = vadd.f32 %v1571_v35, %v1561_v36  ;;  %v1526_v58 = vadd.f32 %v1524_v39, %v1514_v15  ;;  %v3821_v39 = vld [vmem:[%s3928_s1 + $0x60] sm:$0xff] }
 0x4e1   :  { %v1184_v13 = vpop.permute.xlu1 %1183  ;;  %v3709_v45 = vpop.permute.xlu0 %1640 }
 0x4e2   :  { %v1189_v20 = vadd.f32 %v1184_v13, %v1179_v5  ;;  %v1465_v28 = vadd.f32 %v1463_v43, %v1453_v29  ;;  %v1585_v61 = vadd.f32 %v1583_v30, %v1573_v14  ;;  %v1538_v51 = vadd.f32 %v1536_v59, %v1526_v58  ;;  %v3784_v13 = vld [vmem:[%s3928_s1 + $0x58] sm:$0xff]  ;;  %v3831_v58 = vld [vmem:[%s3928_s1 + $0x70] sm:$0xff] }
 0x4e3   :  { %2439 = vset.pattern.permute.xlu1 %v2616_v24 }
 0x4e4   :  { %1191 = vst.msk [vmem:[#allocation3] sm:$0xff] %vm318_vm8, %v1189_v20  ;;  %1828 = vperm.xlu1 %2439, %v3669_v42   ;;  %v1477_v16 = vadd.f32 %v1475_v34, %v1465_v28  ;;  %v1632_v20 = vmul.f32 %v3784_v13, %v3704_v25 }
 0x4e5   :  { %v1559_v50 = vpop.permute.xlu1 %1558 }
 0x4e6   :  { %v3721_v62 = vpop.permute.xlu0 %1674  ;;  %v1562_v46 = vmul.f32 %v3401_v32, %v1559_v50 }
 0x4e8   :  { %1832 = vperm.xlu1 %2439, %v3664_v57  }
 0x4e9   :  { %v1186_v33 = vpop.permute.xlu1 %1185 }
 0x4ea   :  { %v1190_v2 = vadd.f32 %v1186_v33, %v1180_v49  ;;  %v3729_v31 = vpop.permute.xlu0 %1678 }
 0x4eb   :  { %v1239_v18 = vld [vmem:[#allocation3] sm:$0xff] }
 0x4ec   :  { %1192 = vst.msk [vmem:[#allocation3 + $0x8] sm:$0xff] %vm318_vm8, %v1190_v2  ;;  %2441 = vset.pattern.permute.xlu1 %v2617_v17  ;;  %v1249_v40 = vadd.f32 %v1244_v11, %v1239_v18  ;;  %v3770_v11 = vld [vmem:[%s3928_s1 + $0x40] sm:$0xff] }
 0x4ed   :  { %v1581_v52 = vpop.permute.xlu1 %1580  ;;  %1864 = vperm.xlu1 %2441, %v3669_v42   ;;  %v1681_v22 = vmul.f32 %v3770_v11, %v3721_v62 }
 0x4ee   :  { %1251 = vst.msk [vmem:[#allocation3] sm:$0xff] %vm375_vm9, %v1249_v40  ;;  %v1306_v47 = vpop.permute.xlu0 %1305  ;;  %v1584_v55 = vmul.f32 %v3424_v37, %v1581_v52 }
 0x4f1   :  { %1483 = vrot.lane.b32.xlu1 %v1477_v16, %s2552_s6 }
 0x4f2   :  { %v1589_v10 = vpop.permute.xlu1 %1588 }
 0x4f3   :  { %v1595_v63 = vmul.f32 %v3437_v9, %v1589_v10  ;;  %v1240_v32 = vld [vmem:[#allocation3 + $0x8] sm:$0xff] }
 0x4f5   :  { %v1597_v8 = vadd.f32 %v1595_v63, %v1585_v61  ;;  %1868 = vperm.xlu1 %2441, %v3664_v57   ;;  %v1299_v14 = vld [vmem:[#allocation3] sm:$0xff] }
 0x4f7   :  { %v1615_v26 = vpop.permute.xlu1 %1614  ;;  %1603 = vrot.lane.b32.xlu0 %v1597_v8, %s2553_s7 }
 0x4f8   :  { %v3737_v54 = vpop.permute.xlu0 %1700 }
 0x4f9   :  { %2442 = vset.pattern.permute.xlu1 %v2612_v0  ;;  %v1572_v0 = vmul.f32 %v3396_v48, %v3681_v6  ;;  %v1596_v48 = vmul.f32 %v3419_v53, %v3700_v27  ;;  %v1621_v53 = vmul.f32 %v3770_v11, %v1615_v26  ;;  %v3776_v27 = vld [vmem:[%s3928_s1 + $0x48] sm:$0xff] }
 0x4fa   :  { %1876 = vperm.xlu1 %2442, %v3669_v42   ;;  %v1682_v15 = vmul.f32 %v3776_v27, %v3729_v31 }
 0x4fb   :  { %v1574_v38 = vadd.f32 %v1572_v0, %v1562_v46 }
 0x4fc   :  { %v1625_v23 = vpop.permute.xlu1 %1624 }
 0x4fd   :  { %v3752_v56 = vpop.permute.xlu0 %1734  ;;  %v1586_v44 = vadd.f32 %v1584_v55, %v1574_v38 }
 0x4fe   :  { %2444 = vset.pattern.permute.xlu1 %v2614_v1 }
 0x4ff   :  { %1888 = vperm.xlu1 %2444, %v3669_v42   ;;  %v1598_v37 = vadd.f32 %v1596_v48, %v1586_v44 }
 0x501   :  { %v1619_v1 = vpop.permute.xlu1 %1618  ;;  %v3757_v6 = vpop.permute.xlu0 %1738 }
 0x502   :  { %v1622_v41 = vmul.f32 %v3776_v27, %v1619_v1 }
 0x503   :  { %1892 = vperm.xlu1 %2444, %v3664_v57   ;;  %v1631_v57 = vmul.f32 %v3764_v3, %v1625_v23 }
 0x504   :  { %v1634_v19 = vadd.f32 %v1632_v20, %v1622_v41 }
 0x505   :  { %v1246_v4 = vpop.permute.xlu1 %1245  ;;  %v1633_v24 = vadd.f32 %v1631_v57, %v1621_v53  ;;  %v1366_v50 = vpop.permute.xlu0 %1365 }
 0x506   :  { %v1250_v42 = vadd.f32 %v1246_v4, %v1240_v32 }
 0x507   :  { %1545 = vrot.lane.b32.xlu1 %v1538_v51, %s2543_s19 }
 0x508   :  { %1252 = vst.msk [vmem:[#allocation3 + $0x8] sm:$0xff] %vm375_vm9, %v1250_v42 }
 0x509   :  { %v1637_v60 = vpop.permute.xlu1 %1636 }
 0x50a   :  { %v1643_v5 = vmul.f32 %v3430_v7, %v1637_v60  ;;  %v3792_v7 = vld [vmem:[%s3928_s1 + $0x68] sm:$0xff] }
 0x50b   :  { %1605 = vrot.lane.b32.xlu1 %v1598_v37, %s2553_s7  ;;  %v1644_v29 = vmul.f32 %v3792_v7, %v3709_v45  ;;  %v1704_v51 = vmul.f32 %v3792_v7, %v3737_v54 }
 0x50c   :  { %v1645_v49 = vadd.f32 %v1643_v5, %v1633_v24 }
 0x50d   :  { %v1646_v18 = vadd.f32 %v1644_v29, %v1634_v19  ;;  %v1741_v19 = vmul.f32 %v3770_v11, %v3752_v56 }
 0x50e   :  { %v1649_v21 = vpop.permute.xlu1 %1648 }
 0x50f   :  { %v1300_v43 = vld [vmem:[#allocation3 + $0x8] sm:$0xff]  ;;  %v1655_v33 = vmul.f32 %v3437_v9, %v1649_v21 }
 0x510   :  { %v1310_v2 = vadd.f32 %v1306_v47, %v1300_v43  ;;  %v3796_v36 = vpop.permute.xlu0 %1760  ;;  %v3802_v9 = vld [vmem:[%s3928_s1 + $0x78] sm:$0xff] }
 0x511   :  { %v1657_v34 = vadd.f32 %v1655_v33, %v1645_v49  ;;  %v1742_v33 = vmul.f32 %v3776_v27, %v3757_v6 }
 0x512   :  { %1312 = vst.msk [vmem:[#allocation3 + $0x8] sm:$0xff] %vm432_vm10, %v1310_v2  ;;  %v1653_v25 = vpop.permute.xlu1 %1652 }
 0x513   :  { %v1656_v17 = vmul.f32 %v3802_v9, %v1653_v25  ;;  %1663 = vrot.lane.b32.xlu0 %v1657_v34, %s2554_s8 }
 0x515   :  { %v1658_v40 = vadd.f32 %v1656_v17, %v1646_v18  ;;  %v3806_v35 = vpop.permute.xlu0 %1794  ;;  %v1764_v17 = vmul.f32 %v3792_v7, %v3796_v36 }
 0x517   :  { %v1685_v45 = vpop.permute.xlu1 %1684  ;;  %1665 = vrot.lane.b32.xlu1 %v1658_v40, %s2554_s8 }
 0x518   :  { %v1691_v47 = vmul.f32 %v3764_v3, %v1685_v45 }
 0x519   :  { %v1360_v28 = vld [vmem:[#allocation3 + $0x8] sm:$0xff]  ;;  %v3810_v10 = vpop.permute.xlu0 %1798 }
 0x51a   :  { %v1370_v52 = vadd.f32 %v1366_v50, %v1360_v28  ;;  %v1693_v59 = vadd.f32 %v1691_v47, %v1681_v22  ;;  %v1802_v22 = vmul.f32 %v3776_v27, %v3810_v10 }
 0x51b   :  { %v1304_v16 = vpop.permute.xlu1 %1303 }
 0x51c   :  { %1372 = vst.msk [vmem:[#allocation3 + $0x8] sm:$0xff] %vm489_vm11, %v1370_v52  ;;  %v1309_v30 = vadd.f32 %v1304_v16, %v1299_v14 }
 0x51d   :  { %v1426_v8 = vpop.permute.xlu0 %1425 }
 0x51e   :  { %1311 = vst.msk [vmem:[#allocation3] sm:$0xff] %vm432_vm10, %v1309_v30 }
 0x51f   :  { %v1689_v61 = vpop.permute.xlu1 %1688 }
 0x520   :  { %v1692_v12 = vmul.f32 %v3784_v13, %v1689_v61 }
 0x522   :  { %v1694_v1 = vadd.f32 %v1692_v12, %v1682_v15 }
 0x523   :  { %v1420_v63 = vld [vmem:[#allocation3 + $0x8] sm:$0xff] }
 0x524   :  { %v1430_v26 = vadd.f32 %v1426_v8, %v1420_v63  ;;  %v1697_v23 = vpop.permute.xlu1 %1696  ;;  %v1706_v42 = vadd.f32 %v1704_v51, %v1694_v1  ;;  %v1801_v8 = vmul.f32 %v3770_v11, %v3806_v35 }
 0x525   :  { %v1703_v46 = vmul.f32 %v3821_v39, %v1697_v23  ;;  %v3824_v0 = vpop.permute.xlu0 %1820  ;;  %v1359_v53 = vld [vmem:[#allocation3] sm:$0xff]  ;;  %v1922_v23 = vld [vmem:[%s3931_s4 + $0x38] sm:$0xf] }
 0x526   :  { %1432 = vst.msk [vmem:[#allocation3 + $0x8] sm:$0xff] %vm546_vm12, %v1430_v26  ;;  %2080 = vmatprep.subr.msk.mxu1 %vm1930_vm5, %v1922_v23 }
 0x527   :  { %v1705_v62 = vadd.f32 %v1703_v46, %v1693_v59  ;;  %2081 = vmatpush3.msk.msra.mxu1 %vm1930_vm5, %v1922_v23 }
 0x529   :  { %v1709_v55 = vpop.permute.xlu1 %1708 }
 0x52a   :  { %v1715_v38 = vmul.f32 %v3831_v58, %v1709_v55  ;;  %v3836_v32 = vpop.permute.xlu0 %1854  ;;  %v1824_v55 = vmul.f32 %v3792_v7, %v3824_v0  ;;  %v1921_v0 = vld [vmem:[%s3931_s4 + $0x30] sm:$0xff] }
 0x52b   :  { %2082 = vmatprep.subr.mxu1 %v1921_v0 }
 0x52c   :  { %v1717_v44 = vadd.f32 %v1715_v38, %v1705_v62  ;;  %2083 = vmatpush3.msra.mxu1 %v1921_v0 }
 0x52d   :  { %v1713_v4 = vpop.permute.xlu1 %1712  ;;  %v1480_v5 = vld [vmem:[#allocation3 + $0x8] sm:$0xff] }
 0x52e   :  { %v1716_v31 = vmul.f32 %v3802_v9, %v1713_v4  ;;  %1723 = vrot.lane.b32.xlu0 %v1717_v44, %s2555_s9  ;;  %v3841_v57 = vpop.permute.xlu0 %1858 }
 0x530   :  { %v1718_v48 = vadd.f32 %v1716_v31, %v1706_v42 }
 0x532   :  { %v1745_v37 = vpop.permute.xlu1 %1744  ;;  %1725 = vrot.lane.b32.xlu1 %v1718_v48, %s2555_s9 }
 0x533   :  { %v1751_v50 = vmul.f32 %v3764_v3, %v1745_v37 }
 0x535   :  { %v1753_v2 = vadd.f32 %v1751_v50, %v1741_v19 }
 0x536   :  { %v1364_v60 = vpop.permute.xlu1 %1363 }
 0x537   :  { %v1369_v41 = vadd.f32 %v1364_v60, %v1359_v53  ;;  %v1486_v54 = vpop.permute.xlu0 %1485  ;;  %v1920_v60 = vld [vmem:[%s3931_s4 + $0x28] sm:$0xff] }
 0x538   :  { %v1490_v20 = vadd.f32 %v1486_v54, %v1480_v5  ;;  %2084 = vmatprep.subr.mxu1 %v1920_v60 }
 0x539   :  { %1371 = vst.msk [vmem:[#allocation3] sm:$0xff] %vm489_vm11, %v1369_v41  ;;  %2085 = vmatpush3.msra.mxu1 %v1920_v60 }
 0x53a   :  { %1492 = vst.msk [vmem:[#allocation3 + $0x8] sm:$0xff] %vm603_vm13, %v1490_v20  ;;  %v1749_v24 = vpop.permute.xlu1 %1748  ;;  %v1919_v20 = vld [vmem:[%s3931_s4 + $0x20] sm:$0xff] }
 0x53b   :  { %v1752_v43 = vmul.f32 %v3784_v13, %v1749_v24  ;;  %v1861_v24 = vmul.f32 %v3770_v11, %v3836_v32  ;;  %2086 = vmatprep.subr.mxu1 %v1919_v20 }
 0x53c   :  { %2087 = vmatpush3.msra.mxu1 %v1919_v20 }
 0x53d   :  { %v1754_v34 = vadd.f32 %v1752_v43, %v1742_v33  ;;  %v1917_v43 = vld [vmem:[%s3931_s4 + $0x10] sm:$0xff] }
 0x53f   :  { %v1757_v21 = vpop.permute.xlu1 %1756  ;;  %v1766_v28 = vadd.f32 %v1764_v17, %v1754_v34 }
 0x540   :  { %v1763_v49 = vmul.f32 %v3821_v39, %v1757_v21  ;;  %v1419_v14 = vld [vmem:[#allocation3] sm:$0xff] }
 0x542   :  { %v1765_v25 = vadd.f32 %v1763_v49, %v1753_v2  ;;  %v1862_v49 = vmul.f32 %v3776_v27, %v3841_v57  ;;  %v1915_v27 = vld [vmem:[%s3931_s4] sm:$0xff] }
 0x544   :  { %v1769_v29 = vpop.permute.xlu1 %1768  ;;  %v1881_v48 = vpop.permute.xlu0 %1880 }
 0x545   :  { %v1775_v18 = vmul.f32 %v3831_v58, %v1769_v29  ;;  %v1884_v57 = vmul.f32 %v3792_v7, %v1881_v48 }
 0x547   :  { %v1777_v40 = vadd.f32 %v1775_v18, %v1765_v25 }
 0x548   :  { %v1773_v45 = vpop.permute.xlu1 %1772  ;;  %v1544_v5 = vpop.permute.xlu0 %1543 }
 0x549   :  { %v1776_v56 = vmul.f32 %v3802_v9, %v1773_v45  ;;  %1783 = vrot.lane.b32.xlu0 %v1777_v40, %s2556_s10 }
 0x54b   :  { %v1778_v52 = vadd.f32 %v1776_v56, %v1766_v28  ;;  %v1540_v56 = vld [vmem:[#allocation3 + $0x8] sm:$0xff] }
 0x54d   :  { %v1805_v16 = vpop.permute.xlu1 %1804  ;;  %1785 = vrot.lane.b32.xlu1 %v1778_v52, %s2556_s10 }
 0x54e   :  { %v1811_v63 = vmul.f32 %v3764_v3, %v1805_v16 }
 0x550   :  { %v1813_v12 = vadd.f32 %v1811_v63, %v1801_v8 }
 0x551   :  { %v1424_v6 = vpop.permute.xlu1 %1423 }
 0x552   :  { %v1429_v30 = vadd.f32 %v1424_v6, %v1419_v14 }
 0x554   :  { %1431 = vst.msk [vmem:[#allocation3] sm:$0xff] %vm546_vm12, %v1429_v30 }
 0x555   :  { %v1809_v61 = vpop.permute.xlu1 %1808 }
 0x556   :  { %v1812_v47 = vmul.f32 %v3784_v13, %v1809_v61 }
 0x558   :  { %v1814_v15 = vadd.f32 %v1812_v47, %v1802_v22 }
 0x55a   :  { %v1817_v36 = vpop.permute.xlu1 %1816  ;;  %v1826_v38 = vadd.f32 %v1824_v55, %v1814_v15 }
 0x55b   :  { %v1823_v26 = vmul.f32 %v3821_v39, %v1817_v36  ;;  %v1479_v42 = vld [vmem:[#allocation3] sm:$0xff] }
 0x55d   :  { %v1825_v59 = vadd.f32 %v1823_v26, %v1813_v12 }
 0x55f   :  { %v1829_v46 = vpop.permute.xlu1 %1828 }
 0x560   :  { %v1835_v35 = vmul.f32 %v3831_v58, %v1829_v46 }
 0x562   :  { %v1837_v1 = vadd.f32 %v1835_v35, %v1825_v59 }
 0x563   :  { %v1833_v62 = vpop.permute.xlu1 %1832 }
 0x564   :  { %v1836_v51 = vmul.f32 %v3802_v9, %v1833_v62  ;;  %1843 = vrot.lane.b32.xlu0 %v1837_v1, %s2557_s0 }
 0x566   :  { %v1838_v44 = vadd.f32 %v1836_v51, %v1826_v38 }
 0x568   :  { %v1865_v10 = vpop.permute.xlu1 %1864  ;;  %1845 = vrot.lane.b32.xlu1 %v1838_v44, %s2557_s0 }
 0x569   :  { %v1871_v53 = vmul.f32 %v3764_v3, %v1865_v10  ;;  %v1918_v3 = vld [vmem:[%s3931_s4 + $0x18] sm:$0xff]  ;;  %v1604_v17 = vpop.permute.xlu0 %1603 }
 0x56a   :  { %2088 = vmatprep.subr.mxu1 %v1918_v3 }
 0x56b   :  { %v1873_v33 = vadd.f32 %v1871_v53, %v1861_v24  ;;  %2089 = vmatpush3.msra.mxu1 %v1918_v3 }
 0x56c   :  { %v1484_v4 = vpop.permute.xlu1 %1483  ;;  %2090 = vmatprep.subr.mxu1 %v1917_v43 }
 0x56d   :  { %v1489_v31 = vadd.f32 %v1484_v4, %v1479_v42  ;;  %2091 = vmatpush3.msra.mxu1 %v1917_v43 }
 0x56f   :  { %1491 = vst.msk [vmem:[#allocation3] sm:$0xff] %vm603_vm13, %v1489_v31 }
 0x570   :  { %v1869_v37 = vpop.permute.xlu1 %1868 }
 0x571   :  { %v1872_v21 = vmul.f32 %v3784_v13, %v1869_v37  ;;  %v1916_v13 = vld [vmem:[%s3931_s4 + $0x8] sm:$0xff]  ;;  %s2618_s4 = smov [#allocation4]  }
 0x572   :  { %2092 = vmatprep.subr.mxu1 %v1916_v13 }
 0x573   :  { %2093 = vmatpush3.msra.mxu1 %v1916_v13 }
 0x574   :  { %2094 = vmatprep.subr.mxu1 %v1915_v27 }
 0x575   :  { %v1877_v41 = vpop.permute.xlu1 %1876  ;;  %2095 = vmatpush3.msra.mxu1 %v1915_v27 }
 0x576   :  { %v1539_v54 = vld [vmem:[#allocation3] sm:$0xff]  ;;  %v1883_v19 = vmul.f32 %v3821_v39, %v1877_v41  ;;  %v1874_v39 = vadd.f32 %v1872_v21, %v1862_v49 }
 0x577   :  { %v1549_v50 = vadd.f32 %v1544_v5, %v1539_v54 }
 0x578   :  { %v1885_v32 = vadd.f32 %v1883_v19, %v1873_v33  ;;  %v1886_v25 = vadd.f32 %v1884_v57, %v1874_v39 }
 0x579   :  { %1551 = vst.msk [vmem:[#allocation3] sm:$0xff] %vm660_vm14, %v1549_v50 }
 0x57a   :  { %v1889_v11 = vpop.permute.xlu1 %1888 }
 0x57b   :  { %v1895_v2 = vmul.f32 %v3831_v58, %v1889_v11 }
 0x57d   :  { %v1897_v29 = vadd.f32 %v1895_v2, %v1885_v32 }
 0x57e   :  { %v1893_v34 = vpop.permute.xlu1 %1892 }
 0x57f   :  { %v1896_v18 = vmul.f32 %v3802_v9, %v1893_v34  ;;  %1903 = vrot.lane.b32.xlu0 %v1897_v29, %s2558_s2 }
 0x580   :  { %v1599_v58 = vld [vmem:[#allocation3] sm:$0xff] }
 0x581   :  { %v1898_v40 = vadd.f32 %v1896_v18, %v1886_v25  ;;  %v1609_v45 = vadd.f32 %v1604_v17, %v1599_v58 }
 0x582   :  { %v1546_v28 = vpop.permute.xlu1 %1545 }
 0x583   :  { %v1550_v52 = vadd.f32 %v1546_v28, %v1540_v56  ;;  %1905 = vrot.lane.b32.xlu1 %v1898_v40, %s2558_s2  ;;  %1611 = vst.msk [vmem:[#allocation3] sm:$0xff] %vm717_vm15, %v1609_v45  ;;  %s2016_s2 = sshll.u32 %s2618_s4, 4  ;;  %s2017_s2 = int_to_ptr.vmem [resolvable:$true] %s2016_s2 }
 0x584   :  { %s2462_s19 = scalar_lea.vmem %s2017_s2, 256  ;;  %p2467_p1 = scmp.lt.s32.totalorder %s2017_s2, %s2017_s2 }
 0x585   :  { %1552 = vst.msk [vmem:[#allocation3 + $0x8] sm:$0xff] %vm660_vm14, %v1550_v52  ;;  %v1664_v16 = vpop.permute.xlu0 %1663  ;;  %p2463_p0 = scmp.ne.s32.totalorder %s2017_s2, %s2462_s19  ;;  %p2468_p2 = scmp.lt.s32.totalorder %s2462_s19, %s2462_s19 }
 0x586   :  { %v1606_v6 = vpop.permute.xlu1 %1605 }
 0x587   :  { %p2469_p3 = por %p2468_p2, %p2467_p1 }
 0x589   :  { %p2470_p4 = pnand %p2469_p3, %p2463_p0 }
 0x58a   :  { %v1659_v7 = vld [vmem:[#allocation3] sm:$0xff]  ;;  %v1666_v61 = vpop.permute.xlu1 %1665 }
 0x58b   :  { %v1669_v9 = vadd.f32 %v1664_v16, %v1659_v7 }
 0x58c   :  { %v1600_v14 = vld [vmem:[#allocation3 + $0x8] sm:$0xff] }
 0x58d   :  { %1671 = vst.msk [vmem:[#allocation3] sm:$0xff] %vm774_vm0, %v1669_v9  ;;  %v1610_v30 = vadd.f32 %v1606_v6, %v1600_v14 }
 0x58f   :  { %1612 = vst.msk [vmem:[#allocation3 + $0x8] sm:$0xff] %vm717_vm15, %v1610_v30 }
 0x594   :  { %v1719_v8 = vld [vmem:[#allocation3] sm:$0xff] }
 0x596   :  { %v1660_v63 = vld [vmem:[#allocation3 + $0x8] sm:$0xff] }
 0x597   :  { %v1670_v36 = vadd.f32 %v1666_v61, %v1660_v63 }
 0x599   :  { %1672 = vst.msk [vmem:[#allocation3 + $0x8] sm:$0xff] %vm774_vm0, %v1670_v36 }
 0x5a0   :  { %v1724_v47 = vpop.permute.xlu0 %1723  ;;  %v1720_v22 = vld [vmem:[#allocation3 + $0x8] sm:$0xff] }
 0x5a1   :  { %v1729_v26 = vadd.f32 %v1724_v47, %v1719_v8 }
 0x5a3   :  { %1731 = vst.msk [vmem:[#allocation3] sm:$0xff] %vm831_vm1, %v1729_v26 }
 0x5a4   :  { %v1726_v23 = vpop.permute.xlu1 %1725 }
 0x5a5   :  { %v1730_v12 = vadd.f32 %v1726_v23, %v1720_v22 }
 0x5a7   :  { %1732 = vst.msk [vmem:[#allocation3 + $0x8] sm:$0xff] %vm831_vm1, %v1730_v12 }
 0x5aa   :  { %v1779_v46 = vld [vmem:[#allocation3] sm:$0xff] }
 0x5ae   :  { %v1780_v55 = vld [vmem:[#allocation3 + $0x8] sm:$0xff] }
 0x5bb   :  { %v1784_v15 = vpop.permute.xlu0 %1783 }
 0x5bc   :  { %v1789_v59 = vadd.f32 %v1784_v15, %v1779_v46 }
 0x5be   :  { %1791 = vst.msk [vmem:[#allocation3] sm:$0xff] %vm888_vm2, %v1789_v59 }
 0x5bf   :  { %v1786_v35 = vpop.permute.xlu1 %1785 }
 0x5c0   :  { %v1790_v1 = vadd.f32 %v1786_v35, %v1780_v55 }
 0x5c2   :  { %1792 = vst.msk [vmem:[#allocation3 + $0x8] sm:$0xff] %vm888_vm2, %v1790_v1 }
 0x5c5   :  { %v1839_v62 = vld [vmem:[#allocation3] sm:$0xff] }
 0x5c9   :  { %v1840_v10 = vld [vmem:[#allocation3 + $0x8] sm:$0xff] }
 0x5d6   :  { %v1844_v38 = vpop.permute.xlu0 %1843 }
 0x5d7   :  { %v1849_v51 = vadd.f32 %v1844_v38, %v1839_v62 }
 0x5d9   :  { %1851 = vst.msk [vmem:[#allocation3] sm:$0xff] %vm945_vm3, %v1849_v51 }
 0x5da   :  { %v1846_v44 = vpop.permute.xlu1 %1845 }
 0x5db   :  { %v1850_v4 = vadd.f32 %v1846_v44, %v1840_v10 }
 0x5dd   :  { %1852 = vst.msk [vmem:[#allocation3 + $0x8] sm:$0xff] %vm945_vm3, %v1850_v4 }
 0x5e0   :  { %v1899_v42 = vld [vmem:[#allocation3] sm:$0xff] }
 0x5e4   :  { %v1900_v37 = vld [vmem:[#allocation3 + $0x8] sm:$0xff] }
 0x5f1   :  { %v1904_v31 = vpop.permute.xlu0 %1903 }
 0x5f2   :  { %v1909_v48 = vadd.f32 %v1904_v31, %v1899_v42 }
 0x5f4   :  { %1911 = vst.msk [vmem:[#allocation3] sm:$0xff] %vm1002_vm4, %v1909_v48 }
 0x5f5   :  { %v1906_v0 = vpop.permute.xlu1 %1905 }
 0x5f6   :  { %v1910_v60 = vadd.f32 %v1906_v0, %v1900_v37 }
 0x5f8   :  { %1912 = vst.msk [vmem:[#allocation3 + $0x8] sm:$0xff] %vm1002_vm4, %v1910_v60 }
 0x5fb   :  { %v1913_v53 = vld [vmem:[#allocation3] sm:$0xff] }
 0x5fc   :  { %2096 = vmatprep.mubr.msk.f32.mxu1 %vm1923_vm6, %v1913_v53 }
 0x5ff   :  { %v1914_v41 = vld [vmem:[#allocation3 + $0x8] sm:$0xff] }
 0x600   :  { %2097 = vmatmul.mubr.msk.f32.vlgmr.msra.gmra.mxu1 %vm1923_vm6, %v1914_v41 }
 0x6c0   :  { %v2098_v5 = vpop.f32.mrf.mxu1 }
 0x6c1   :  { %2010 = vst [vmem:[#allocation4 + $0x8] sm:$0xff] %v2098_v5 }
 0x6c2   :  { %v2000_v54 = vpop.f32.mrf.mxu1 }
 0x6c3   :  { %2009 = vst [vmem:[#allocation4] sm:$0xff] %v2000_v54 }
 0x6c4   :  { %2473 = shalt.err (!%p2470_p4)
}
 0x6c5   :  { %s2619_s6 = smov 128  }
 0x6c6   :  { %2022 = dma.vmem_to_hbm [thread:$0]  %s2017_s2, 256, %s3932_s5, [#allocation5], %s2619_s6, %s2619_s6, %s2540_s16  }
 0x6c7   :  { %2482 = dma.done.wait [#allocation5], 256  }
 0x6c8   :  { %2483 = vsyncadd [#allocation5], 4294967040 }
 0x6c9   :  { %2026 = vsyncpa [#allocation5], 1 }

</bundles_post_ra>
